<compile_context>
chip_gen: v5e
topology: v5e:2x2
jax: 0.10.0
libtpu: 0.0.40
codegen_flags: <defaults>
</compile_context>

<pallas_src>
import jax
import jax.numpy as jnp
from jax.experimental import pallas as pl
from jax.experimental.pallas import tpu as pltpu

FF_HIDDEN = 3072    # hardcoded in the PyTorch FeedForward module
FF_CHUNK = 1024     # chunk of the 3072-wide hidden dim processed at a time
LN_EPS = 1e-5
LEAKY_SLOPE = 0.01  # PyTorch nn.LeakyReLU default


def _layer_norm(x, gamma, beta):
    # x: (rows, E) f32; gamma/beta: (1, E).  PyTorch LayerNorm (population var).
    mean = jnp.mean(x, axis=-1, keepdims=True)
    var = jnp.mean((x - mean) ** 2, axis=-1, keepdims=True)
    inv = jax.lax.rsqrt(var + LN_EPS)
    return (x - mean) * inv * gamma + beta


def make_kernel(embed_dim, ff_dim, ff_chunk, num_s_tiles):
    E = embed_dim

    def kernel(
        xq_ref,    # (1, block_s, E) bf16 : rows this grid step owns (Q / residual)
        xkv_ref,   # (1, S, E)       bf16 : full sequence (K / V)
        wqkv_ref,  # (E, 3E)         bf16 : [Wq | Wk | Wv], (in, out) layout
        g1_ref,    # (1, E)  f32
        be1_ref,   # (1, E)  f32
        w1_ref,    # (E, FF) bf16
        b1_ref,    # (1, FF) f32
        w2_ref,    # (FF, E) bf16
        b2_ref,    # (1, E)  f32
        g2_ref,    # (1, E)  f32
        be2_ref,   # (1, E)  f32
        out_ref,   # (1, block_s, E) f32
    ):
        xq = xq_ref[0]   # (block_s, E) bf16

        # --- QKV projections (bf16 MXU, f32 accumulation) ---
        if num_s_tiles == 1:
            # Fully fused: one (S,E)x(E,3E) pass, then slice q/k/v.
            qkv = jnp.dot(xkv_ref[0], wqkv_ref[...],
                          preferred_element_type=jnp.float32)
            q, k, v = qkv[:, :E], qkv[:, E:2 * E], qkv[:, 2 * E:]
        else:
            # Q from the row tile, K/V (fused) from the full sequence.
            q = jnp.dot(xq, wqkv_ref[:, :E],
                        preferred_element_type=jnp.float32)
            kv = jnp.dot(xkv_ref[0], wqkv_ref[:, E:],
                         preferred_element_type=jnp.float32)
            k, v = kv[:, :E], kv[:, E:]

        # --- Attention (unscaled, softmax over the full key axis) ---
        # Contract the E axis of q and k directly: no k.T transpose.
        scores = jax.lax.dot_general(
            q.astype(jnp.bfloat16), k.astype(jnp.bfloat16),
            dimension_numbers=(((1,), (1,)), ((), ())),
            preferred_element_type=jnp.float32)                 # (block_s, S)
        m = jnp.max(scores, axis=-1, keepdims=True)
        e = jnp.exp(scores - m)
        p = e * pl.reciprocal(jnp.sum(e, axis=-1, keepdims=True), approx=True)
        attn = jnp.dot(p.astype(jnp.bfloat16), v.astype(jnp.bfloat16),
                       preferred_element_type=jnp.float32)      # (block_s, E)

        # --- Residual + LayerNorm 1 (f32) ---
        h = _layer_norm(attn + xq.astype(jnp.float32), g1_ref[...], be1_ref[...])

        # --- FeedForward: Linear(E->3072) -> LeakyReLU -> Linear(3072->E) ---
        # Chunked over the hidden dim; f32 accumulator, bf16 matmul inputs.
        h_b = h.astype(jnp.bfloat16)
        ff2 = jnp.zeros(h.shape, jnp.float32)
        for c0 in range(0, ff_dim, ff_chunk):
            f = jnp.dot(h_b, w1_ref[:, c0:c0 + ff_chunk],
                        preferred_element_type=jnp.float32)
            f = f + b1_ref[:, c0:c0 + ff_chunk]
            f = jnp.where(f >= 0, f, LEAKY_SLOPE * f)
            ff2 = ff2 + jnp.dot(f.astype(jnp.bfloat16),
                                w2_ref[c0:c0 + ff_chunk, :],
                                preferred_element_type=jnp.float32)
        ff2 = ff2 + b2_ref[...]

        # --- Residual + LayerNorm 2 ---
        out = _layer_norm(ff2 + h, g2_ref[...], be2_ref[...])
        out_ref[0] = out.astype(out_ref.dtype)

    return kernel


def basic_transformer_layer(x, params, *, block_s=None):
    """x: (B, S, E) float32. params: dict of f32 weights (see init_params)."""
    B, S, E = x.shape
    FF = params["w1"].shape[1]
    if block_s is None:
        block_s = S if S <= 128 else 128
    assert S % block_s == 0, "block_s must divide S"
    ns = S // block_s
    assert FF % FF_CHUNK == 0

    # bf16 for everything that feeds the MXU; f32 for biases / LN params.
    x_b = x.astype(jnp.bfloat16)
    wqkv = jnp.concatenate(
        [params["wq"], params["wk"], params["wv"]], axis=1
    ).astype(jnp.bfloat16)                                   # (E, 3E)
    w1 = params["w1"].astype(jnp.bfloat16)
    w2 = params["w2"].astype(jnp.bfloat16)

    def rep(shape):  # grid-invariant operand (weights / LN params)
        nd = len(shape)
        return pl.BlockSpec(shape, lambda b, s, _nd=nd: (0,) * _nd)

    in_specs = [
        pl.BlockSpec((1, block_s, E), lambda b, s: (b, s, 0)),  # x rows
        pl.BlockSpec((1, S, E), lambda b, s: (b, 0, 0)),        # x full (K/V)
        rep((E, 3 * E)),   # wqkv
        rep((1, E)),       # gamma1
        rep((1, E)),       # beta1
        rep((E, FF)),      # w1
        rep((1, FF)),      # b1
        rep((FF, E)),      # w2
        rep((1, E)),       # b2
        rep((1, E)),       # gamma2
        rep((1, E)),       # beta2
    ]
    out_spec = pl.BlockSpec((1, block_s, E), lambda b, s: (b, s, 0))

    kernel = make_kernel(E, FF, FF_CHUNK, ns)

    return pl.pallas_call(
        kernel,
        out_shape=jax.ShapeDtypeStruct((B, S, E), jnp.float32),
        grid_spec=pltpu.PrefetchScalarGridSpec(
            num_scalar_prefetch=0,
            grid=(B, ns),
            in_specs=in_specs,
            out_specs=out_spec,
        ),
        compiler_params=pltpu.CompilerParams(
            dimension_semantics=("parallel", "parallel"),
            # v7x has only 64 MiB physical VMEM per TC; leave headroom for the
            # double-buffered x/out tiles and compiler-internal scratch.
            vmem_limit_bytes=48 << 20,
        ),
    )(
        x_b, x_b, wqkv,
        params["gamma1"], params["beta1"],
        w1, params["b1"], w2, params["b2"],
        params["gamma2"], params["beta2"],
    )


def init_params(key, embed_dim):
    """Deterministic synthetic parameters.

    Linear weights are stored pre-transposed as (in_features, out_features),
    i.e. equal to W.T of PyTorch's (out, in) layout, so x @ W == x @ W_torch.T.
    """
    keys = jax.random.split(key, 8)

    def uni(k, shape, fan_in):
        bound = 1.0 / jnp.sqrt(fan_in)
        return jax.random.uniform(k, shape, jnp.float32, -bound, bound)

    E = embed_dim
    return {
        # attention projections (bias=False), stored (in, out)
        "wq": uni(keys[0], (E, E), E),
        "wk": uni(keys[1], (E, E), E),
        "wv": uni(keys[2], (E, E), E),
        # layer norm 1 (PyTorch default init: gamma=1, beta=0)
        "gamma1": jnp.ones((1, E), jnp.float32),
        "beta1": jnp.zeros((1, E), jnp.float32),
        # feed forward
        "w1": uni(keys[3], (E, FF_HIDDEN), E),
        "b1": uni(keys[4], (1, FF_HIDDEN), E),
        "w2": uni(keys[5], (FF_HIDDEN, E), FF_HIDDEN),
        "b2": uni(keys[6], (1, E), FF_HIDDEN),
        # layer norm 2
        "gamma2": jnp.ones((1, E), jnp.float32),
        "beta2": jnp.zeros((1, E), jnp.float32),
    }


def reference_forward(x, p):
    """Pure-JAX f32 reference replicating the PyTorch module semantics."""
    q = x @ p["wq"]
    k = x @ p["wk"]
    v = x @ p["wv"]
    scores = jnp.einsum("bse,bte->bst", q, k)
    soft = jax.nn.softmax(scores, axis=-1)
    attn = jnp.einsum("bst,bte->bse", soft, v)

    def ln(y, g, b):
        mu = jnp.mean(y, -1, keepdims=True)
        var = jnp.mean((y - mu) ** 2, -1, keepdims=True)
        return (y - mu) / jnp.sqrt(var + LN_EPS) * g + b

    h = ln(attn + x, p["gamma1"], p["beta1"])
    f = h @ p["w1"] + p["b1"]
    f = jnp.where(f >= 0, f, LEAKY_SLOPE * f)
    f = f @ p["w2"] + p["b2"]
    return ln(f + h, p["gamma2"], p["beta2"])


if __name__ == "__main__":
    # E = 128 keeps the last dim lane-dense (unmasked vector loads/stores).
    B, S, E = 2, 8, 128
    key = jax.random.PRNGKey(0)
    kx, kp = jax.random.split(key)
    x = jax.random.normal(kx, (B, S, E), jnp.float32)
    params = init_params(kp, E)

    out = basic_transformer_layer(x, params)
    out = jax.block_until_ready(out)

    ref = reference_forward(x, params)
    assert out.shape == (B, S, E)
    # bf16 matmul inputs vs. the f32 reference -> relaxed tolerance.
    assert jnp.allclose(out, ref, atol=5e-2, rtol=5e-2), (
        float(jnp.max(jnp.abs(out - ref)))
    )
    print("KERNEL_OK")
</pallas_src>

<mosaic_0001>
module attributes {stable_mosaic.version = 11 : i64} {
  func.func @kernel(%arg0: i32, %arg1: i32, %arg2: memref<1x8x128xbf16, #tpu.memory_space<vmem>>, %arg3: memref<1x8x128xbf16, #tpu.memory_space<vmem>>, %arg4: memref<128x384xbf16, #tpu.memory_space<vmem>>, %arg5: memref<1x128xf32, #tpu.memory_space<vmem>>, %arg6: memref<1x128xf32, #tpu.memory_space<vmem>>, %arg7: memref<128x3072xbf16, #tpu.memory_space<vmem>>, %arg8: memref<1x3072xf32, #tpu.memory_space<vmem>>, %arg9: memref<3072x128xbf16, #tpu.memory_space<vmem>>, %arg10: memref<1x128xf32, #tpu.memory_space<vmem>>, %arg11: memref<1x128xf32, #tpu.memory_space<vmem>>, %arg12: memref<1x128xf32, #tpu.memory_space<vmem>>, %arg13: memref<1x8x128xf32, #tpu.memory_space<vmem>>) attributes {dimension_semantics = [#tpu.dimension_semantics<parallel>, #tpu.dimension_semantics<parallel>], iteration_bounds = array<i64: 2, 1>, scalar_prefetch = 0 : i64, scratch_operands = 0 : i64, tpu.core_type = #tpu.core_type<tc>, window_params = [{transform_indices = @transform_0, window_bounds = array<i64: 1, 8, 128>}, {transform_indices = @transform_1, window_bounds = array<i64: 1, 8, 128>}, {pipeline_mode = #tpu.pipeline_mode<synchronous>, transform_indices = @transform_2, window_bounds = array<i64: 128, 384>}, {pipeline_mode = #tpu.pipeline_mode<synchronous>, transform_indices = @transform_3, window_bounds = array<i64: 1, 128>}, {pipeline_mode = #tpu.pipeline_mode<synchronous>, transform_indices = @transform_4, window_bounds = array<i64: 1, 128>}, {pipeline_mode = #tpu.pipeline_mode<synchronous>, transform_indices = @transform_5, window_bounds = array<i64: 128, 3072>}, {pipeline_mode = #tpu.pipeline_mode<synchronous>, transform_indices = @transform_6, window_bounds = array<i64: 1, 3072>}, {pipeline_mode = #tpu.pipeline_mode<synchronous>, transform_indices = @transform_7, window_bounds = array<i64: 3072, 128>}, {pipeline_mode = #tpu.pipeline_mode<synchronous>, transform_indices = @transform_8, window_bounds = array<i64: 1, 128>}, {pipeline_mode = #tpu.pipeline_mode<synchronous>, transform_indices = @transform_9, window_bounds = array<i64: 1, 128>}, {pipeline_mode = #tpu.pipeline_mode<synchronous>, transform_indices = @transform_10, window_bounds = array<i64: 1, 128>}, {transform_indices = @transform_11, window_bounds = array<i64: 1, 8, 128>}]} {
    %c0 = arith.constant 0 : index
    %c0_0 = arith.constant 0 : index
    %c0_1 = arith.constant 0 : index
    %0 = vector.load %arg2[%c0, %c0_0, %c0_1] : memref<1x8x128xbf16, #tpu.memory_space<vmem>>, vector<1x8x128xbf16>
    %1 = vector.shape_cast %0 : vector<1x8x128xbf16> to vector<8x128xbf16>
    %c0_2 = arith.constant 0 : index
    %c0_3 = arith.constant 0 : index
    %c0_4 = arith.constant 0 : index
    %2 = vector.load %arg3[%c0_2, %c0_3, %c0_4] : memref<1x8x128xbf16, #tpu.memory_space<vmem>>, vector<1x8x128xbf16>
    %3 = vector.shape_cast %2 : vector<1x8x128xbf16> to vector<8x128xbf16>
    %c0_5 = arith.constant 0 : index
    %c0_6 = arith.constant 0 : index
    %4 = vector.load %arg4[%c0_5, %c0_6] : memref<128x384xbf16, #tpu.memory_space<vmem>>, vector<128x384xbf16>
    %cst = arith.constant dense<0.000000e+00> : vector<8x384xf32>
    %5 = tpu.matmul %3, %4, %cst {dimension_numbers = #tpu.dot_dimension_numbers<[1], [0], [0], [1], [0, 0, 1, 1], [], []>} : vector<8x128xbf16>, vector<128x384xbf16>, vector<8x384xf32> -> vector<8x384xf32>
    %6 = vector.extract_strided_slice %5 {offsets = [0, 0], sizes = [8, 128], strides = [1, 1]} : vector<8x384xf32> to vector<8x128xf32>
    %7 = vector.extract_strided_slice %5 {offsets = [0, 128], sizes = [8, 128], strides = [1, 1]} : vector<8x384xf32> to vector<8x128xf32>
    %8 = vector.extract_strided_slice %5 {offsets = [0, 256], sizes = [8, 128], strides = [1, 1]} : vector<8x384xf32> to vector<8x128xf32>
    %9 = arith.truncf %6 : vector<8x128xf32> to vector<8x128xbf16>
    %10 = arith.truncf %7 : vector<8x128xf32> to vector<8x128xbf16>
    %cst_7 = arith.constant dense<0.000000e+00> : vector<8x8xf32>
    %11 = tpu.matmul %9, %10, %cst_7 {dimension_numbers = #tpu.dot_dimension_numbers<[1], [1], [0], [0], [0, 0, 1, 0], [], []>} : vector<8x128xbf16>, vector<8x128xbf16>, vector<8x8xf32> -> vector<8x8xf32>
    %cst_8 = arith.constant dense<0xFF800000> : vector<8xf32>
    %12 = vector.multi_reduction <maximumf>, %11, %cst_8 [1] : vector<8x8xf32> to vector<8xf32>
    %13 = vector.shape_cast %12 : vector<8xf32> to vector<8x1xf32>
    %14 = vector.broadcast %13 : vector<8x1xf32> to vector<8x8xf32>
    %15 = arith.subf %11, %14 : vector<8x8xf32>
    %16 = math.exp %15 : vector<8x8xf32>
    %cst_9 = arith.constant dense<0.000000e+00> : vector<8xf32>
    %17 = vector.multi_reduction <add>, %16, %cst_9 [1] : vector<8x8xf32> to vector<8xf32>
    %18 = vector.shape_cast %17 : vector<8xf32> to vector<8x1xf32>
    %19 = tpu.reciprocal %18 {approx = true} : vector<8x1xf32> -> vector<8x1xf32>
    %20 = vector.broadcast %19 : vector<8x1xf32> to vector<8x8xf32>
    %21 = arith.mulf %16, %20 : vector<8x8xf32>
    %22 = arith.truncf %21 : vector<8x8xf32> to vector<8x8xbf16>
    %23 = arith.truncf %8 : vector<8x128xf32> to vector<8x128xbf16>
    %cst_10 = arith.constant dense<0.000000e+00> : vector<8x128xf32>
    %24 = tpu.matmul %22, %23, %cst_10 {dimension_numbers = #tpu.dot_dimension_numbers<[1], [0], [0], [1], [0, 0, 1, 1], [], []>} : vector<8x8xbf16>, vector<8x128xbf16>, vector<8x128xf32> -> vector<8x128xf32>
    %25 = arith.extf %1 : vector<8x128xbf16> to vector<8x128xf32>
    %26 = arith.addf %24, %25 : vector<8x128xf32>
    %c0_11 = arith.constant 0 : index
    %c0_12 = arith.constant 0 : index
    %27 = vector.load %arg5[%c0_11, %c0_12] : memref<1x128xf32, #tpu.memory_space<vmem>>, vector<1x128xf32>
    %c0_13 = arith.constant 0 : index
    %c0_14 = arith.constant 0 : index
    %28 = vector.load %arg6[%c0_13, %c0_14] : memref<1x128xf32, #tpu.memory_space<vmem>>, vector<1x128xf32>
    %cst_15 = arith.constant dense<0.000000e+00> : vector<8xf32>
    %29 = vector.multi_reduction <add>, %26, %cst_15 [1] : vector<8x128xf32> to vector<8xf32>
    %30 = vector.shape_cast %29 : vector<8xf32> to vector<8x1xf32>
    %cst_16 = arith.constant 1.280000e+02 : f32
    %31 = vector.broadcast %cst_16 : f32 to vector<8x1xf32>
    %32 = arith.divf %30, %31 : vector<8x1xf32>
    %33 = vector.broadcast %32 : vector<8x1xf32> to vector<8x128xf32>
    %34 = arith.subf %26, %33 : vector<8x128xf32>
    %35 = arith.mulf %34, %34 : vector<8x128xf32>
    %cst_17 = arith.constant dense<0.000000e+00> : vector<8xf32>
    %36 = vector.multi_reduction <add>, %35, %cst_17 [1] : vector<8x128xf32> to vector<8xf32>
    %37 = vector.shape_cast %36 : vector<8xf32> to vector<8x1xf32>
    %cst_18 = arith.constant 1.280000e+02 : f32
    %38 = vector.broadcast %cst_18 : f32 to vector<8x1xf32>
    %39 = arith.divf %37, %38 : vector<8x1xf32>
    %cst_19 = arith.constant 9.99999974E-6 : f32
    %40 = vector.broadcast %cst_19 : f32 to vector<8x1xf32>
    %41 = arith.addf %39, %40 : vector<8x1xf32>
    %42 = math.rsqrt %41 : vector<8x1xf32>
    %43 = vector.broadcast %32 : vector<8x1xf32> to vector<8x128xf32>
    %44 = arith.subf %26, %43 : vector<8x128xf32>
    %45 = vector.broadcast %42 : vector<8x1xf32> to vector<8x128xf32>
    %46 = arith.mulf %44, %45 : vector<8x128xf32>
    %47 = vector.broadcast %27 : vector<1x128xf32> to vector<8x128xf32>
    %48 = arith.mulf %46, %47 : vector<8x128xf32>
    %49 = vector.broadcast %28 : vector<1x128xf32> to vector<8x128xf32>
    %50 = arith.addf %48, %49 : vector<8x128xf32>
    %51 = arith.truncf %50 : vector<8x128xf32> to vector<8x128xbf16>
    %cst_20 = arith.constant 0.000000e+00 : f32
    %52 = vector.broadcast %cst_20 : f32 to vector<8x128xf32>
    %c0_21 = arith.constant 0 : index
    %c0_22 = arith.constant 0 : index
    %53 = vector.load %arg7[%c0_21, %c0_22] : memref<128x3072xbf16, #tpu.memory_space<vmem>>, vector<128x1024xbf16>
    %cst_23 = arith.constant dense<0.000000e+00> : vector<8x1024xf32>
    %54 = tpu.matmul %51, %53, %cst_23 {dimension_numbers = #tpu.dot_dimension_numbers<[1], [0], [0], [1], [0, 0, 1, 1], [], []>} : vector<8x128xbf16>, vector<128x1024xbf16>, vector<8x1024xf32> -> vector<8x1024xf32>
    %c0_24 = arith.constant 0 : index
    %c0_25 = arith.constant 0 : index
    %55 = vector.load %arg8[%c0_24, %c0_25] : memref<1x3072xf32, #tpu.memory_space<vmem>>, vector<1x1024xf32>
    %56 = vector.broadcast %55 : vector<1x1024xf32> to vector<8x1024xf32>
    %57 = arith.addf %54, %56 : vector<8x1024xf32>
    %cst_26 = arith.constant 0.000000e+00 : f32
    %58 = vector.broadcast %cst_26 : f32 to vector<8x1024xf32>
    %59 = arith.cmpf oge, %57, %58 : vector<8x1024xf32>
    %cst_27 = arith.constant 0.00999999977 : f32
    %60 = vector.broadcast %cst_27 : f32 to vector<8x1024xf32>
    %61 = arith.mulf %60, %57 : vector<8x1024xf32>
    %62 = arith.select %59, %57, %61 : vector<8x1024xi1>, vector<8x1024xf32>
    %63 = arith.truncf %62 : vector<8x1024xf32> to vector<8x1024xbf16>
    %c0_28 = arith.constant 0 : index
    %c0_29 = arith.constant 0 : index
    %64 = vector.load %arg9[%c0_28, %c0_29] : memref<3072x128xbf16, #tpu.memory_space<vmem>>, vector<1024x128xbf16>
    %cst_30 = arith.constant dense<0.000000e+00> : vector<8x128xf32>
    %65 = tpu.matmul %63, %64, %cst_30 {dimension_numbers = #tpu.dot_dimension_numbers<[1], [0], [0], [1], [0, 0, 1, 1], [], []>} : vector<8x1024xbf16>, vector<1024x128xbf16>, vector<8x128xf32> -> vector<8x128xf32>
    %66 = arith.addf %52, %65 : vector<8x128xf32>
    %c0_31 = arith.constant 0 : index
    %c1024 = arith.constant 1024 : index
    %67 = vector.load %arg7[%c0_31, %c1024] : memref<128x3072xbf16, #tpu.memory_space<vmem>>, vector<128x1024xbf16>
    %cst_32 = arith.constant dense<0.000000e+00> : vector<8x1024xf32>
    %68 = tpu.matmul %51, %67, %cst_32 {dimension_numbers = #tpu.dot_dimension_numbers<[1], [0], [0], [1], [0, 0, 1, 1], [], []>} : vector<8x128xbf16>, vector<128x1024xbf16>, vector<8x1024xf32> -> vector<8x1024xf32>
    %c0_33 = arith.constant 0 : index
    %c1024_34 = arith.constant 1024 : index
    %69 = vector.load %arg8[%c0_33, %c1024_34] : memref<1x3072xf32, #tpu.memory_space<vmem>>, vector<1x1024xf32>
    %70 = vector.broadcast %69 : vector<1x1024xf32> to vector<8x1024xf32>
    %71 = arith.addf %68, %70 : vector<8x1024xf32>
    %cst_35 = arith.constant 0.000000e+00 : f32
    %72 = vector.broadcast %cst_35 : f32 to vector<8x1024xf32>
    %73 = arith.cmpf oge, %71, %72 : vector<8x1024xf32>
    %cst_36 = arith.constant 0.00999999977 : f32
    %74 = vector.broadcast %cst_36 : f32 to vector<8x1024xf32>
    %75 = arith.mulf %74, %71 : vector<8x1024xf32>
    %76 = arith.select %73, %71, %75 : vector<8x1024xi1>, vector<8x1024xf32>
    %77 = arith.truncf %76 : vector<8x1024xf32> to vector<8x1024xbf16>
    %c1024_37 = arith.constant 1024 : index
    %c0_38 = arith.constant 0 : index
    %78 = vector.load %arg9[%c1024_37, %c0_38] : memref<3072x128xbf16, #tpu.memory_space<vmem>>, vector<1024x128xbf16>
    %cst_39 = arith.constant dense<0.000000e+00> : vector<8x128xf32>
    %79 = tpu.matmul %77, %78, %cst_39 {dimension_numbers = #tpu.dot_dimension_numbers<[1], [0], [0], [1], [0, 0, 1, 1], [], []>} : vector<8x1024xbf16>, vector<1024x128xbf16>, vector<8x128xf32> -> vector<8x128xf32>
    %80 = arith.addf %66, %79 : vector<8x128xf32>
    %c0_40 = arith.constant 0 : index
    %c2048 = arith.constant 2048 : index
    %81 = vector.load %arg7[%c0_40, %c2048] : memref<128x3072xbf16, #tpu.memory_space<vmem>>, vector<128x1024xbf16>
    %cst_41 = arith.constant dense<0.000000e+00> : vector<8x1024xf32>
    %82 = tpu.matmul %51, %81, %cst_41 {dimension_numbers = #tpu.dot_dimension_numbers<[1], [0], [0], [1], [0, 0, 1, 1], [], []>} : vector<8x128xbf16>, vector<128x1024xbf16>, vector<8x1024xf32> -> vector<8x1024xf32>
    %c0_42 = arith.constant 0 : index
    %c2048_43 = arith.constant 2048 : index
    %83 = vector.load %arg8[%c0_42, %c2048_43] : memref<1x3072xf32, #tpu.memory_space<vmem>>, vector<1x1024xf32>
    %84 = vector.broadcast %83 : vector<1x1024xf32> to vector<8x1024xf32>
    %85 = arith.addf %82, %84 : vector<8x1024xf32>
    %cst_44 = arith.constant 0.000000e+00 : f32
    %86 = vector.broadcast %cst_44 : f32 to vector<8x1024xf32>
    %87 = arith.cmpf oge, %85, %86 : vector<8x1024xf32>
    %cst_45 = arith.constant 0.00999999977 : f32
    %88 = vector.broadcast %cst_45 : f32 to vector<8x1024xf32>
    %89 = arith.mulf %88, %85 : vector<8x1024xf32>
    %90 = arith.select %87, %85, %89 : vector<8x1024xi1>, vector<8x1024xf32>
    %91 = arith.truncf %90 : vector<8x1024xf32> to vector<8x1024xbf16>
    %c2048_46 = arith.constant 2048 : index
    %c0_47 = arith.constant 0 : index
    %92 = vector.load %arg9[%c2048_46, %c0_47] : memref<3072x128xbf16, #tpu.memory_space<vmem>>, vector<1024x128xbf16>
    %cst_48 = arith.constant dense<0.000000e+00> : vector<8x128xf32>
    %93 = tpu.matmul %91, %92, %cst_48 {dimension_numbers = #tpu.dot_dimension_numbers<[1], [0], [0], [1], [0, 0, 1, 1], [], []>} : vector<8x1024xbf16>, vector<1024x128xbf16>, vector<8x128xf32> -> vector<8x128xf32>
    %94 = arith.addf %80, %93 : vector<8x128xf32>
    %c0_49 = arith.constant 0 : index
    %c0_50 = arith.constant 0 : index
    %95 = vector.load %arg10[%c0_49, %c0_50] : memref<1x128xf32, #tpu.memory_space<vmem>>, vector<1x128xf32>
    %96 = vector.broadcast %95 : vector<1x128xf32> to vector<8x128xf32>
    %97 = arith.addf %94, %96 : vector<8x128xf32>
    %98 = arith.addf %97, %50 : vector<8x128xf32>
    %c0_51 = arith.constant 0 : index
    %c0_52 = arith.constant 0 : index
    %99 = vector.load %arg11[%c0_51, %c0_52] : memref<1x128xf32, #tpu.memory_space<vmem>>, vector<1x128xf32>
    %c0_53 = arith.constant 0 : index
    %c0_54 = arith.constant 0 : index
    %100 = vector.load %arg12[%c0_53, %c0_54] : memref<1x128xf32, #tpu.memory_space<vmem>>, vector<1x128xf32>
    %cst_55 = arith.constant dense<0.000000e+00> : vector<8xf32>
    %101 = vector.multi_reduction <add>, %98, %cst_55 [1] : vector<8x128xf32> to vector<8xf32>
    %102 = vector.shape_cast %101 : vector<8xf32> to vector<8x1xf32>
    %cst_56 = arith.constant 1.280000e+02 : f32
    %103 = vector.broadcast %cst_56 : f32 to vector<8x1xf32>
    %104 = arith.divf %102, %103 : vector<8x1xf32>
    %105 = vector.broadcast %104 : vector<8x1xf32> to vector<8x128xf32>
    %106 = arith.subf %98, %105 : vector<8x128xf32>
    %107 = arith.mulf %106, %106 : vector<8x128xf32>
    %cst_57 = arith.constant dense<0.000000e+00> : vector<8xf32>
    %108 = vector.multi_reduction <add>, %107, %cst_57 [1] : vector<8x128xf32> to vector<8xf32>
    %109 = vector.shape_cast %108 : vector<8xf32> to vector<8x1xf32>
    %cst_58 = arith.constant 1.280000e+02 : f32
    %110 = vector.broadcast %cst_58 : f32 to vector<8x1xf32>
    %111 = arith.divf %109, %110 : vector<8x1xf32>
    %cst_59 = arith.constant 9.99999974E-6 : f32
    %112 = vector.broadcast %cst_59 : f32 to vector<8x1xf32>
    %113 = arith.addf %111, %112 : vector<8x1xf32>
    %114 = math.rsqrt %113 : vector<8x1xf32>
    %115 = vector.broadcast %104 : vector<8x1xf32> to vector<8x128xf32>
    %116 = arith.subf %98, %115 : vector<8x128xf32>
    %117 = vector.broadcast %114 : vector<8x1xf32> to vector<8x128xf32>
    %118 = arith.mulf %116, %117 : vector<8x128xf32>
    %119 = vector.broadcast %99 : vector<1x128xf32> to vector<8x128xf32>
    %120 = arith.mulf %118, %119 : vector<8x128xf32>
    %121 = vector.broadcast %100 : vector<1x128xf32> to vector<8x128xf32>
    %122 = arith.addf %120, %121 : vector<8x128xf32>
    %c0_60 = arith.constant 0 : index
    %c0_61 = arith.constant 0 : index
    %c0_62 = arith.constant 0 : index
    %123 = vector.load %arg13[%c0_60, %c0_61, %c0_62] : memref<1x8x128xf32, #tpu.memory_space<vmem>>, vector<1x8x128xf32>
    %124 = vector.shape_cast %123 : vector<1x8x128xf32> to vector<8x128xf32>
    %125 = vector.shape_cast %122 : vector<8x128xf32> to vector<1x8x128xf32>
    tpu.vector_store %arg13[%c0_60, %c0_61, %c0_62], %125 {strides = array<i32>} : memref<1x8x128xf32, #tpu.memory_space<vmem>>, vector<1x8x128xf32>,
    return
  }
  func.func @transform_0(%arg0: i32, %arg1: i32) -> (i32, i32, i32) {
    %c0_i32 = arith.constant 0 : i32
    %c0_i32_0 = arith.constant 0 : i32
    return %arg0, %arg1, %c0_i32 : i32, i32, i32
  }
  func.func @transform_1(%arg0: i32, %arg1: i32) -> (i32, i32, i32) {
    %c0_i32 = arith.constant 0 : i32
    %c0_i32_0 = arith.constant 0 : i32
    %c0_i32_1 = arith.constant 0 : i32
    return %arg0, %c0_i32, %c0_i32_0 : i32, i32, i32
  }
  func.func @transform_2(%arg0: i32, %arg1: i32) -> (i32, i32) {
    %c0_i32 = arith.constant 0 : i32
    %c0_i32_0 = arith.constant 0 : i32
    %c0_i32_1 = arith.constant 0 : i32
    return %c0_i32, %c0_i32_0 : i32, i32
  }
  func.func @transform_3(%arg0: i32, %arg1: i32) -> (i32, i32) {
    %c0_i32 = arith.constant 0 : i32
    %c0_i32_0 = arith.constant 0 : i32
    %c0_i32_1 = arith.constant 0 : i32
    return %c0_i32, %c0_i32_0 : i32, i32
  }
  func.func @transform_4(%arg0: i32, %arg1: i32) -> (i32, i32) {
    %c0_i32 = arith.constant 0 : i32
    %c0_i32_0 = arith.constant 0 : i32
    %c0_i32_1 = arith.constant 0 : i32
    return %c0_i32, %c0_i32_0 : i32, i32
  }
  func.func @transform_5(%arg0: i32, %arg1: i32) -> (i32, i32) {
    %c0_i32 = arith.constant 0 : i32
    %c0_i32_0 = arith.constant 0 : i32
    %c0_i32_1 = arith.constant 0 : i32
    return %c0_i32, %c0_i32_0 : i32, i32
  }
  func.func @transform_6(%arg0: i32, %arg1: i32) -> (i32, i32) {
    %c0_i32 = arith.constant 0 : i32
    %c0_i32_0 = arith.constant 0 : i32
    %c0_i32_1 = arith.constant 0 : i32
    return %c0_i32, %c0_i32_0 : i32, i32
  }
  func.func @transform_7(%arg0: i32, %arg1: i32) -> (i32, i32) {
    %c0_i32 = arith.constant 0 : i32
    %c0_i32_0 = arith.constant 0 : i32
    %c0_i32_1 = arith.constant 0 : i32
    return %c0_i32, %c0_i32_0 : i32, i32
  }
  func.func @transform_8(%arg0: i32, %arg1: i32) -> (i32, i32) {
    %c0_i32 = arith.constant 0 : i32
    %c0_i32_0 = arith.constant 0 : i32
    %c0_i32_1 = arith.constant 0 : i32
    return %c0_i32, %c0_i32_0 : i32, i32
  }
  func.func @transform_9(%arg0: i32, %arg1: i32) -> (i32, i32) {
    %c0_i32 = arith.constant 0 : i32
    %c0_i32_0 = arith.constant 0 : i32
    %c0_i32_1 = arith.constant 0 : i32
    return %c0_i32, %c0_i32_0 : i32, i32
  }
  func.func @transform_10(%arg0: i32, %arg1: i32) -> (i32, i32) {
    %c0_i32 = arith.constant 0 : i32
    %c0_i32_0 = arith.constant 0 : i32
    %c0_i32_1 = arith.constant 0 : i32
    return %c0_i32, %c0_i32_0 : i32, i32
  }
  func.func @transform_11(%arg0: i32, %arg1: i32) -> (i32, i32, i32) {
    %c0_i32 = arith.constant 0 : i32
    %c0_i32_0 = arith.constant 0 : i32
    return %arg0, %arg1, %c0_i32 : i32, i32, i32
  }
}

</mosaic_0001>

<bundles_post_ra>
// kernel: tpu_custom_call.1
= control target key start
LH: loop header
LB: loop body
LE: loop exit
PB: predicated region body
PF: predicated region fallthrough
CT: control target
= control target key end

     0   :  { %s7339_s0 = inlined_call_operand.hbm [shape: bf16[2,8,128], index: 0, kind: input, shape index: {}]   ;;  %s7340_s1 = inlined_call_operand.hbm [shape: bf16[2,8,128], index: 1, kind: input, shape index: {}]   ;;  %s7341_s2 = inlined_call_operand.hbm [shape: bf16[128,384], index: 2, kind: input, shape index: {}]   ;;  %s7342_s3 = inlined_call_operand.vmem [shape: f32[1,128], index: 3, kind: input, shape index: {}]   ;;  %s7343_s4 = inlined_call_operand.vmem [shape: f32[1,128], index: 4, kind: input, shape index: {}]   ;;  %s7344_s5 = inlined_call_operand.hbm [shape: bf16[128,3072], index: 5, kind: input, shape index: {}]   ;;  %s7345_s6 = inlined_call_operand.hbm [shape: f32[1,3072], index: 6, kind: input, shape index: {}]   ;;  %s7346_s7 = inlined_call_operand.hbm [shape: bf16[3072,128], index: 7, kind: input, shape index: {}]   ;;  %s7347_s8 = inlined_call_operand.vmem [shape: f32[1,128], index: 8, kind: input, shape index: {}]   ;;  %s7348_s9 = inlined_call_operand.vmem [shape: f32[1,128], index: 9, kind: input, shape index: {}]   ;;  %s7349_s10 = inlined_call_operand.vmem [shape: f32[1,128], index: 10, kind: input, shape index: {}]   ;;  %s7350_s11 = inlined_call_operand.hbm [shape: f32[2,8,128], index: 11, kind: output, shape index: {}]  }
   0x1   :  { %7357 = sst [smem:[#allocation26_spill]] %s7341_s2 }
   0x2   :  { %7358 = sst [smem:[#allocation27_spill]] %s7344_s5 }
   0x3   :  { %7359 = sst [smem:[#allocation28_spill]] %s7345_s6 }
   0x4   :  { %7360 = sst [smem:[#allocation29_spill]] %s7346_s7 }
   0x5   :  { %7361 = sst [smem:[#allocation30_spill]] %s7349_s10 }
   0x6   :  { %7362 = sst [smem:[#allocation31_spill]] %s7350_s11 }
   0x7   :  { %16 = vsyncpa [#allocation3], 0 }
   0x8   :  { %18 = vsyncpa [#allocation3 + $0x1], 0 }
   0x9   :  { %19 = vsyncpa [#allocation6], 0 }
   0xa   :  { %21 = vsyncpa [#allocation6 + $0x1], 0 }
   0xb   :  { %22 = vsyncpa [#allocation9], 0 }
   0xc   :  { %23 = vsyncpa [#allocation12], 0 }
   0xd   :  { %24 = vsyncpa [#allocation4], 0 }
   0xe   :  { %26 = vsyncpa [#allocation4 + $0x1], 0  ;;  %s7018_s17 = smov 0   ;;  %s7020_s18 = smov 0  }
   0xf   :  { %s7022_s19 = smov 0   ;;  %s7024_s20 = smov 0  }
  0x10   :  { %s7026_s21 = smov 0   ;;  %s7028_s22 = smov 0  }
  0x11 LB: > { %7363 = sst [smem:[#allocation20_spill]] %s6925_s17  ;;  %s7049_s23 = sadd.s32 4294967295, %s6945_s22   ;;  %s6945_s22 = sphi %s7028_s22, %s32_s22   ;;  %s6941_s21 = sphi %s7026_s21, %s7386_s21   ;;  %s6937_s20 = sphi %s7024_s20, %s7385_s20   ;;  %s6933_s19 = sphi %s7022_s19, %s7384_s19   ;;  %s6929_s18 = sphi %s7020_s18, %s7388_s18   ;;  %s6925_s17 = sphi %s7018_s17, %s7387_s17  }
  0x12   : > { %7364 = sst [smem:[#allocation21_spill]] %s6933_s19  ;;  %p4474_p0 = scmp.ge.s32.totalorder %s6945_s22, 1 }
  0x13   : > { %7365 = sst [smem:[#allocation22_spill]] %s6941_s21  ;;  %p67_p1 = scmp.eq.s32.totalorder %s7049_s23, 0 }
  0x14   : > { %p320_p2 = scmp.lt.s32.totalorder %s6945_s22, 3  ;;  %s7366_s2 = sld [smem:[#allocation26_spill]] }
  0x15   : > { %s6947_s28 = smov [#allocation7]   ;;  %p4479_p6 = scmp.ge.s32.totalorder %s6945_s22, 2 }
  0x16   : > { %p7057_p3 = pnand %p4474_p0, %p320_p2  ;;  %s333_s29 = sshll.u32 %s6947_s28, 4  ;;  %s334_s29 = int_to_ptr.vmem [resolvable:$true] %s333_s29 }
  0x17   : > { %s7369_s5 = sld [smem:[#allocation27_spill]]  ;;  %s6948_s15 = smov 192  }
  0x18   : > { %p6559_p4 = pneg %p7057_p3  ;;  %s6949_s16 = smov 12  }
  0x19   : > { %s6950_s24 = smov [#allocation8]   ;;  %s6951_s28 = smov 1536  }
  0x1a   : > { %s331_s26 = sshll.u32 %s7366_s2, 4  ;;  %p7065_p5 = pnand %p6559_p4, %p67_p1  ;;  %s332_s26 = int_to_ptr.hbm [resolvable:$true] %s331_s26 }
  0x1b   : > { %s353_s25 = sshll.u32 %s6950_s24, 4  ;;  %s6952_s2 = smov 96   ;;  %s354_s25 = int_to_ptr.vmem [resolvable:$true] %s353_s25 }
  0x1c   : > { %6562 = dma.hbm_to_vmem [thread:$0]  (!%p7065_p5), %s332_s26, 3072, %s334_s29, [#allocation6], %s6948_s15, %s6948_s15, %s6949_s16  }
  0x1d   : > { %s351_s14 = sshll.u32 %s7369_s5, 4  ;;  %s7370_s6 = sld [smem:[#allocation28_spill]]  ;;  %s352_s14 = int_to_ptr.hbm [resolvable:$true] %s351_s14 }
  0x1e   : > { %6565 = dma.hbm_to_vmem [thread:$0]  (!%p7065_p5), %s352_s14, 24576, %s354_s25, [#allocation9], %s6951_s28, %s6951_s28, %s6952_s2  }
  0x1f   : > { %s6953_s13 = smov [#allocation10]   ;;  %s7371_s7 = sld [smem:[#allocation29_spill]] }
  0x20   : > { %s368_s26 = sshll.u32 %s6953_s13, 4  ;;  %s6954_s2 = smov [#allocation11]   ;;  %s369_s26 = int_to_ptr.vmem [resolvable:$true] %s368_s26 }
  0x21   : > { %s379_s10 = sshll.u32 %s6954_s2, 4  ;;  %s6955_s11 = smov 64   ;;  %s380_s10 = int_to_ptr.vmem [resolvable:$true] %s379_s10 }
  0x22   : > { %s6956_s14 = smov 4   ;;  %s4473_s24 = sadd.s32 4294967294, %s6945_s22  }
  0x23   : > { %s366_s12 = sshll.u32 %s7370_s6, 4  ;;  %s44_s25 = sadd.s32 1, %s6941_s21  ;;  %s367_s12 = int_to_ptr.hbm [resolvable:$true] %s366_s12 }
  0x24   : > { %6568 = dma.hbm_to_vmem [thread:$0]  (!%p7065_p5), %s367_s12, 384, %s369_s26, [#allocation9]  }
  0x25   : > { %s377_s16 = sshll.u32 %s7371_s7, 4  ;;  %p46_p7 = scmp.ge.s32.totalorder %s44_s25, 2  ;;  %s378_s16 = int_to_ptr.hbm [resolvable:$true] %s377_s16 }
  0x26   : > { %6571 = dma.hbm_to_vmem [thread:$0]  (!%p7065_p5), %s378_s16, 24576, %s380_s10, [#allocation12], %s6955_s11, %s6955_s11, %s6956_s14  }
  0x27   : > { %s53_s28 = sadd.s32 1, %s6933_s19  ;;  %p60_p8 = scmp.ne.s32.totalorder %s6933_s19, %s6929_s18 }
  0x28   : > { %p61_p9 = scmp.eq.s32.totalorder %s6945_s22, 0  ;;  %s7390_s25 = smov (%p46_p7, %s44_s25), 0 }
  0x29   : > { %7372 = sst [smem:[#allocation23_spill]] %s7390_s25  ;;  %p66_p11 = scmp.ne.s32.totalorder %s6929_s18, %s6925_s17 }
  0x2a   : > { %p7095_p10 = por %p61_p9, %p60_p8  ;;  %s48_s30 = ssub.s32 %s6941_s21, %s7390_s25 }
  0x2b   : > { %p307_p12 = scmp.eq.s32.totalorder %s7049_s23, 1  ;;  %p51_p13 = scmp.eq.s32.totalorder %s48_s30, 0 }
  0x2c   : > { %p7106_p0 = por %p67_p1, %p66_p11  ;;  %p313_p4 = scmp.eq.s32.totalorder %s4473_s24, 1 }
  0x2d   : > { %p7110_p2 = por %p307_p12, %p60_p8  ;;  %p6587_p7 = scmp.lt.s32.totalorder %s6945_s22, 2 }
  0x2e   : > { %s7115_s29 = scalar_select %p51_p13, %s6933_s19, %s53_s28  }
  0x2f   : > { %p7117_p5 = por %p313_p4, %p66_p11  ;;  %s402_s16 = sand.u32 1, %s6933_s19  }
  0x30   : > { %7376 = sst [smem:[#allocation24_spill]] %s7115_s29  ;;  %s4481_s2 = sshll.u32 %s6941_s21, 2 }
  0x31   : > { %s7377_s15 = scalar_select %p7117_p5, 1, 0 }
  0x32   : > { %s4480_s10 = sshll.u32 %s402_s16, 2  ;;  %s411_s30 = scalar_lea.hbm %s7339_s0, %s4481_s2 }
  0x33   : > { %7378 = sst [smem:[#allocation25_spill]] %s7377_s15  ;;  %s413_s5 = sshll.u32 %s411_s30, 4  ;;  %s414_s5 = int_to_ptr.hbm [resolvable:$true] %s413_s5 }
  0x34   : > { %s406_s6 = scalar_lea.vmem [#allocation2], %s4480_s10  ;;  %p6573_p8 = pnand %p6587_p7, %p7095_p10 }
  0x35   : > { %s415_s7 = sshll.u32 %s406_s6, 4  ;;  %s430_s25 = scalar_lea.hbm %s7340_s1, %s4481_s2  ;;  %s416_s7 = int_to_ptr.vmem [resolvable:$true] %s415_s7 }
  0x36   : > { %s422_s29 = sand.u32 1, %s6945_s22   ;;  %s403_s15 = scalar_lea.sflag [#allocation3], %s402_s16 }
  0x37   : > { %6575 = dma.hbm_to_vmem [thread:$0]  (!%p6573_p8), %s414_s5, 64, %s416_s7, %s403_s15  }
  0x38   : > { %s432_s21 = sshll.u32 %s430_s25, 4  ;;  %s426_s19 = scalar_lea.vmem [#allocation5], %s4480_s10  ;;  %s433_s21 = int_to_ptr.hbm [resolvable:$true] %s432_s21 }
  0x39   : > { %s434_s17 = sshll.u32 %s426_s19, 4  ;;  %s423_s11 = scalar_lea.sflag [#allocation6], %s422_s29  ;;  %s435_s17 = int_to_ptr.vmem [resolvable:$true] %s434_s17 }
  0x3a   : > { %6578 = dma.hbm_to_vmem [thread:$0]  (!%p6573_p8), %s433_s21, 64, %s435_s17, %s423_s11  }
  0x3b   : > { %443 = sbr.rel (%p7057_p3) target bundleno = 1888 (0x760), region = 64  ;;  %s7136_s6 = sand.u32 (!%p7057_p3), 1, %s6929_s18  }
  0x3c   : > { %s4485_s12 = sshll.u32 (!%p7057_p3), %s7136_s6, 2  ;;  %s446_s2 = scalar_lea.sflag (!%p7057_p3), [#allocation3], %s7136_s6 }
  0x3d   : > { %s7140_s16 = scalar_lea.vmem (!%p7057_p3), [#allocation2], %s4485_s12 }
  0x40   : > { %6900 = dma.done.wait (%p7106_p0), %s446_s2, 64  }
  0x41   : > { %6902 = vsyncadd (%p7106_p0), %s446_s2, 4294967232  ;;  %s455_s5 = sand.u32 1, %s7049_s23   ;;  %s7147_s17 = scalar_lea.vmem [#allocation5], %s4485_s12 }
  0x42   : > { %s456_s7 = scalar_lea.sflag [#allocation6], %s455_s5 }
  0x43   : > { %6904 = dma.done.wait (%p7106_p0), %s456_s7, 64  }
  0x44   : > { %6906 = vsyncadd (%p7106_p0), %s456_s7, 4294967232 }
  0x45   : > { %6908 = dma.done.wait (%p67_p1), [#allocation6], 3072  }
  0x46   : > { %6910 = vsyncadd (%p67_p1), [#allocation6], 4294964224 }
  0x47   : > { %6912 = dma.done.wait (%p67_p1), [#allocation9], 24960  }
  0x48   : > { %6914 = vsyncadd (%p67_p1), [#allocation9], 4294942336 }
  0x49   : > { %6916 = dma.done.wait (%p67_p1), [#allocation12], 24576  }
  0x4a   : > { %6918 = vsyncadd (%p67_p1), [#allocation12], 4294942720  ;;  %v4578_v0 = vld [vmem:[#allocation7 + $0xa8] sm:$0xf]  ;;  %v6151_v1 = vld [vmem:[#allocation7 + $0xb0] sm:$0xf0] }
  0x4b   : > { %v6150_v2 = vld [vmem:[#allocation7 + $0xac] sm:$0xf]  ;;  %v4579_v3 = vor.u32 %v6151_v1, %v4578_v0  ;;  %v4580_v4 = vld [vmem:[#allocation7 + $0xb4] sm:$0xf0]  ;;  %v4566_v5 = vld [vmem:[#allocation7 + $0x90] sm:$0xf] }
  0x4c   : > { %v6148_v6 = vld [vmem:[#allocation7 + $0x98] sm:$0xf0]  ;;  %v4583_v7 = vor.u32 %v6150_v2, %v4580_v4  ;;  %v6147_v8 = vld [vmem:[#allocation7 + $0x94] sm:$0xf]  ;;  %v4568_v9 = vld [vmem:[#allocation7 + $0x9c] sm:$0xf0] }
  0x4d   : > { %687 = vmatpush.bf16.msra.mxu0 %v4579_v3  ;;  %v4567_v10 = vor.u32 %v6148_v6, %v4566_v5  ;;  %v4571_v11 = vor.u32 %v6147_v8, %v4568_v9  ;;  %v4554_v12 = vld [vmem:[#allocation7 + $0x78] sm:$0xf]  ;;  %v6145_v13 = vld [vmem:[#allocation7 + $0x80] sm:$0xf0]  ;;  %v6144_v14 = vld [vmem:[#allocation7 + $0x7c] sm:$0xf] }
  0x4e   : > { %700 = vmatpush.bf16.msra.mxu1 %v4583_v7  ;;  %v4556_v15 = vld [vmem:[#allocation7 + $0x84] sm:$0xf0]  ;;  %v4555_v16 = vor.u32 %v6145_v13, %v4554_v12  ;;  %v4542_v18 = vld [vmem:[#allocation7 + $0x60] sm:$0xf]  ;;  %v6142_v19 = vld [vmem:[#allocation7 + $0x68] sm:$0xf0] }
  0x4f   : > { %v4559_v17 = vor.u32 %v6144_v14, %v4556_v15  ;;  %v6141_v20 = vld [vmem:[#allocation7 + $0x64] sm:$0xf]  ;;  %v4544_v21 = vld [vmem:[#allocation7 + $0x6c] sm:$0xf0]  ;;  %v4530_v22 = vld [vmem:[#allocation7 + $0x48] sm:$0xf]  ;;  %v4543_v23 = vor.u32 %v6142_v19, %v4542_v18 }
  0x50   : > { %v4547_v24 = vor.u32 %v6141_v20, %v4544_v21  ;;  %v6139_v25 = vld [vmem:[#allocation7 + $0x50] sm:$0xf0]  ;;  %v6138_v26 = vld [vmem:[#allocation7 + $0x4c] sm:$0xf]  ;;  %v4532_v27 = vld [vmem:[#allocation7 + $0x54] sm:$0xf0] }
  0x51   : > { %688 = vmatpush.bf16.msra.mxu0 %v4567_v10  ;;  %v4531_v28 = vor.u32 %v6139_v25, %v4530_v22  ;;  %v4535_v29 = vor.u32 %v6138_v26, %v4532_v27  ;;  %v4518_v30 = vld [vmem:[#allocation7 + $0x30] sm:$0xf]  ;;  %v6136_v31 = vld [vmem:[#allocation7 + $0x38] sm:$0xf0]  ;;  %v6135_v32 = vld [vmem:[#allocation7 + $0x34] sm:$0xf] }
  0x52   : > { %701 = vmatpush.bf16.msra.mxu1 %v4571_v11  ;;  %v4520_v33 = vld [vmem:[#allocation7 + $0x3c] sm:$0xf0]  ;;  %v4519_v34 = vor.u32 %v6136_v31, %v4518_v30  ;;  %v4506_v36 = vld [vmem:[#allocation7 + $0x18] sm:$0xf]  ;;  %v6133_v37 = vld [vmem:[#allocation7 + $0x20] sm:$0xf0] }
  0x53   : > { %v4523_v35 = vor.u32 %v6135_v32, %v4520_v33  ;;  %v6132_v38 = vld [vmem:[#allocation7 + $0x1c] sm:$0xf]  ;;  %v4508_v39 = vld [vmem:[#allocation7 + $0x24] sm:$0xf0]  ;;  %v4507_v40 = vor.u32 %v6133_v37, %v4506_v36  ;;  %v4494_v42 = vld [vmem:[#allocation7] sm:$0xf] }
  0x54   : > { %v4511_v41 = vor.u32 %v6132_v38, %v4508_v39  ;;  %v6130_v43 = vld [vmem:[#allocation7 + $0x8] sm:$0xf0]  ;;  %v6129_v44 = vld [vmem:[#allocation7 + $0x4] sm:$0xf]  ;;  %v4496_v45 = vld [vmem:[#allocation7 + $0xc] sm:$0xf0] }
  0x55   : > { %689 = vmatpush.bf16.msra.mxu0 %v4555_v16  ;;  %v4495_v46 = vor.u32 %v6130_v43, %v4494_v42  ;;  %v4499_v47 = vor.u32 %v6129_v44, %v4496_v45  ;;  %v526_v48 = vld [vmem:[%s7147_s17] sm:$0xf]  ;;  %v4586_v55 = vld [vmem:[#allocation7 + $0xb0] sm:$0xf]  ;;  %v6149_v59 = vld [vmem:[#allocation7 + $0xa0] sm:$0xf0] }
  0x56   : > { %702 = vmatpush.bf16.msra.mxu1 %v4559_v17  ;;  %v6152_v56 = vld [vmem:[#allocation7 + $0xb8] sm:$0xf0]  ;;  %v4574_v57 = vld [vmem:[#allocation7 + $0x98] sm:$0xf]  ;;  %v4562_v61 = vld [vmem:[#allocation7 + $0x80] sm:$0xf] }
  0x57   : > { %v4587_v58 = vor.u32 %v6152_v56, %v4586_v55  ;;  %v4575_v60 = vor.u32 %v6149_v59, %v4574_v57  ;;  %v6146_v62 = vld [vmem:[#allocation7 + $0x88] sm:$0xf0]  ;;  %v4550_v0 = vld [vmem:[#allocation7 + $0x68] sm:$0xf]  ;;  %v6143_v1 = vld [vmem:[#allocation7 + $0x70] sm:$0xf0] }
  0x58   : > { %v4563_v63 = vor.u32 %v6146_v62, %v4562_v61  ;;  %v4551_v2 = vor.u32 %v6143_v1, %v4550_v0  ;;  %v4538_v3 = vld [vmem:[#allocation7 + $0x50] sm:$0xf]  ;;  %v6140_v4 = vld [vmem:[#allocation7 + $0x58] sm:$0xf0]  ;;  %v4526_v6 = vld [vmem:[#allocation7 + $0x38] sm:$0xf] }
  0x59   : > { %690 = vmatpush.bf16.msra.mxu0 %v4543_v23  ;;  %713 = vmatpush.bf16.msra.mxu2 %v4587_v58  ;;  %v4539_v5 = vor.u32 %v6140_v4, %v4538_v3  ;;  %v6137_v7 = vld [vmem:[#allocation7 + $0x40] sm:$0xf0]  ;;  %v4514_v9 = vld [vmem:[#allocation7 + $0x20] sm:$0xf]  ;;  %v6134_v10 = vld [vmem:[#allocation7 + $0x28] sm:$0xf0] }
  0x5a   : > { %703 = vmatpush.bf16.msra.mxu1 %v4547_v24  ;;  %v4527_v8 = vor.u32 %v6137_v7, %v4526_v6  ;;  %vm741_vm0 = vcmask 64512   ;;  %v4515_v11 = vor.u32 %v6134_v10, %v4514_v9  ;;  %v4502_v13 = vld [vmem:[#allocation7 + $0x8] sm:$0xf]  ;;  %v6131_v14 = vld [vmem:[#allocation7 + $0x10] sm:$0xf0]  ;;  %vm759_vm1 = vcmask 1043456  }
  0x5b   : > { %v4503_v16 = vor.u32 %v6131_v14, %v4502_v13  ;;  %v525_v31 = vld [vmem:[%s7140_s16] sm:$0xf]  ;;  %v6957_v36 = vmov 128.0   ;;  %v4815_v39 = vld [vmem:[#allocation8 + $0x540] sm:$0xf]  ;;  %s4491_s29 = sshll.u32 %s7136_s6, 3 }
  0x5c   : > { %v755_v32 = vunpack.c.l.bf16 %v525_v31  ;;  %v4817_v43 = vld [vmem:[#allocation8 + $0x5a0] sm:$0xf0]  ;;  %v4823_v44 = vld [vmem:[#allocation8 + $0x548] sm:$0xf]  ;;  %v6202_v59 = vld [vmem:[#allocation8 + $0x48c] sm:$0xf] }
  0x5d   : > { %691 = vmatpush.bf16.msra.mxu0 %v4531_v28  ;;  %714 = vmatpush.bf16.msra.mxu2 %v4575_v60  ;;  %v6214_v45 = vld [vmem:[#allocation8 + $0x5a4] sm:$0xf0]  ;;  %v4793_v61 = vld [vmem:[#allocation8 + $0x4e8] sm:$0xf0]  ;;  %v4751_v62 = vld [vmem:[#allocation8 + $0x3c0] sm:$0xf] }
  0x5e   : > { %704 = vmatpush.bf16.msra.mxu1 %v4535_v29  ;;  %v4791_v57 = vld [vmem:[#allocation8 + $0x488] sm:$0xf]  ;;  %v4796_v0 = vor.u32 %v6202_v59, %v4793_v61  ;;  %v6193_v1 = vld [vmem:[#allocation8 + $0x3c4] sm:$0xf]  ;;  %v6194_v6 = vld [vmem:[#allocation8 + $0x3cc] sm:$0xf] }
  0x5f   : > { %v6206_v58 = vld [vmem:[#allocation8 + $0x4e4] sm:$0xf0]  ;;  %v4761_v7 = vld [vmem:[#allocation8 + $0x428] sm:$0xf0]  ;;  %v4719_v10 = vld [vmem:[#allocation8 + $0x300] sm:$0xf] }
  0x60   : > { %v4792_v60 = vor.u32 %v6206_v58, %v4791_v57  ;;  %v4759_v3 = vld [vmem:[#allocation8 + $0x3c8] sm:$0xf]  ;;  %v4764_v13 = vor.u32 %v6194_v6, %v4761_v7  ;;  %v4721_v14 = vld [vmem:[#allocation8 + $0x360] sm:$0xf0]  ;;  %v4697_v31 = vld [vmem:[#allocation8 + $0x2a8] sm:$0xf0] }
  0x61   : > { %692 = vmatpush.bf16.msra.mxu0 %v4519_v34  ;;  %715 = vmatpush.bf16.msra.mxu2 %v4563_v63  ;;  %v6197_v63 = vld [vmem:[#allocation8 + $0x41c] sm:$0xf0]  ;;  %v6166_v57 = vld [vmem:[#allocation8 + $0x124] sm:$0xf0]  ;;  %v6162_v58 = vld [vmem:[#allocation8 + $0xcc] sm:$0xf] }
  0x62   : > { %705 = vmatpush.bf16.msra.mxu1 %v4523_v35  ;;  %v4752_v4 = vor.u32 %v6197_v63, %v4751_v62  ;;  %v4633_v59 = vld [vmem:[#allocation8 + $0x128] sm:$0xf0]  ;;  %v6153_v6 = vld [vmem:[#allocation8 + $0x4] sm:$0xf]  ;;  %s6126_s15 = sshll.u32 %s6937_s20, 3  ;;  %s7379_s28 = sld [smem:[#allocation31_spill]] }
  0x63   : > { %s7380_s16 = sld [smem:[#allocation30_spill]]  ;;  %s523_s20 = scalar_lea.vmem [#allocation13], %s4491_s29 }
  0x64   : > { %s4328_s5 = sshll.u32 %s523_s20, 4  ;;  %s4315_s17 = scalar_lea.sflag [#allocation4], %s7136_s6  ;;  %s4329_s5 = int_to_ptr.vmem [resolvable:$true] %s4328_s5 }
  0x65   : > { %693 = vmatpush.bf16.msra.mxu0 %v4507_v40  ;;  %716 = vmatpush.bf16.msra.mxu2 %v4551_v2  ;;  %v6213_v40 = vld [vmem:[#allocation8 + $0x59c] sm:$0xf0]  ;;  %v4753_v2 = vld [vmem:[#allocation8 + $0x420] sm:$0xf0] }
  0x66   : > { %706 = vmatpush.bf16.msra.mxu1 %v4511_v41  ;;  %v6209_v41 = vld [vmem:[#allocation8 + $0x544] sm:$0xf]  ;;  %v4816_v42 = vor.u32 %v6213_v40, %v4815_v39  ;;  %v6173_v39 = vld [vmem:[#allocation8 + $0x1dc] sm:$0xf0] }
  0x67   : > { %v6169_v40 = vld [vmem:[#allocation8 + $0x184] sm:$0xf] }
  0x68   : > { %s4326_s11 = scalar_lea.hbm %s7379_s28, %s6126_s15  ;;  %s6867_s25 = scalar_lea.hbm %s7379_s28, 16 }
  0x69   : > { %694 = vmatpush.bf16.msra.mxu0 %v4495_v46  ;;  %717 = vmatpush.bf16.msra.mxu2 %v4539_v5  ;;  %v4820_v46 = vor.u32 %v6209_v41, %v4817_v43  ;;  %v6198_v5 = vld [vmem:[#allocation8 + $0x424] sm:$0xf0]  ;;  %s4330_s7 = sshll.u32 %s4326_s11, 4  ;;  %s4331_s7 = int_to_ptr.hbm [resolvable:$true] %s4330_s7 }
  0x6a   : > { %707 = vmatpush.bf16.msra.mxu1 %v4499_v47  ;;  %v4824_v47 = vor.u32 %v6214_v45, %v4823_v44  ;;  %v4760_v9 = vor.u32 %v6198_v5, %v4759_v3  ;;  %v4663_v43 = vld [vmem:[#allocation8 + $0x188] sm:$0xf]  ;;  %v6170_v45 = vld [vmem:[#allocation8 + $0x18c] sm:$0xf]  ;;  %v6157_v5 = vld [vmem:[#allocation8 + $0x5c] sm:$0xf0] }
  0x6b   : > { %v6174_v44 = vld [vmem:[#allocation8 + $0x1e4] sm:$0xf0]  ;;  %s6861_s19 = sshra.s32 %s4331_s7, 4  ;;  %s6862_s19 = int_to_ptr.hbm [resolvable:$true] %s6861_s19 }
  0x6c   : > { %695 = vmatmul.bf16.vlgmr.msra.gmra.mxu0 %v526_v48  ;;  %s6863_s21 = scalar_lea.hbm %s6862_s19, 8  ;;  %p6868_p10 = scmp.lt.s32.totalorder %s6862_s19, %s7379_s28 }
  0x6d   : > { %708 = vmatmul.bf16.vlgmr.msra.gmra.mxu1 %v526_v48  ;;  %718 = vmatpush.bf16.msra.mxu2 %v4527_v8  ;;  %v4756_v8 = vor.u32 %v6193_v1, %v4753_v2  ;;  %v4636_v1 = vor.u32 %v6162_v58, %v4633_v59  ;;  %v4743_v58 = vld [vmem:[#allocation8 + $0x318] sm:$0xf]  ;;  %p6864_p1 = scmp.ne.s32.totalorder %s6862_s19, %s6863_s21  ;;  %p6869_p11 = scmp.lt.s32.totalorder %s6867_s25, %s6863_s21 }
  0x6e   : > { %1229 = vmatpush.bf16.msrb.mxu0 %v4820_v46  ;;  %1242 = vmatpush.bf16.msrb.mxu1 %v4824_v47  ;;  %v4665_v46 = vld [vmem:[#allocation8 + $0x1e8] sm:$0xf0]  ;;  %v6192_v59 = vld [vmem:[#allocation8 + $0x374] sm:$0xf0] }
  0x6f   : > { %p6865_p3 = pnand %p6864_p1, %p7110_p2  ;;  %p6870_p12 = por %p6869_p11, %p6868_p10 }
  0x71   : > { %719 = vmatpush.bf16.msra.mxu2 %v4515_v11  ;;  %v6189_v11 = vld [vmem:[#allocation8 + $0x35c] sm:$0xf0]  ;;  %p6866_p9 = pneg %p6865_p3 }
  0x72   : > { %1243 = vmatpush.bf16.msrb.mxu1 %v4792_v60 }
  0x73   : > { %p6871_p13 = pnand %p6870_p12, %p6866_p9 }
  0x75   : > { %720 = vmatpush.bf16.msra.mxu2 %v4503_v16  ;;  %v6190_v16 = vld [vmem:[#allocation8 + $0x364] sm:$0xf0] }
  0x76   : > { %1244 = vmatpush.bf16.msrb.mxu1 %v4760_v9  ;;  %v4599_v9 = vld [vmem:[#allocation8 + $0x8] sm:$0xf] }
  0x78   : > { %721 = vmatmul.bf16.vlgmr.msra.gmra.mxu2 %v526_v48  ;;  %v6210_v48 = vld [vmem:[#allocation8 + $0x54c] sm:$0xf] }
  0xe9   : > { %v696_v49 = vpop.f32.mrf.mxu0 }
  0xea   : > { %v709_v50 = vpop.f32.mrf.mxu1  ;;  %v726_v52 = vpack.c.bf16 %v696_v49, %v696_v49  ;;  %v4825_v49 = vld [vmem:[#allocation8 + $0x5a8] sm:$0xf0] }
  0xeb   : > { %v727_v51 = vpack.c.bf16 %v709_v50, %v709_v50  ;;  %v4783_v50 = vld [vmem:[#allocation8 + $0x480] sm:$0xf] }
  0xed   : > { %735 = vmatpush.bf16.xpose.msra.mxu3 %v727_v51  ;;  %v4828_v51 = vor.u32 %v6210_v48, %v4825_v49 }
  0xef   : > { %1255 = vmatpush.bf16.msrb.mxu2 %v4828_v51  ;;  %v4623_v51 = vld [vmem:[#allocation8 + $0xc0] sm:$0xf] }
  0xf1   : > { %v698_v53 = vpop.f32.mrf.mxu0 }
  0xf2   : > { %v711_v54 = vpop.f32.mrf.mxu1  ;;  %v6201_v53 = vld [vmem:[#allocation8 + $0x484] sm:$0xf] }
  0xf3   : > { %v4785_v54 = vld [vmem:[#allocation8 + $0x4e0] sm:$0xf0]  ;;  %1256 = vmatpush.bf16.msrb.mxu2 %v4796_v0 }
  0xf4   : > { %736 = vmatmul.bf16.vlgmr.msra.gmra.mxu3 %v726_v52  ;;  %v6205_v52 = vld [vmem:[#allocation8 + $0x4dc] sm:$0xf0]  ;;  %v4788_v56 = vor.u32 %v6201_v53, %v4785_v54  ;;  %v6161_v53 = vld [vmem:[#allocation8 + $0xc4] sm:$0xf]  ;;  %v4668_v54 = vor.u32 %v6170_v45, %v4665_v46  ;;  %v4769_v45 = vld [vmem:[#allocation8 + $0x430] sm:$0xf0] }
  0xf5   : > { %v4784_v55 = vor.u32 %v6205_v52, %v4783_v50  ;;  %v4664_v50 = vor.u32 %v6174_v44, %v4663_v43  ;;  %v6165_v52 = vld [vmem:[#allocation8 + $0x11c] sm:$0xf0]  ;;  %v6195_v43 = vld [vmem:[#allocation8 + $0x3d4] sm:$0xf]  ;;  %v4775_v46 = vld [vmem:[#allocation8 + $0x3d8] sm:$0xf] }
  0xf6   : > { %1230 = vmatpush.bf16.msrb.mxu0 %v4788_v56  ;;  %v4631_v56 = vld [vmem:[#allocation8 + $0xc8] sm:$0xf]  ;;  %v4624_v61 = vor.u32 %v6165_v52, %v4623_v51  ;;  %v4777_v51 = vld [vmem:[#allocation8 + $0x438] sm:$0xf0] }
  0xf7   : > { %1257 = vmatpush.bf16.msrb.mxu2 %v4764_v13  ;;  %v4632_v63 = vor.u32 %v6166_v57, %v4631_v56  ;;  %v6154_v13 = vld [vmem:[#allocation8 + $0xc] sm:$0xf]  ;;  %v4737_v57 = vld [vmem:[#allocation8 + $0x370] sm:$0xf0] }
  0xfa   : > { %1231 = vmatpush.bf16.msrb.mxu0 %v4756_v8  ;;  %v4593_v8 = vld [vmem:[#allocation8 + $0x60] sm:$0xf0] }
  0xfb   : > { %v722_v23 = vpop.f32.mrf.mxu2 }
  0xfc   : > { %v754_v25 = vpack.c.bf16 %v722_v23, %v722_v23  ;;  %v4687_v23 = vld [vmem:[#allocation8 + $0x240] sm:$0xf] }
  0xfe   : > { %v761_v26 = vsel %vm759_vm1, %v754_v25, 0  ;;  %v6177_v25 = vld [vmem:[#allocation8 + $0x244] sm:$0xf] }
  0xff   : > { %770 = vmatpush.bf16.msrb.mxu3 %v761_v26 }
 0x103   : > { %v724_v24 = vpop.f32.mrf.mxu2  ;;  %1216 = vmatpush.bf16.msra.mxu3 %v4816_v42  ;;  %v4657_v42 = vld [vmem:[#allocation8 + $0x1e0] sm:$0xf0] }
 0x104   : > { %v6181_v24 = vld [vmem:[#allocation8 + $0x29c] sm:$0xf0]  ;;  %v4660_v49 = vor.u32 %v6169_v40, %v4657_v42  ;;  %v6199_v42 = vld [vmem:[#allocation8 + $0x42c] sm:$0xf0] }
 0x107   : > { %1217 = vmatpush.bf16.msra.mxu3 %v4784_v55  ;;  %v4625_v55 = vld [vmem:[#allocation8 + $0x120] sm:$0xf0] }
 0x108   : > { %v4628_v62 = vor.u32 %v6161_v53, %v4625_v55  ;;  %v4735_v53 = vld [vmem:[#allocation8 + $0x310] sm:$0xf]  ;;  %v6187_v55 = vld [vmem:[#allocation8 + $0x314] sm:$0xf] }
 0x10b   : > { %1218 = vmatpush.bf16.msra.mxu3 %v4752_v4  ;;  %v4591_v4 = vld [vmem:[#allocation8] sm:$0xf] }
 0x10c   : > { %v4592_v7 = vor.u32 %v6157_v5, %v4591_v4  ;;  %v6179_v4 = vld [vmem:[#allocation8 + $0x254] sm:$0xf] }
 0x177   : > { %v737_v12 = vpop.f32.mrf.mxu3 }
 0x178   : > { %v742_v15 = vsel %vm741_vm0, %v737_v12, -inf }
 0x179   : > { %743 = vmax.xlane.f32.xlu0 %v742_v15  ;;  %v4727_v15 = vld [vmem:[#allocation8 + $0x308] sm:$0xf] }
 0x17f   : > { %v739_v17 = vpop.f32.mrf.mxu3 }
 0x180   : > { %v6186_v17 = vld [vmem:[#allocation8 + $0x30c] sm:$0xf] }
 0x1ec   : > { %v744_v18 = vpop.xlane.xlu0 %743 }
 0x1ed   : > { %v745_v19 = vsub.f32 %v737_v12, %v744_v18  ;;  %v6185_v12 = vld [vmem:[#allocation8 + $0x304] sm:$0xf]  ;;  %v4729_v18 = vld [vmem:[#allocation8 + $0x368] sm:$0xf0] }
 0x1ee   : > { %v4732_v26 = vor.u32 %v6186_v17, %v4729_v18  ;;  %v6211_v17 = vld [vmem:[#allocation8 + $0x554] sm:$0xf] }
 0x1ef   : > { %v746_v20 = vmul.f32 1.442695, %v745_v19  ;;  %v4833_v18 = vld [vmem:[#allocation8 + $0x5b0] sm:$0xf0] }
 0x1f0   : > { %1258 = vmatpush.bf16.msrb.mxu2 %v4732_v26  ;;  %v4799_v26 = vld [vmem:[#allocation8 + $0x490] sm:$0xf] }
 0x1f1   : > { %6657 = vpow2.f32 %v746_v20  ;;  %v4720_v20 = vor.u32 %v6189_v11, %v4719_v10  ;;  %v6158_v10 = vld [vmem:[#allocation8 + $0x64] sm:$0xf0]  ;;  %v4596_v11 = vor.u32 %v6153_v6, %v4593_v8  ;;  %v4705_v6 = vld [vmem:[#allocation8 + $0x2b0] sm:$0xf0]  ;;  %v6184_v8 = vld [vmem:[#allocation8 + $0x2b4] sm:$0xf0] }
 0x1f3   : > { %1219 = vmatpush.bf16.msra.mxu3 %v4720_v20  ;;  %v4836_v20 = vor.u32 %v6211_v17, %v4833_v18  ;;  %v4673_v17 = vld [vmem:[#allocation8 + $0x1f0] sm:$0xf0]  ;;  %v4679_v18 = vld [vmem:[#allocation8 + $0x198] sm:$0xf] }
 0x1f7   : > { %v6658_v21 = vpop.eup %6657 }
 0x1f8   : > { %v748_v22 = vsel %vm741_vm0, %v6658_v21, 0.0 }
 0x1f9   : > { %749 = vadd.xlane.f32.xlu0 %v748_v22  ;;  %v4728_v22 = vor.u32 %v6190_v16, %v4727_v15  ;;  %v6215_v16 = vld [vmem:[#allocation8 + $0x5ac] sm:$0xf0] }
 0x1fb   : > { %1245 = vmatpush.bf16.msrb.mxu1 %v4728_v22  ;;  %v6216_v22 = vld [vmem:[#allocation8 + $0x5b4] sm:$0xf0] }
 0x26c   : > { %v750_v27 = vpop.xlane.xlu0 %749 }
 0x26d   : > { %6659 = vrcp.f32 %v750_v27  ;;  %v4689_v27 = vld [vmem:[#allocation8 + $0x2a0] sm:$0xf0] }
 0x26e   : > { %6661 = vrcp.f32 %v6957_v36 }
 0x273   : > { %v6660_v28 = vpop.eup %6659 }
 0x274   : > { %v752_v29 = vmul.f32 %v6660_v28, %v6658_v21  ;;  %v7173_v37 = vpop.eup %6661  ;;  %v4724_v21 = vor.u32 %v6185_v12, %v4721_v14  ;;  %v4695_v28 = vld [vmem:[#allocation8 + $0x248] sm:$0xf]  ;;  %v4600_v12 = vor.u32 %v6158_v10, %v4599_v9  ;;  %v4601_v14 = vld [vmem:[#allocation8 + $0x68] sm:$0xf0]  ;;  %v4708_v9 = vor.u32 %v6179_v4, %v4705_v6  ;;  %v6337_v4 = vld [vmem:[#allocation8 + $0x564] sm:$0xf] }
 0x275   : > { %v7176_v38 = vmul.f32 128.0, %v7173_v37  ;;  %vm785_vm2 = vweird.f32 %v7173_v37  ;;  %v4604_v15 = vor.u32 %v6154_v13, %v4601_v14  ;;  %v4671_v14 = vld [vmem:[#allocation8 + $0x190] sm:$0xf]  ;;  %v5079_v6 = vld [vmem:[#allocation8 + $0x568] sm:$0xf] }
 0x276   : > { %v753_v30 = vpack.c.bf16 %v752_v29, %v752_v29  ;;  %v6182_v29 = vld [vmem:[#allocation8 + $0x2a4] sm:$0xf0]  ;;  %1232 = vmatpush.bf16.msrb.mxu0 %v4724_v21  ;;  %v4839_v21 = vld [vmem:[#allocation8 + $0x558] sm:$0xf] }
 0x277   : > { %v782_v19 = vsub.f32 1.0, %v7176_v38  ;;  %v4696_v36 = vor.u32 %v6182_v29, %v4695_v28  ;;  %v4655_v38 = vld [vmem:[#allocation8 + $0x180] sm:$0xf] }
 0x278   : > { %4588 = vmatmul.msk.bf16.vlgmr.msrb.gmra.mxu3 %vm741_vm0, %v753_v30  ;;  %v6178_v30 = vld [vmem:[#allocation8 + $0x24c] sm:$0xf]  ;;  %v4656_v48 = vor.u32 %v6173_v39, %v4655_v38  ;;  %v4809_v38 = vld [vmem:[#allocation8 + $0x4f8] sm:$0xf0] }
 0x279   : > { %v4700_v41 = vor.u32 %v6178_v30, %v4697_v31  ;;  %1246 = vmatpush.bf16.msrb.mxu1 %v4696_v36  ;;  %v6203_v30 = vld [vmem:[#allocation8 + $0x494] sm:$0xf]  ;;  %v6204_v36 = vld [vmem:[#allocation8 + $0x49c] sm:$0xf] }
 0x27a   : > { %v4801_v31 = vld [vmem:[#allocation8 + $0x4f0] sm:$0xf0]  ;;  %v4812_v40 = vor.u32 %v6204_v36, %v4809_v38  ;;  %v4649_v36 = vld [vmem:[#allocation8 + $0x138] sm:$0xf0] }
 0x27b   : > { %1259 = vmatpush.bf16.msrb.mxu2 %v4700_v41  ;;  %v4767_v41 = vld [vmem:[#allocation8 + $0x3d0] sm:$0xf] }
 0x27c   : > { %v4768_v44 = vor.u32 %v6199_v42, %v4767_v41  ;;  %v6155_v41 = vld [vmem:[#allocation8 + $0x14] sm:$0xf] }
 0x27d   : > { %1247 = vmatpush.bf16.msrb.mxu1 %v4664_v50  ;;  %v6196_v50 = vld [vmem:[#allocation8 + $0x3dc] sm:$0xf] }
 0x27e   : > { %v4780_v52 = vor.u32 %v6196_v50, %v4777_v51 }
 0x27f   : > { %1260 = vmatpush.bf16.msrb.mxu2 %v4668_v54  ;;  %v6191_v54 = vld [vmem:[#allocation8 + $0x36c] sm:$0xf0] }
 0x280   : > { %v4736_v56 = vor.u32 %v6191_v54, %v4735_v53 }
 0x281   : > { %1248 = vmatpush.bf16.msrb.mxu1 %v4632_v63  ;;  %v6188_v63 = vld [vmem:[#allocation8 + $0x31c] sm:$0xf] }
 0x283   : > { %1261 = vmatpush.bf16.msrb.mxu2 %v4636_v1 }
 0x285   : > { %1249 = vmatpush.bf16.msrb.mxu1 %v4600_v12  ;;  %v4713_v12 = vld [vmem:[#allocation8 + $0x2b8] sm:$0xf0] }
 0x287   : > { %1262 = vmatpush.bf16.msrb.mxu2 %v4604_v15  ;;  %v6171_v15 = vld [vmem:[#allocation8 + $0x194] sm:$0xf] }
 0x2fb   : > { %v772_v33 = vpop.f32.mrf.mxu3 }
 0x2fc   : > { %v7170_v34 = vadd.f32 %v772_v33, %v755_v32  ;;  %v783_v32 = vmul.f32 %v7173_v37, %v782_v19  ;;  %v4688_v33 = vor.u32 %v6181_v24, %v4687_v23  ;;  %v6212_v23 = vld [vmem:[#allocation8 + $0x55c] sm:$0xf]  ;;  %v4840_v24 = vor.u32 %v6216_v22, %v4839_v21 }
 0x2fd   : > { %v6172_v22 = vld [vmem:[#allocation8 + $0x19c] sm:$0xf] }
 0x2fe   : > { %778 = vadd.xlane.f32.xlu1 %v7170_v34  ;;  %v784_v47 = vadd.f32 %v7173_v37, %v783_v32  ;;  %1220 = vmatpush.bf16.msra.mxu3 %v4688_v33  ;;  %v4807_v32 = vld [vmem:[#allocation8 + $0x498] sm:$0xf]  ;;  %v4804_v33 = vor.u32 %v6203_v30, %v4801_v31 }
 0x2ff   : > { %1294 = vmatpush.bf16.msra.mxu1 %v4840_v24  ;;  %v4647_v30 = vld [vmem:[#allocation8 + $0xd8] sm:$0xf] }
 0x300   : > { %v7183_v60 = vsel %vm785_vm2, %v7173_v37, %v784_v47  ;;  %v6200_v47 = vld [vmem:[#allocation8 + $0x434] sm:$0xf0] }
 0x301   : > { %v6168_v31 = vld [vmem:[#allocation8 + $0x134] sm:$0xf0] }
 0x302   : > { %1221 = vmatpush.bf16.msra.mxu3 %v4656_v48  ;;  %v4772_v48 = vor.u32 %v6195_v43, %v4769_v45  ;;  %v4609_v43 = vld [vmem:[#allocation8 + $0x70] sm:$0xf0]  ;;  %v6160_v45 = vld [vmem:[#allocation8 + $0x74] sm:$0xf0] }
 0x303   : > { %v774_v35 = vpop.f32.mrf.mxu3 }
 0x304   : > { %v4692_v35 = vor.u32 %v6177_v25, %v4689_v27  ;;  %v4841_v25 = vld [vmem:[#allocation8 + $0x5b8] sm:$0xf0]  ;;  %v6207_v27 = vld [vmem:[#allocation8 + $0x4ec] sm:$0xf0] }
 0x305   : > { %v4844_v28 = vor.u32 %v6212_v23, %v4841_v25  ;;  %v4800_v29 = vor.u32 %v6207_v27, %v4799_v26  ;;  %v4681_v23 = vld [vmem:[#allocation8 + $0x1f8] sm:$0xf0]  ;;  %v4639_v25 = vld [vmem:[#allocation8 + $0xd0] sm:$0xf]  ;;  %v6163_v27 = vld [vmem:[#allocation8 + $0xd4] sm:$0xf] }
 0x306   : > { %1233 = vmatpush.bf16.msrb.mxu0 %v4692_v35  ;;  %1222 = vmatpush.bf16.msra.mxu3 %v4624_v61  ;;  %v6208_v35 = vld [vmem:[#allocation8 + $0x4f4] sm:$0xf0]  ;;  %v4740_v61 = vor.u32 %v6187_v55, %v4737_v57  ;;  %v4684_v24 = vor.u32 %v6172_v22, %v4681_v23  ;;  %v6167_v26 = vld [vmem:[#allocation8 + $0x12c] sm:$0xf0] }
 0x307   : > { %1307 = vmatpush.bf16.msra.mxu2 %v4844_v28  ;;  %v4808_v39 = vor.u32 %v6208_v35, %v4807_v32  ;;  %v4640_v28 = vor.u32 %v6167_v26, %v4639_v25  ;;  %v6164_v35 = vld [vmem:[#allocation8 + $0xdc] sm:$0xf]  ;;  %v6325_v25 = vld [vmem:[#allocation8 + $0x43c] sm:$0xf0] }
 0x308   : > { %v4652_v38 = vor.u32 %v6164_v35, %v4649_v36 }
 0x309   : > { %1295 = vmatpush.bf16.msra.mxu1 %v4808_v39  ;;  %v4607_v39 = vld [vmem:[#allocation8 + $0x10] sm:$0xf] }
 0x30a   : > { %1234 = vmatpush.bf16.msrb.mxu0 %v4660_v49  ;;  %1223 = vmatpush.bf16.msra.mxu3 %v4592_v7  ;;  %v4776_v49 = vor.u32 %v6200_v47, %v4775_v46  ;;  %v4711_v7 = vld [vmem:[#allocation8 + $0x258] sm:$0xf]  ;;  %v4612_v46 = vor.u32 %v6155_v41, %v4609_v43  ;;  %v4977_v43 = vld [vmem:[#allocation8 + $0x380] sm:$0xf0] }
 0x30b   : > { %1308 = vmatpush.bf16.msra.mxu2 %v4812_v40  ;;  %v4712_v10 = vor.u32 %v6184_v8, %v4711_v7  ;;  %v6159_v40 = vld [vmem:[#allocation8 + $0x6c] sm:$0xf0]  ;;  %v6342_v8 = vld [vmem:[#allocation8 + $0x5c4] sm:$0xf0] }
 0x30c   : > { %v4608_v42 = vor.u32 %v6159_v40, %v4607_v39  ;;  %v6317_v39 = vld [vmem:[#allocation8 + $0x37c] sm:$0xf0] }
 0x30d   : > { %1296 = vmatpush.bf16.msra.mxu1 %v4776_v49  ;;  %v4617_v49 = vld [vmem:[#allocation8 + $0x78] sm:$0xf0] }
 0x30e   : > { %1235 = vmatpush.bf16.msrb.mxu0 %v4628_v62  ;;  %v4744_v62 = vor.u32 %v6192_v59, %v4743_v58 }
 0x30f   : > { %1309 = vmatpush.bf16.msra.mxu2 %v4780_v52 }
 0x311   : > { %1297 = vmatpush.bf16.msra.mxu1 %v4744_v62 }
 0x312   : > { %1236 = vmatpush.bf16.msrb.mxu0 %v4596_v11  ;;  %v6180_v11 = vld [vmem:[#allocation8 + $0x25c] sm:$0xf] }
 0x313   : > { %v4716_v13 = vor.u32 %v6180_v11, %v4713_v12 }
 0x315   : > { %1298 = vmatpush.bf16.msra.mxu1 %v4712_v10  ;;  %v5081_v10 = vld [vmem:[#allocation8 + $0x5c8] sm:$0xf0] }
 0x316   : > { %1281 = vmatpush.bf16.msra.mxu0 %v4836_v20  ;;  %v4676_v20 = vor.u32 %v6171_v15, %v4673_v17  ;;  %v5041_v17 = vld [vmem:[#allocation8 + $0x500] sm:$0xf0] }
 0x31a   : > { %1282 = vmatpush.bf16.msra.mxu0 %v4804_v33  ;;  %v4648_v33 = vor.u32 %v6168_v31, %v4647_v30  ;;  %v5015_v30 = vld [vmem:[#allocation8 + $0x3e8] sm:$0xf] }
 0x31b   : > { %v6326_v31 = vld [vmem:[#allocation8 + $0x444] sm:$0xf0] }
 0x31c   : > { %v5016_v40 = vor.u32 %v6326_v31, %v5015_v30  ;;  %v6286_v30 = vld [vmem:[#allocation8 + $0x84] sm:$0xf0]  ;;  %v6282_v31 = vld [vmem:[#allocation8 + $0x2c] sm:$0xf] }
 0x31e   : > { %1283 = vmatpush.bf16.msra.mxu0 %v4772_v48  ;;  %v6156_v48 = vld [vmem:[#allocation8 + $0x1c] sm:$0xf] }
 0x31f   : > { %v4620_v50 = vor.u32 %v6156_v48, %v4617_v49 }
 0x322   : > { %1284 = vmatpush.bf16.msra.mxu0 %v4740_v61  ;;  %v6652_v61 = vld [vmem:[%s7342_s3] ss:$0 sm:$0xff] }
 0x326   : > { %1285 = vmatpush.bf16.msra.mxu0 %v4708_v9  ;;  %v6338_v9 = vld [vmem:[#allocation8 + $0x56c] sm:$0xf] }
 0x327   : > { %v5084_v15 = vor.u32 %v6338_v9, %v5081_v10  ;;  %v4921_v9 = vld [vmem:[#allocation8 + $0x208] sm:$0xf0] }
 0x32a   : > { %1286 = vmatpush.bf16.msra.mxu0 %v4676_v20  ;;  %v6330_v20 = vld [vmem:[#allocation8 + $0x4ac] sm:$0xf] }
 0x371   : > { %v779_v0 = vpop.xlane.xlu1 %778 }
 0x372   : > { %v787_v2 = vmul.f32 %v7183_v60, %v779_v0  ;;  %v4745_v0 = vld [vmem:[#allocation8 + $0x378] sm:$0xf0] }
 0x373   : > { %v4748_v1 = vor.u32 %v6188_v63, %v4745_v0  ;;  %v6653_v63 = vld [vmem:[%s7343_s4] ss:$0 sm:$0xff] }
 0x374   : > { %v7187_v3 = vsub.f32 %v7170_v34, %v787_v2  ;;  %v4831_v34 = vld [vmem:[#allocation8 + $0x550] sm:$0xf] }
 0x375   : > { %v4832_v19 = vor.u32 %v6215_v16, %v4831_v34  ;;  %v4703_v2 = vld [vmem:[#allocation8 + $0x250] sm:$0xf]  ;;  %1310 = vmatpush.bf16.msra.mxu2 %v4748_v1 }
 0x376   : > { %v789_v37 = vmul.f32 %v7187_v3, %v7187_v3  ;;  %v6175_v34 = vld [vmem:[#allocation8 + $0x1ec] sm:$0xf0] }
 0x377   : > { %1268 = vmatpush.bf16.msrb.mxu3 %v4832_v19  ;;  %v4672_v16 = vor.u32 %v6175_v34, %v4671_v14  ;;  %v6176_v19 = vld [vmem:[#allocation8 + $0x1f4] sm:$0xf0]  ;;  %v5039_v14 = vld [vmem:[#allocation8 + $0x4a0] sm:$0xf] }
 0x378   : > { %790 = vadd.xlane.f32.xlu1 %v789_v37  ;;  %v6183_v37 = vld [vmem:[#allocation8 + $0x2ac] sm:$0xf0]  ;;  %v4680_v21 = vor.u32 %v6176_v19, %v4679_v18  ;;  %v6333_v34 = vld [vmem:[#allocation8 + $0x4fc] sm:$0xf0]  ;;  %v5047_v18 = vld [vmem:[#allocation8 + $0x4a8] sm:$0xf] }
 0x379   : > { %v4704_v5 = vor.u32 %v6183_v37, %v4703_v2  ;;  %1311 = vmatpush.bf16.msra.mxu2 %v4716_v13  ;;  %v5071_v2 = vld [vmem:[#allocation8 + $0x560] sm:$0xf]  ;;  %v6334_v19 = vld [vmem:[#allocation8 + $0x504] sm:$0xf0]  ;;  %v5040_v22 = vor.u32 %v6333_v34, %v5039_v14 }
 0x37a   : > { %1299 = vmatpush.bf16.msra.mxu1 %v4680_v21  ;;  %v6341_v37 = vld [vmem:[#allocation8 + $0x5bc] sm:$0xf0]  ;;  %v5049_v21 = vld [vmem:[#allocation8 + $0x508] sm:$0xf0]  ;;  %v5048_v26 = vor.u32 %v6334_v19, %v5047_v18  ;;  %v6294_v18 = vld [vmem:[#allocation8 + $0x144] sm:$0xf0] }
 0x37b   : > { %1269 = vmatpush.bf16.msrb.mxu3 %v4800_v29  ;;  %v4641_v29 = vld [vmem:[#allocation8 + $0x130] sm:$0xf0]  ;;  %v5072_v12 = vor.u32 %v6341_v37, %v5071_v2  ;;  %v6297_v37 = vld [vmem:[#allocation8 + $0x1a4] sm:$0xf]  ;;  %v6293_v14 = vld [vmem:[#allocation8 + $0x13c] sm:$0xf0] }
 0x37c   : > { %v4644_v32 = vor.u32 %v6163_v27, %v4641_v29  ;;  %v5052_v27 = vor.u32 %v6330_v20, %v5049_v21  ;;  %v5009_v29 = vld [vmem:[#allocation8 + $0x440] sm:$0xf0]  ;;  %v6290_v19 = vld [vmem:[#allocation8 + $0xec] sm:$0xf]  ;;  %v4847_v21 = vld [vmem:[#allocation8 + $0x20] sm:$0xf] }
 0x37d   : > { %1312 = vmatpush.bf16.msra.mxu2 %v4684_v24  ;;  %v5007_v24 = vld [vmem:[#allocation8 + $0x3e0] sm:$0xf]  ;;  %v4889_v20 = vld [vmem:[#allocation8 + $0x148] sm:$0xf0] }
 0x37e   : > { %1287 = vmatpush.bf16.msra.mxu0 %v4644_v32  ;;  %1300 = vmatpush.bf16.msra.mxu1 %v4648_v33  ;;  %v6322_v32 = vld [vmem:[#allocation8 + $0x3ec] sm:$0xf]  ;;  %v5008_v35 = vor.u32 %v6325_v25, %v5007_v24  ;;  %v6285_v24 = vld [vmem:[#allocation8 + $0x7c] sm:$0xf0]  ;;  %v6281_v25 = vld [vmem:[#allocation8 + $0x24] sm:$0xf] }
 0x37f   : > { %1270 = vmatpush.bf16.msrb.mxu3 %v4768_v44  ;;  %v4615_v44 = vld [vmem:[#allocation8 + $0x18] sm:$0xf]  ;;  %v5017_v33 = vld [vmem:[#allocation8 + $0x448] sm:$0xf0] }
 0x380   : > { %v4616_v47 = vor.u32 %v6160_v45, %v4615_v44  ;;  %v5020_v41 = vor.u32 %v6322_v32, %v5017_v33  ;;  %v4983_v44 = vld [vmem:[#allocation8 + $0x328] sm:$0xf]  ;;  %v4857_v32 = vld [vmem:[#allocation8 + $0x88] sm:$0xf0]  ;;  %v5087_v33 = vld [vmem:[#allocation8 + $0x570] sm:$0xf] }
 0x381   : > { %1313 = vmatpush.bf16.msra.mxu2 %v4652_v38  ;;  %v4975_v38 = vld [vmem:[#allocation8 + $0x320] sm:$0xf]  ;;  %v6318_v45 = vld [vmem:[#allocation8 + $0x384] sm:$0xf0] }
 0x382   : > { %1288 = vmatpush.bf16.msra.mxu0 %v4612_v46  ;;  %1301 = vmatpush.bf16.msra.mxu1 %v4616_v47  ;;  %v6314_v46 = vld [vmem:[#allocation8 + $0x32c] sm:$0xf]  ;;  %v4976_v48 = vor.u32 %v6317_v39, %v4975_v38  ;;  %v5089_v38 = vld [vmem:[#allocation8 + $0x5d0] sm:$0xf0]  ;;  %v5095_v39 = vld [vmem:[#allocation8 + $0x578] sm:$0xf] }
 0x383   : > { %1271 = vmatpush.bf16.msrb.mxu3 %v4736_v56  ;;  %v4985_v47 = vld [vmem:[#allocation8 + $0x388] sm:$0xf0] }
 0x385   : > { %1314 = vmatpush.bf16.msra.mxu2 %v4620_v50  ;;  %v4943_v50 = vld [vmem:[#allocation8 + $0x260] sm:$0xf] }
 0x387   : > { %1272 = vmatpush.bf16.msrb.mxu3 %v4704_v5  ;;  %v5073_v5 = vld [vmem:[#allocation8 + $0x5c0] sm:$0xf0] }
 0x388   : > { %v5076_v13 = vor.u32 %v6337_v4, %v5073_v5  ;;  %v4913_v4 = vld [vmem:[#allocation8 + $0x200] sm:$0xf0]  ;;  %v4919_v5 = vld [vmem:[#allocation8 + $0x1a8] sm:$0xf] }
 0x38b   : > { %1273 = vmatpush.bf16.msrb.mxu3 %v4672_v16  ;;  %v6329_v16 = vld [vmem:[#allocation8 + $0x4a4] sm:$0xf] }
 0x38c   : > { %v5044_v23 = vor.u32 %v6329_v16, %v5041_v17  ;;  %v4881_v16 = vld [vmem:[#allocation8 + $0x140] sm:$0xf0]  ;;  %v4887_v17 = vld [vmem:[#allocation8 + $0xe8] sm:$0xf] }
 0x38f   : > { %1274 = vmatpush.bf16.msrb.mxu3 %v4640_v28  ;;  %v6321_v28 = vld [vmem:[#allocation8 + $0x3e4] sm:$0xf] }
 0x390   : > { %v5012_v36 = vor.u32 %v6321_v28, %v5009_v29  ;;  %v4892_v28 = vor.u32 %v6290_v19, %v4889_v20  ;;  %v4855_v29 = vld [vmem:[#allocation8 + $0x28] sm:$0xf]  ;;  %v5001_v19 = vld [vmem:[#allocation8 + $0x398] sm:$0xf0] }
 0x393   : > { %1275 = vmatpush.bf16.msrb.mxu3 %v4608_v42  ;;  %v6313_v42 = vld [vmem:[#allocation8 + $0x324] sm:$0xf] }
 0x394   : > { %v4980_v49 = vor.u32 %v6313_v42, %v4977_v43  ;;  %v6344_v42 = vld [vmem:[#allocation8 + $0x5d4] sm:$0xf0]  ;;  %v6340_v43 = vld [vmem:[#allocation8 + $0x57c] sm:$0xf] }
 0x3eb   : > { %v791_v51 = vpop.xlane.xlu1 %790 }
 0x3ec   : > { %v792_v52 = vmul.f32 %v791_v51, %v7183_v60  ;;  %v6309_v51 = vld [vmem:[#allocation8 + $0x2bc] sm:$0xf0] }
 0x3ee   : > { %v793_v53 = vadd.f32 1e-05, %v792_v52  ;;  %v4984_v52 = vor.u32 %v6318_v45, %v4983_v44  ;;  %v5097_v44 = vld [vmem:[#allocation8 + $0x5d8] sm:$0xf0]  ;;  %v4856_v45 = vor.u32 %v6286_v30, %v4855_v29  ;;  %v6312_v29 = vld [vmem:[#allocation8 + $0x2d4] sm:$0xf0] }
 0x3ef   : > { %v6308_v30 = vld [vmem:[#allocation8 + $0x27c] sm:$0xf] }
 0x3f0   : > { %6663 = vrsqrt.f32 %v793_v53  ;;  %vm800_vm4 = vweird.f32 %v793_v53 }
 0x3f6   : > { %v6664_v54 = vpop.eup %6663 }
 0x3f7   : > { %v795_v55 = vmul.f32 %v6664_v54, %v793_v53  ;;  %vm801_vm3 = vweird.f32 %v6664_v54  ;;  %v4988_v53 = vor.u32 %v6314_v46, %v4985_v47  ;;  %v4860_v46 = vor.u32 %v6282_v31, %v4857_v32  ;;  %v4969_v31 = vld [vmem:[#allocation8 + $0x2d8] sm:$0xf0] }
 0x3f8   : > { %vm802_vm5 = vmor %vm800_vm4, %vm801_vm3 }
 0x3f9   : > { %v796_v56 = vmul.f32 %v6664_v54, %v795_v55  ;;  %v4945_v55 = vld [vmem:[#allocation8 + $0x2c0] sm:$0xf0] }
 0x3fb   : > { %v797_v57 = vmul.f32 0.5, %v796_v56  ;;  %v4951_v56 = vld [vmem:[#allocation8 + $0x268] sm:$0xf] }
 0x3fd   : > { %v798_v58 = vsub.f32 1.5, %v797_v57  ;;  %v6310_v57 = vld [vmem:[#allocation8 + $0x2c4] sm:$0xf0] }
 0x3ff   : > { %v799_v59 = vmul.f32 %v6664_v54, %v798_v58  ;;  %v6306_v58 = vld [vmem:[#allocation8 + $0x26c] sm:$0xf] }
 0x401   : > { %v803_v62 = vsel %vm802_vm5, %v6664_v54, %v799_v59  ;;  %v6305_v54 = vld [vmem:[#allocation8 + $0x264] sm:$0xf]  ;;  %v4953_v59 = vld [vmem:[#allocation8 + $0x2c8] sm:$0xf0] }
 0x402   : > { %v804_v0 = vmul.f32 %v803_v62, %v7187_v3  ;;  %v5080_v3 = vor.u32 %v6342_v8, %v5079_v6  ;;  %v4948_v62 = vor.u32 %v6305_v54, %v4945_v55  ;;  %v4956_v2 = vor.u32 %v6306_v58, %v4953_v59  ;;  %v6302_v6 = vld [vmem:[#allocation8 + $0x204] sm:$0xf0]  ;;  %v6298_v8 = vld [vmem:[#allocation8 + $0x1ac] sm:$0xf]  ;;  %v5057_v54 = vld [vmem:[#allocation8 + $0x510] sm:$0xf0] }
 0x403   : > { %v4920_v34 = vor.u32 %v6302_v6, %v4919_v5  ;;  %v5063_v55 = vld [vmem:[#allocation8 + $0x4b8] sm:$0xf]  ;;  %v5065_v58 = vld [vmem:[#allocation8 + $0x518] sm:$0xf0] }
 0x404   : > { %v808_v1 = vmul.f32 %v6652_v61, %v804_v0  ;;  %v4944_v61 = vor.u32 %v6309_v51, %v4943_v50  ;;  %v6301_v0 = vld [vmem:[#allocation8 + $0x1fc] sm:$0xf0]  ;;  %v6335_v50 = vld [vmem:[#allocation8 + $0x50c] sm:$0xf0]  ;;  %v5096_v51 = vor.u32 %v6344_v42, %v5095_v39  ;;  %v6328_v5 = vld [vmem:[#allocation8 + $0x454] sm:$0xf0]  ;;  %v4972_v39 = vor.u32 %v6308_v30, %v4969_v31 }
 0x405   : > { %v6324_v6 = vld [vmem:[#allocation8 + $0x3fc] sm:$0xf]  ;;  %v4935_v42 = vld [vmem:[#allocation8 + $0x1b8] sm:$0xf]  ;;  %v6363_v30 = vld [vmem:[#allocation11 + $0x290] sm:$0xff] }
 0x406   : > { %v7199_v7 = vadd.f32 %v6653_v63, %v808_v1  ;;  %v4911_v63 = vld [vmem:[#allocation8 + $0x1a0] sm:$0xf]  ;;  %v4952_v1 = vor.u32 %v6310_v57, %v4951_v56  ;;  %v6336_v56 = vld [vmem:[#allocation8 + $0x514] sm:$0xf0]  ;;  %v6332_v57 = vld [vmem:[#allocation8 + $0x4bc] sm:$0xf] }
 0x407   : > { %v4912_v10 = vor.u32 %v6301_v0, %v4911_v63  ;;  %v6327_v63 = vld [vmem:[#allocation8 + $0x44c] sm:$0xf0]  ;;  %v5064_v0 = vor.u32 %v6336_v56, %v5063_v55  ;;  %v6296_v55 = vld [vmem:[#allocation8 + $0x154] sm:$0xf0]  ;;  %v6292_v56 = vld [vmem:[#allocation8 + $0xfc] sm:$0xf] }
 0x408   : > { %v7203_v11 = vpack.c.bf16 %v7199_v7, %v7199_v7  ;;  %v6348_v31 = vld [vmem:[#allocation11 + $0x218] sm:$0xff] }
 0x40a   : > { %1224 = vmatmul.bf16.vlgmr.msra.gmra.mxu3 %v7203_v11  ;;  %1237 = vmatmul.bf16.vlgmr.msrb.gmra.mxu0 %v7203_v11 }
 0x40b   : > { %1250 = vmatmul.bf16.vlgmr.msrb.gmra.mxu1 %v7203_v11  ;;  %1263 = vmatmul.bf16.vlgmr.msrb.gmra.mxu2 %v7203_v11 }
 0x40c   : > { %1882 = vmatpush.bf16.msra.mxu3 %v5072_v12  ;;  %1895 = vmatpush.bf16.msrb.mxu0 %v5076_v13  ;;  %v4916_v12 = vor.u32 %v6297_v37, %v4913_v4  ;;  %v4879_v13 = vld [vmem:[#allocation8 + $0xe0] sm:$0xf]  ;;  %v5025_v37 = vld [vmem:[#allocation8 + $0x450] sm:$0xf0]  ;;  %v5031_v4 = vld [vmem:[#allocation8 + $0x3f8] sm:$0xf] }
 0x40d   : > { %1908 = vmatpush.bf16.msrb.mxu1 %v5080_v3  ;;  %1921 = vmatpush.bf16.msrb.mxu2 %v5084_v15  ;;  %v4924_v3 = vor.u32 %v6298_v8, %v4921_v9  ;;  %v6289_v15 = vld [vmem:[#allocation8 + $0xe4] sm:$0xf]  ;;  %v5033_v8 = vld [vmem:[#allocation8 + $0x458] sm:$0xf0] }
 0x410   : > { %1883 = vmatpush.bf16.msra.mxu3 %v5040_v22  ;;  %1896 = vmatpush.bf16.msrb.mxu0 %v5044_v23  ;;  %v4880_v22 = vor.u32 %v6293_v14, %v4879_v13  ;;  %v4884_v23 = vor.u32 %v6289_v15, %v4881_v16  ;;  %v6319_v13 = vld [vmem:[#allocation8 + $0x38c] sm:$0xf0]  ;;  %v5032_v14 = vor.u32 %v6328_v5, %v5031_v4  ;;  %v4993_v15 = vld [vmem:[#allocation8 + $0x390] sm:$0xf0]  ;;  %v4999_v16 = vld [vmem:[#allocation8 + $0x338] sm:$0xf] }
 0x411   : > { %1909 = vmatpush.bf16.msrb.mxu1 %v5048_v26  ;;  %1922 = vmatpush.bf16.msrb.mxu2 %v5052_v27  ;;  %v4849_v26 = vld [vmem:[#allocation8 + $0x80] sm:$0xf0]  ;;  %v4888_v27 = vor.u32 %v6294_v18, %v4887_v17  ;;  %v6320_v17 = vld [vmem:[#allocation8 + $0x394] sm:$0xf0]  ;;  %v6316_v18 = vld [vmem:[#allocation8 + $0x33c] sm:$0xf] }
 0x412   : > { %v6288_v4 = vld [vmem:[#allocation8 + $0x94] sm:$0xf0]  ;;  %v6284_v5 = vld [vmem:[#allocation8 + $0x3c] sm:$0xf] }
 0x414   : > { %1884 = vmatpush.bf16.msra.mxu3 %v5008_v35  ;;  %1897 = vmatpush.bf16.msrb.mxu0 %v5012_v36  ;;  %v6343_v35 = vld [vmem:[#allocation8 + $0x5cc] sm:$0xf0]  ;;  %v6339_v36 = vld [vmem:[#allocation8 + $0x574] sm:$0xf] }
 0x415   : > { %1910 = vmatpush.bf16.msrb.mxu1 %v5016_v40  ;;  %1923 = vmatpush.bf16.msrb.mxu2 %v5020_v41  ;;  %v4848_v40 = vor.u32 %v6285_v24, %v4847_v21  ;;  %v4852_v41 = vor.u32 %v6281_v25, %v4849_v26  ;;  %v5088_v47 = vor.u32 %v6343_v35, %v5087_v33  ;;  %v6307_v26 = vld [vmem:[#allocation8 + $0x274] sm:$0xf]  ;;  %v4927_v35 = vld [vmem:[#allocation8 + $0x1b0] sm:$0xf] }
 0x416   : > { %v5000_v24 = vor.u32 %v6320_v17, %v4999_v16  ;;  %v5004_v25 = vor.u32 %v6316_v18, %v5001_v19  ;;  %v6367_v16 = vld [vmem:[#allocation11 + $0x2b0] sm:$0xff]  ;;  %v6358_v19 = vld [vmem:[#allocation11 + $0x268] sm:$0xff] }
 0x417   : > { %v6351_v17 = vld [vmem:[#allocation11 + $0x230] sm:$0xff] }
 0x418   : > { %1885 = vmatpush.bf16.msra.mxu3 %v4976_v48  ;;  %1898 = vmatpush.bf16.msrb.mxu0 %v4980_v49  ;;  %v5092_v48 = vor.u32 %v6339_v36, %v5089_v38  ;;  %v5055_v49 = vld [vmem:[#allocation8 + $0x4b0] sm:$0xf]  ;;  %v6375_v18 = vld [vmem:[#allocation11 + $0x2f0] sm:$0xff] }
 0x419   : > { %1911 = vmatpush.bf16.msrb.mxu1 %v4984_v52  ;;  %1924 = vmatpush.bf16.msrb.mxu2 %v4988_v53  ;;  %v5100_v52 = vor.u32 %v6340_v43, %v5097_v44  ;;  %v6331_v53 = vld [vmem:[#allocation8 + $0x4b4] sm:$0xf]  ;;  %v5056_v59 = vor.u32 %v6335_v50, %v5055_v49  ;;  %v6303_v36 = vld [vmem:[#allocation8 + $0x20c] sm:$0xf0]  ;;  %v6304_v43 = vld [vmem:[#allocation8 + $0x214] sm:$0xf0] }
 0x41a   : > { %1276 = vmatmul.bf16.vlgmr.msrb.gmra.mxu3 %v7203_v11  ;;  %1289 = vmatmul.bf16.vlgmr.msra.gmra.mxu0 %v7203_v11  ;;  %v6300_v44 = vld [vmem:[#allocation8 + $0x1bc] sm:$0xf]  ;;  %v6295_v49 = vld [vmem:[#allocation8 + $0x14c] sm:$0xf0]  ;;  %v4936_v50 = vor.u32 %v6304_v43, %v4935_v42  ;;  %v6346_v43 = vld [vmem:[#allocation11 + $0x208] sm:$0xff] }
 0x41b   : > { %1302 = vmatmul.bf16.vlgmr.msra.gmra.mxu1 %v7203_v11  ;;  %1315 = vmatmul.bf16.vlgmr.msra.gmra.mxu2 %v7203_v11  ;;  %v6400_v42 = vld [vmem:[#allocation11 + $0x3b8] sm:$0xff] }
 0x41c   : > { %1886 = vmatpush.bf16.msra.mxu3 %v4944_v61  ;;  %1899 = vmatpush.bf16.msrb.mxu0 %v4948_v62  ;;  %v5060_v61 = vor.u32 %v6331_v53, %v5057_v54  ;;  %v5023_v62 = vld [vmem:[#allocation8 + $0x3f0] sm:$0xf]  ;;  %v4897_v53 = vld [vmem:[#allocation8 + $0x150] sm:$0xf0]  ;;  %v4903_v54 = vld [vmem:[#allocation8 + $0xf8] sm:$0xf] }
 0x41d   : > { %1912 = vmatpush.bf16.msrb.mxu1 %v4952_v1  ;;  %1925 = vmatpush.bf16.msrb.mxu2 %v4956_v2  ;;  %v5068_v1 = vor.u32 %v6332_v57, %v5065_v58  ;;  %v6323_v2 = vld [vmem:[#allocation8 + $0x3f4] sm:$0xf]  ;;  %v5024_v9 = vor.u32 %v6327_v63, %v5023_v62  ;;  %v4905_v57 = vld [vmem:[#allocation8 + $0x158] sm:$0xf0]  ;;  %v6287_v62 = vld [vmem:[#allocation8 + $0x8c] sm:$0xf0]  ;;  %v4904_v63 = vor.u32 %v6296_v55, %v4903_v54 }
 0x41e   : > { %v6407_v54 = vld [vmem:[#allocation11 + $0x3f0] sm:$0xff]  ;;  %v6389_v55 = vld [vmem:[#allocation11 + $0x360] sm:$0xff] }
 0x420   : > { %1887 = vmatpush.bf16.msra.mxu3 %v4912_v10  ;;  %1900 = vmatpush.bf16.msrb.mxu0 %v4916_v12  ;;  %v5028_v10 = vor.u32 %v6323_v2, %v5025_v37  ;;  %v4991_v12 = vld [vmem:[#allocation8 + $0x330] sm:$0xf]  ;;  %v4865_v2 = vld [vmem:[#allocation8 + $0x90] sm:$0xf0]  ;;  %v4871_v37 = vld [vmem:[#allocation8 + $0x38] sm:$0xf] }
 0x421   : > { %1913 = vmatpush.bf16.msrb.mxu1 %v4920_v34  ;;  %1926 = vmatpush.bf16.msrb.mxu2 %v4924_v3  ;;  %v5036_v34 = vor.u32 %v6324_v6, %v5033_v8  ;;  %v6315_v3 = vld [vmem:[#allocation8 + $0x334] sm:$0xf]  ;;  %v4992_v20 = vor.u32 %v6319_v13, %v4991_v12  ;;  %v4873_v6 = vld [vmem:[#allocation8 + $0x98] sm:$0xf0] }
 0x422   : > { %v4996_v21 = vor.u32 %v6315_v3, %v4993_v15  ;;  %v4876_v12 = vor.u32 %v6284_v5, %v4873_v6  ;;  %v6360_v13 = vld [vmem:[#allocation11 + $0x278] sm:$0xff]  ;;  %v6359_v15 = vld [vmem:[#allocation11 + $0x270] sm:$0xff]  ;;  %v6386_v6 = vld [vmem:[#allocation11 + $0x348] sm:$0xff] }
 0x423   : > { %v6376_v3 = vld [vmem:[#allocation11 + $0x2f8] sm:$0xff] }
 0x424   : > { %1888 = vmatpush.bf16.msra.mxu3 %v4880_v22  ;;  %1901 = vmatpush.bf16.msrb.mxu0 %v4884_v23  ;;  %v4959_v22 = vld [vmem:[#allocation8 + $0x270] sm:$0xf] }
 0x425   : > { %1914 = vmatpush.bf16.msrb.mxu1 %v4888_v27  ;;  %1927 = vmatpush.bf16.msrb.mxu2 %v4892_v28  ;;  %v6311_v23 = vld [vmem:[#allocation8 + $0x2cc] sm:$0xf0]  ;;  %v4961_v27 = vld [vmem:[#allocation8 + $0x2d0] sm:$0xf0]  ;;  %v4967_v28 = vld [vmem:[#allocation8 + $0x278] sm:$0xf] }
 0x426   : > { %v4960_v32 = vor.u32 %v6311_v23, %v4959_v22  ;;  %v4964_v33 = vor.u32 %v6307_v26, %v4961_v27  ;;  %v4968_v38 = vor.u32 %v6312_v29, %v4967_v28  ;;  %v6374_v22 = vld [vmem:[#allocation11 + $0x2e8] sm:$0xff]  ;;  %v6357_v23 = vld [vmem:[#allocation11 + $0x260] sm:$0xff]  ;;  %v6364_v26 = vld [vmem:[#allocation11 + $0x298] sm:$0xff] }
 0x427   : > { %v6349_v27 = vld [vmem:[#allocation11 + $0x220] sm:$0xff]  ;;  %v6355_v29 = vld [vmem:[#allocation11 + $0x250] sm:$0xff]  ;;  %v6404_v5 = vld [vmem:[#allocation11 + $0x3d8] sm:$0xff] }
 0x428   : > { %1889 = vmatpush.bf16.msra.mxu3 %v4848_v40  ;;  %1902 = vmatpush.bf16.msrb.mxu0 %v4852_v41  ;;  %v6299_v40 = vld [vmem:[#allocation8 + $0x1b4] sm:$0xf]  ;;  %v6373_v28 = vld [vmem:[#allocation11 + $0x2e0] sm:$0xff] }
 0x429   : > { %1915 = vmatpush.bf16.msrb.mxu1 %v4856_v45  ;;  %1928 = vmatpush.bf16.msrb.mxu2 %v4860_v46  ;;  %v4929_v41 = vld [vmem:[#allocation8 + $0x210] sm:$0xf0]  ;;  %v4937_v45 = vld [vmem:[#allocation8 + $0x218] sm:$0xf0]  ;;  %v4928_v46 = vor.u32 %v6303_v36, %v4927_v35  ;;  %v6362_v35 = vld [vmem:[#allocation11 + $0x288] sm:$0xff] }
 0x42a   : > { %v6347_v36 = vld [vmem:[#allocation11 + $0x210] sm:$0xff] }
 0x42b   : > { %1890 = vmatmul.bf16.vlgmr.msra.gmra.mxu3 %v7203_v11  ;;  %1903 = vmatmul.bf16.vlgmr.msrb.gmra.mxu0 %v7203_v11 }
 0x42c   : > { %1934 = vmatpush.bf16.msrb.mxu3 %v5088_v47  ;;  %1947 = vmatpush.bf16.msra.mxu0 %v5092_v48  ;;  %v4932_v47 = vor.u32 %v6299_v40, %v4929_v41  ;;  %v4895_v48 = vld [vmem:[#allocation8 + $0xf0] sm:$0xf]  ;;  %v6361_v40 = vld [vmem:[#allocation11 + $0x280] sm:$0xff] }
 0x42d   : > { %1960 = vmatpush.bf16.msra.mxu1 %v5096_v51  ;;  %1973 = vmatpush.bf16.msra.mxu2 %v5100_v52  ;;  %v4940_v51 = vor.u32 %v6300_v44, %v4937_v45  ;;  %v6291_v52 = vld [vmem:[#allocation8 + $0xf4] sm:$0xf]  ;;  %v4896_v58 = vor.u32 %v6295_v49, %v4895_v48  ;;  %v6370_v44 = vld [vmem:[#allocation11 + $0x2c8] sm:$0xff]  ;;  %v6391_v45 = vld [vmem:[#allocation11 + $0x370] sm:$0xff] }
 0x42e   : > { %1916 = vmatmul.bf16.vlgmr.msrb.gmra.mxu1 %v7203_v11  ;;  %1929 = vmatmul.bf16.vlgmr.msrb.gmra.mxu2 %v7203_v11  ;;  %v6392_v41 = vld [vmem:[#allocation11 + $0x378] sm:$0xff]  ;;  %v6369_v48 = vld [vmem:[#allocation11 + $0x2c0] sm:$0xff] }
 0x42f   : > { %v6384_v49 = vld [vmem:[#allocation11 + $0x338] sm:$0xff] }
 0x430   : > { %1935 = vmatpush.bf16.msrb.mxu3 %v5056_v59  ;;  %1948 = vmatpush.bf16.msra.mxu0 %v5060_v61  ;;  %v4900_v59 = vor.u32 %v6291_v52, %v4897_v53  ;;  %v4863_v61 = vld [vmem:[#allocation8 + $0x30] sm:$0xf]  ;;  %v6398_v52 = vld [vmem:[#allocation11 + $0x3a8] sm:$0xff]  ;;  %v6383_v53 = vld [vmem:[#allocation11 + $0x330] sm:$0xff] }
 0x431   : > { %1961 = vmatpush.bf16.msra.mxu1 %v5064_v0  ;;  %1974 = vmatpush.bf16.msra.mxu2 %v5068_v1  ;;  %v4908_v0 = vor.u32 %v6292_v56, %v4905_v57  ;;  %v6283_v1 = vld [vmem:[#allocation8 + $0x34] sm:$0xf]  ;;  %v4864_v8 = vor.u32 %v6287_v62, %v4863_v61  ;;  %v6397_v56 = vld [vmem:[#allocation11 + $0x3a0] sm:$0xff]  ;;  %v6382_v57 = vld [vmem:[#allocation11 + $0x328] sm:$0xff] }
 0x432   : > { %v6396_v61 = vld [vmem:[#allocation11 + $0x398] sm:$0xff]  ;;  %v6381_v62 = vld [vmem:[#allocation11 + $0x320] sm:$0xff] }
 0x434   : > { %1936 = vmatpush.bf16.msrb.mxu3 %v5024_v9  ;;  %1949 = vmatpush.bf16.msra.mxu0 %v5028_v10  ;;  %v4868_v9 = vor.u32 %v6283_v1, %v4865_v2  ;;  %v4872_v10 = vor.u32 %v6288_v4, %v4871_v37  ;;  %v6395_v1 = vld [vmem:[#allocation11 + $0x390] sm:$0xff]  ;;  %v6380_v4 = vld [vmem:[#allocation11 + $0x318] sm:$0xff] }
 0x435   : > { %1962 = vmatpush.bf16.msra.mxu1 %v5032_v14  ;;  %1975 = vmatpush.bf16.msra.mxu2 %v5036_v34  ;;  %v6368_v14 = vld [vmem:[#allocation11 + $0x2b8] sm:$0xff] }
 0x436   : > { %v6352_v34 = vld [vmem:[#allocation11 + $0x238] sm:$0xff] }
 0x438   : > { %1937 = vmatpush.bf16.msrb.mxu3 %v4992_v20  ;;  %1950 = vmatpush.bf16.msra.mxu0 %v4996_v21  ;;  %v6366_v20 = vld [vmem:[#allocation11 + $0x2a8] sm:$0xff] }
 0x439   : > { %1963 = vmatpush.bf16.msra.mxu1 %v5000_v24  ;;  %1976 = vmatpush.bf16.msra.mxu2 %v5004_v25  ;;  %v6350_v21 = vld [vmem:[#allocation11 + $0x228] sm:$0xff]  ;;  %v6365_v24 = vld [vmem:[#allocation11 + $0x2a0] sm:$0xff]  ;;  %v6356_v25 = vld [vmem:[#allocation11 + $0x258] sm:$0xff] }
 0x43c   : > { %1938 = vmatpush.bf16.msrb.mxu3 %v4960_v32  ;;  %1951 = vmatpush.bf16.msra.mxu0 %v4964_v33  ;;  %v6372_v32 = vld [vmem:[#allocation11 + $0x2d8] sm:$0xff]  ;;  %v6354_v33 = vld [vmem:[#allocation11 + $0x248] sm:$0xff] }
 0x43d   : > { %1964 = vmatpush.bf16.msra.mxu1 %v4968_v38  ;;  %1977 = vmatpush.bf16.msra.mxu2 %v4972_v39  ;;  %v6371_v38 = vld [vmem:[#allocation11 + $0x2d0] sm:$0xff]  ;;  %v6353_v39 = vld [vmem:[#allocation11 + $0x240] sm:$0xff] }
 0x440   : > { %1939 = vmatpush.bf16.msrb.mxu3 %v4928_v46  ;;  %1952 = vmatpush.bf16.msra.mxu0 %v4932_v47  ;;  %v6399_v46 = vld [vmem:[#allocation11 + $0x3b0] sm:$0xff]  ;;  %v6345_v47 = vld [vmem:[#allocation11 + $0x200] sm:$0xff] }
 0x441   : > { %1965 = vmatpush.bf16.msra.mxu1 %v4936_v50  ;;  %1978 = vmatpush.bf16.msra.mxu2 %v4940_v51  ;;  %v6408_v50 = vld [vmem:[#allocation11 + $0x3f8] sm:$0xff]  ;;  %v6390_v51 = vld [vmem:[#allocation11 + $0x368] sm:$0xff] }
 0x444   : > { %1940 = vmatpush.bf16.msrb.mxu3 %v4896_v58  ;;  %1953 = vmatpush.bf16.msra.mxu0 %v4900_v59  ;;  %v6406_v58 = vld [vmem:[#allocation11 + $0x3e8] sm:$0xff]  ;;  %v6388_v59 = vld [vmem:[#allocation11 + $0x358] sm:$0xff] }
 0x445   : > { %1966 = vmatpush.bf16.msra.mxu1 %v4904_v63  ;;  %1979 = vmatpush.bf16.msra.mxu2 %v4908_v0  ;;  %v6405_v63 = vld [vmem:[#allocation11 + $0x3e0] sm:$0xff]  ;;  %v6387_v0 = vld [vmem:[#allocation11 + $0x350] sm:$0xff] }
 0x448   : > { %1941 = vmatpush.bf16.msrb.mxu3 %v4864_v8  ;;  %1954 = vmatpush.bf16.msra.mxu0 %v4868_v9  ;;  %v6394_v8 = vld [vmem:[#allocation11 + $0x388] sm:$0xff] }
 0x449   : > { %1967 = vmatpush.bf16.msra.mxu1 %v4872_v10  ;;  %1980 = vmatpush.bf16.msra.mxu2 %v4876_v12  ;;  %v6379_v12 = vld [vmem:[#allocation11 + $0x310] sm:$0xff] }
 0x44b   : > { %1942 = vmatmul.bf16.vlgmr.msrb.gmra.mxu3 %v7203_v11  ;;  %1955 = vmatmul.bf16.vlgmr.msra.gmra.mxu0 %v7203_v11 }
 0x44c   : > { %2543 = vmatpush.bf16.msrb.mxu0 %v6360_v13  ;;  %1968 = vmatmul.bf16.vlgmr.msra.gmra.mxu1 %v7203_v11  ;;  %v6403_v13 = vld [vmem:[#allocation11 + $0x3d0] sm:$0xff] }
 0x44d   : > { %2556 = vmatpush.bf16.msrb.mxu1 %v6368_v14  ;;  %1981 = vmatmul.bf16.vlgmr.msra.gmra.mxu2 %v7203_v11 }
 0x44e   : > { %2530 = vmatpush.bf16.msra.mxu3 %v6352_v34  ;;  %2569 = vmatpush.bf16.msrb.mxu2 %v6376_v3  ;;  %v6385_v3 = vld [vmem:[#allocation11 + $0x340] sm:$0xff] }
 0x450   : > { %2544 = vmatpush.bf16.msrb.mxu0 %v6359_v15  ;;  %v6393_v15 = vld [vmem:[#allocation11 + $0x380] sm:$0xff] }
 0x451   : > { %2557 = vmatpush.bf16.msrb.mxu1 %v6367_v16  ;;  %v6378_v16 = vld [vmem:[#allocation11 + $0x308] sm:$0xff] }
 0x452   : > { %2531 = vmatpush.bf16.msra.mxu3 %v6351_v17  ;;  %2570 = vmatpush.bf16.msrb.mxu2 %v6375_v18  ;;  %v6402_v17 = vld [vmem:[#allocation11 + $0x3c8] sm:$0xff] }
 0x454   : > { %2545 = vmatpush.bf16.msrb.mxu0 %v6358_v19 }
 0x455   : > { %2558 = vmatpush.bf16.msrb.mxu1 %v6366_v20  ;;  %v6377_v20 = vld [vmem:[#allocation11 + $0x300] sm:$0xff] }
 0x456   : > { %2532 = vmatpush.bf16.msra.mxu3 %v6350_v21  ;;  %2571 = vmatpush.bf16.msrb.mxu2 %v6374_v22  ;;  %v6401_v21 = vld [vmem:[#allocation11 + $0x3c0] sm:$0xff] }
 0x458   : > { %2546 = vmatpush.bf16.msrb.mxu0 %v6357_v23 }
 0x459   : > { %2559 = vmatpush.bf16.msrb.mxu1 %v6365_v24 }
 0x45a   : > { %2533 = vmatpush.bf16.msra.mxu3 %v6349_v27  ;;  %2572 = vmatpush.bf16.msrb.mxu2 %v6373_v28  ;;  %v7237_v28 = vld [vmem:[#allocation10 + $0x8] sm:$0xff] }
 0x45c   : > { %2547 = vmatpush.bf16.msrb.mxu0 %v6356_v25 }
 0x45d   : > { %2560 = vmatpush.bf16.msrb.mxu1 %v6364_v26 }
 0x45e   : > { %2534 = vmatpush.bf16.msra.mxu3 %v6348_v31  ;;  %2573 = vmatpush.bf16.msrb.mxu2 %v6372_v32  ;;  %v1547_v31 = vperm.slane %v7237_v28, 1  ;;  %v1548_v32 = vperm.slane %v7237_v28, 2 }
 0x460   : > { %2548 = vmatpush.bf16.msrb.mxu0 %v6355_v29 }
 0x461   : > { %2561 = vmatpush.bf16.msrb.mxu1 %v6363_v30 }
 0x462   : > { %2535 = vmatpush.bf16.msra.mxu3 %v6347_v36  ;;  %2574 = vmatpush.bf16.msrb.mxu2 %v6371_v38 }
 0x464   : > { %2549 = vmatpush.bf16.msrb.mxu0 %v6354_v33 }
 0x465   : > { %2562 = vmatpush.bf16.msrb.mxu1 %v6362_v35 }
 0x466   : > { %2536 = vmatpush.bf16.msra.mxu3 %v6346_v43  ;;  %2575 = vmatpush.bf16.msrb.mxu2 %v6370_v44  ;;  %v6232_v44 = vld [vmem:[#allocation11 + $0x78] sm:$0xff] }
 0x468   : > { %2550 = vmatpush.bf16.msrb.mxu0 %v6353_v39 }
 0x469   : > { %2563 = vmatpush.bf16.msrb.mxu1 %v6361_v40  ;;  %v1546_v40 = vperm.slane %v7237_v28, 0 }
 0x46a   : > { %2537 = vmatpush.bf16.msra.mxu3 %v6345_v47  ;;  %2576 = vmatpush.bf16.msrb.mxu2 %v6369_v48  ;;  %v6240_v48 = vld [vmem:[#allocation11 + $0xb8] sm:$0xff] }
 0x46c   : > { %2595 = vmatpush.bf16.msra.mxu0 %v6392_v41 }
 0x46d   : > { %2608 = vmatpush.bf16.msra.mxu1 %v6400_v42  ;;  %v1549_v42 = vperm.slane %v7237_v28, 3 }
 0x46e   : > { %2582 = vmatpush.bf16.msrb.mxu3 %v6384_v49  ;;  %2621 = vmatpush.bf16.msra.mxu2 %v6408_v50 }
 0x470   : > { %2596 = vmatpush.bf16.msra.mxu0 %v6391_v45 }
 0x471   : > { %2609 = vmatpush.bf16.msra.mxu1 %v6399_v46 }
 0x472   : > { %2583 = vmatpush.bf16.msrb.mxu3 %v6383_v53  ;;  %2622 = vmatpush.bf16.msra.mxu2 %v6407_v54 }
 0x474   : > { %2597 = vmatpush.bf16.msra.mxu0 %v6390_v51 }
 0x475   : > { %2610 = vmatpush.bf16.msra.mxu1 %v6398_v52 }
 0x476   : > { %2584 = vmatpush.bf16.msrb.mxu3 %v6382_v57  ;;  %2623 = vmatpush.bf16.msra.mxu2 %v6406_v58  ;;  %v6239_v58 = vld [vmem:[#allocation11 + $0xb0] sm:$0xff] }
 0x478   : > { %2598 = vmatpush.bf16.msra.mxu0 %v6389_v55 }
 0x479   : > { %2611 = vmatpush.bf16.msra.mxu1 %v6397_v56  ;;  %v6231_v56 = vld [vmem:[#allocation11 + $0x70] sm:$0xff] }
 0x47a   : > { %2585 = vmatpush.bf16.msrb.mxu3 %v6381_v62  ;;  %2624 = vmatpush.bf16.msra.mxu2 %v6405_v63 }
 0x47c   : > { %2599 = vmatpush.bf16.msra.mxu0 %v6388_v59 }
 0x47d   : > { %2612 = vmatpush.bf16.msra.mxu1 %v6396_v61  ;;  %v6224_v61 = vld [vmem:[#allocation11 + $0x38] sm:$0xff] }
 0x47e   : > { %2586 = vmatpush.bf16.msrb.mxu3 %v6380_v4  ;;  %2625 = vmatpush.bf16.msra.mxu2 %v6404_v5  ;;  %v6230_v4 = vld [vmem:[#allocation11 + $0x68] sm:$0xff] }
 0x480   : > { %2600 = vmatpush.bf16.msra.mxu0 %v6387_v0  ;;  %v6248_v0 = vld [vmem:[#allocation11 + $0xf8] sm:$0xff] }
 0x481   : > { %2613 = vmatpush.bf16.msra.mxu1 %v6395_v1 }
 0x482   : > { %2587 = vmatpush.bf16.msrb.mxu3 %v6379_v12  ;;  %2626 = vmatpush.bf16.msra.mxu2 %v6403_v13  ;;  %v6223_v12 = vld [vmem:[#allocation11 + $0x30] sm:$0xff] }
 0x483   : > { %v6247_v13 = vld [vmem:[#allocation11 + $0xf0] sm:$0xff] }
 0x484   : > { %2601 = vmatpush.bf16.msra.mxu0 %v6386_v6  ;;  %v6238_v6 = vld [vmem:[#allocation11 + $0xa8] sm:$0xff] }
 0x485   : > { %2614 = vmatpush.bf16.msra.mxu1 %v6394_v8 }
 0x486   : > { %2588 = vmatpush.bf16.msrb.mxu3 %v6378_v16  ;;  %2627 = vmatpush.bf16.msra.mxu2 %v6402_v17  ;;  %v6228_v16 = vld [vmem:[#allocation11 + $0x58] sm:$0xff] }
 0x487   : > { %v7221_v2 = vpop.f32.mrf.mxu0  ;;  %v6236_v17 = vld [vmem:[#allocation11 + $0x98] sm:$0xff] }
 0x488   : > { %v7223_v37 = vpop.f32.mrf.mxu1  ;;  %2602 = vmatpush.bf16.msra.mxu0 %v6385_v3  ;;  %v6222_v3 = vld [vmem:[#allocation11 + $0x28] sm:$0xff] }
 0x489   : > { %2615 = vmatpush.bf16.msra.mxu1 %v6393_v15  ;;  %v6246_v15 = vld [vmem:[#allocation11 + $0xe8] sm:$0xff] }
 0x48a   : > { %2589 = vmatpush.bf16.msrb.mxu3 %v6377_v20  ;;  %2628 = vmatpush.bf16.msra.mxu2 %v6401_v21  ;;  %v6227_v20 = vld [vmem:[#allocation11 + $0x50] sm:$0xff]  ;;  %v1551_v21 = vperm.slane %v7237_v28, 5 }
 0x48d   : > { %v7225_v9 = vpop.f32.mrf.mxu3 }
 0x48e   : > { %v7227_v10 = vpop.f32.mrf.mxu2 }
 0x48f   : > { %v1240_v14 = vpop.f32.mrf.mxu0 }
 0x490   : > { %v1253_v34 = vpop.f32.mrf.mxu1  ;;  %v6229_v14 = vld [vmem:[#allocation11 + $0x60] sm:$0xff] }
 0x491   : > { %v6237_v34 = vld [vmem:[#allocation11 + $0xa0] sm:$0xff] }
 0x495   : > { %v1227_v18 = vpop.f32.mrf.mxu3 }
 0x496   : > { %v1266_v19 = vpop.f32.mrf.mxu2  ;;  %v6221_v18 = vld [vmem:[#allocation11 + $0x20] sm:$0xff] }
 0x497   : > { %v7229_v22 = vpop.f32.mrf.mxu0  ;;  %v6245_v19 = vld [vmem:[#allocation11 + $0xe0] sm:$0xff] }
 0x498   : > { %v7231_v23 = vpop.f32.mrf.mxu1 }
 0x49d   : > { %v7233_v24 = vpop.f32.mrf.mxu3 }
 0x49e   : > { %v7235_v25 = vpop.f32.mrf.mxu2 }
 0x49f   : > { %v1292_v26 = vpop.f32.mrf.mxu0 }
 0x4a0   : > { %v1305_v27 = vpop.f32.mrf.mxu1  ;;  %v6235_v26 = vld [vmem:[#allocation11 + $0x90] sm:$0xff] }
 0x4a1   : > { %v1552_v27 = vperm.slane %v7237_v28, 6 }
 0x4a5   : > { %v1279_v29 = vpop.f32.mrf.mxu3 }
 0x4a6   : > { %v1318_v30 = vpop.f32.mrf.mxu2  ;;  %v6220_v29 = vld [vmem:[#allocation11 + $0x18] sm:$0xff] }
 0x4a7   : > { %v6244_v30 = vld [vmem:[#allocation11 + $0xd8] sm:$0xff] }
 0x4a8   : > { %v1904_v33 = vpop.f32.mrf.mxu0 }
 0x4a9   : > { %v1905_v35 = vadd.f32 %v1904_v33, %v1547_v31 }
 0x4ab   : > { %v1917_v36 = vpop.f32.mrf.mxu1  ;;  %vm1987_vm6 = vcmp.ge.f32.partialorder %v1905_v35, 0.0  ;;  %v1995_v39 = vmul.f32 0.01, %v1905_v35 }
 0x4ac   : > { %v1918_v38 = vadd.f32 %v1917_v36, %v1548_v32  ;;  %v6226_v32 = vld [vmem:[#allocation11 + $0x48] sm:$0xff] }
 0x4ad   : > { %v2003_v43 = vsel %vm1987_vm6, %v1905_v35, %v1995_v39  ;;  %v6234_v36 = vld [vmem:[#allocation11 + $0x88] sm:$0xff]  ;;  %v6219_v39 = vld [vmem:[#allocation11 + $0x10] sm:$0xff] }
 0x4ae   : > { %vm1988_vm7 = vcmp.ge.f32.partialorder %v1918_v38, 0.0  ;;  %v1996_v41 = vmul.f32 0.01, %v1918_v38  ;;  %v2011_v45 = vpack.c.bf16 %v2003_v43, %v2003_v43  ;;  %v1891_v47 = vpop.f32.mrf.mxu3  ;;  %v7246_v43 = vld [vmem:[#allocation10] sm:$0xff] }
 0x4af   : > { %v1892_v50 = vadd.f32 %v1891_v47, %v1546_v40  ;;  %v6225_v47 = vld [vmem:[#allocation11 + $0x40] sm:$0xff] }
 0x4b0   : > { %v2004_v46 = vsel %vm1988_vm7, %v1918_v38, %v1996_v41  ;;  %v1906_v53 = vpop.f32.mrf.mxu0  ;;  %2551 = vmatmul.bf16.vlgmr.msrb.gmra.mxu0 %v2011_v45  ;;  %v1550_v41 = vperm.slane %v7237_v28, 4  ;;  %v1553_v45 = vperm.slane %v7237_v28, 7  ;;  %v6242_v28 = vld [vmem:[#allocation11 + $0xc8] sm:$0xff] }
 0x4b1   : > { %v2012_v49 = vpack.c.bf16 %v2004_v46, %v2004_v46  ;;  %v1930_v51 = vpop.f32.mrf.mxu2  ;;  %vm1986_vm8 = vcmp.ge.f32.partialorder %v1892_v50, 0.0  ;;  %v1994_v54 = vmul.f32 0.01, %v1892_v50  ;;  %3031 = vmatpush.bf16.msrb.mxu0 %v6232_v44  ;;  %v881_v53 = vperm.slane %v7246_v43, 1 }
 0x4b2   : > { %v1931_v52 = vadd.f32 %v1930_v51, %v1549_v42  ;;  %v6243_v42 = vld [vmem:[#allocation11 + $0xd0] sm:$0xff]  ;;  %v6233_v51 = vld [vmem:[#allocation11 + $0x80] sm:$0xff] }
 0x4b3   : > { %v1919_v55 = vpop.f32.mrf.mxu1  ;;  %2564 = vmatmul.bf16.vlgmr.msrb.gmra.mxu1 %v2012_v49  ;;  %v2002_v59 = vsel %vm1986_vm8, %v1892_v50, %v1994_v54 }
 0x4b4   : > { %vm1989_vm9 = vcmp.ge.f32.partialorder %v1931_v52, 0.0  ;;  %v1997_v57 = vmul.f32 0.01, %v1931_v52  ;;  %3044 = vmatpush.bf16.msrb.mxu1 %v6240_v48  ;;  %v2010_v62 = vpack.c.bf16 %v2002_v59, %v2002_v59 }
 0x4b5   : > { %3032 = vmatpush.bf16.msrb.mxu0 %v6231_v56 }
 0x4b6   : > { %v2005_v63 = vsel %vm1989_vm9, %v1931_v52, %v1997_v57  ;;  %v1893_v5 = vpop.f32.mrf.mxu3  ;;  %2538 = vmatmul.bf16.vlgmr.msra.gmra.mxu3 %v2010_v62  ;;  %v6264_v52 = vld [vmem:[#allocation11 + $0x178] sm:$0xff]  ;;  %v882_v62 = vperm.slane %v7246_v43, 2 }
 0x4b7   : > { %v2013_v1 = vpack.c.bf16 %v2005_v63, %v2005_v63  ;;  %3018 = vmatpush.bf16.msra.mxu3 %v6224_v61  ;;  %v6272_v57 = vld [vmem:[#allocation11 + $0x1b8] sm:$0xff]  ;;  %v1239_v5 = vadd.f32 %v7221_v2, %v881_v53 }
 0x4b8   : > { %3045 = vmatpush.bf16.msrb.mxu1 %v6239_v58  ;;  %v6218_v58 = vld [vmem:[#allocation11 + $0x8] sm:$0xff] }
 0x4b9   : > { %v1932_v8 = vpop.f32.mrf.mxu2  ;;  %2577 = vmatmul.bf16.vlgmr.msrb.gmra.mxu2 %v2013_v1  ;;  %3033 = vmatpush.bf16.msrb.mxu0 %v6230_v4  ;;  %v6263_v4 = vld [vmem:[#allocation11 + $0x170] sm:$0xff]  ;;  %vm1321_vm14 = vcmp.ge.f32.partialorder %v1239_v5, 0.0 }
 0x4ba   : > { %3057 = vmatpush.bf16.msrb.mxu2 %v6248_v0  ;;  %v6271_v8 = vld [vmem:[#allocation11 + $0x1b0] sm:$0xff] }
 0x4bb   : > { %3019 = vmatpush.bf16.msra.mxu3 %v6223_v12 }
 0x4bc   : > { %3046 = vmatpush.bf16.msrb.mxu1 %v6238_v6 }
 0x4bd   : > { %3034 = vmatpush.bf16.msrb.mxu0 %v6229_v14  ;;  %v6217_v14 = vld [vmem:[#allocation11] sm:$0xff] }
 0x4be   : > { %3058 = vmatpush.bf16.msrb.mxu2 %v6247_v13 }
 0x4bf   : > { %3020 = vmatpush.bf16.msra.mxu3 %v6222_v3  ;;  %v1252_v3 = vadd.f32 %v7223_v37, %v882_v62  ;;  %v6258_v62 = vld [vmem:[#allocation11 + $0x148] sm:$0xff] }
 0x4c0   : > { %3047 = vmatpush.bf16.msrb.mxu1 %v6237_v34  ;;  %v6241_v34 = vld [vmem:[#allocation11 + $0xc0] sm:$0xff] }
 0x4c1   : > { %3035 = vmatpush.bf16.msrb.mxu0 %v6228_v16  ;;  %v1330_v37 = vmul.f32 0.01, %v1252_v3  ;;  %vm1322_vm15 = vcmp.ge.f32.partialorder %v1252_v3, 0.0 }
 0x4c2   : > { %3059 = vmatpush.bf16.msrb.mxu2 %v6246_v15  ;;  %v880_v15 = vperm.slane %v7246_v43, 0 }
 0x4c3   : > { %3021 = vmatpush.bf16.msra.mxu3 %v6221_v18  ;;  %v6280_v18 = vld [vmem:[#allocation11 + $0x1f8] sm:$0xff] }
 0x4c4   : > { %3048 = vmatpush.bf16.msrb.mxu1 %v6236_v17  ;;  %v6256_v17 = vld [vmem:[#allocation11 + $0x138] sm:$0xff] }
 0x4c5   : > { %3036 = vmatpush.bf16.msrb.mxu0 %v6227_v20  ;;  %v6262_v20 = vld [vmem:[#allocation11 + $0x168] sm:$0xff] }
 0x4c6   : > { %3060 = vmatpush.bf16.msrb.mxu2 %v6245_v19  ;;  %v883_v19 = vperm.slane %v7246_v43, 3 }
 0x4c7   : > { %3022 = vmatpush.bf16.msra.mxu3 %v6220_v29  ;;  %v1226_v29 = vadd.f32 %v7225_v9, %v880_v15  ;;  %v6250_v15 = vld [vmem:[#allocation11 + $0x108] sm:$0xff] }
 0x4c8   : > { %v1956_v31 = vpop.f32.mrf.mxu0  ;;  %3049 = vmatpush.bf16.msrb.mxu1 %v6235_v26 }
 0x4c9   : > { %v1957_v33 = vadd.f32 %v1956_v31, %v1551_v21  ;;  %v1969_v35 = vpop.f32.mrf.mxu1  ;;  %3037 = vmatpush.bf16.msrb.mxu0 %v6226_v32  ;;  %v1329_v21 = vmul.f32 0.01, %v1239_v5  ;;  %v6279_v31 = vld [vmem:[#allocation11 + $0x1f0] sm:$0xff]  ;;  %v1265_v32 = vadd.f32 %v7227_v10, %v883_v19  ;;  %vm1320_vm0 = vcmp.ge.f32.partialorder %v1226_v29, 0.0  ;;  %v6274_v19 = vld [vmem:[#allocation11 + $0x1c8] sm:$0xff] }
 0x4ca   : > { %v1970_v38 = vadd.f32 %v1969_v35, %v1552_v27  ;;  %3061 = vmatpush.bf16.msrb.mxu2 %v6244_v30  ;;  %v6270_v27 = vld [vmem:[#allocation11 + $0x1a8] sm:$0xff]  ;;  %v6255_v30 = vld [vmem:[#allocation11 + $0x130] sm:$0xff]  ;;  %v886_v10 = vperm.slane %v7246_v43, 6 }
 0x4cb   : > { %vm1991_vm10 = vcmp.ge.f32.partialorder %v1957_v33, 0.0  ;;  %v1999_v40 = vmul.f32 0.01, %v1957_v33  ;;  %3023 = vmatpush.bf16.msra.mxu3 %v6219_v39  ;;  %v1337_v35 = vsel %vm1321_vm14, %v1239_v5, %v1329_v21  ;;  %v1328_v39 = vmul.f32 0.01, %v1226_v29 }
 0x4cc   : > { %vm1992_vm11 = vcmp.ge.f32.partialorder %v1970_v38, 0.0  ;;  %v2000_v44 = vmul.f32 0.01, %v1970_v38  ;;  %3050 = vmatpush.bf16.msrb.mxu1 %v6234_v36  ;;  %v6269_v36 = vld [vmem:[#allocation11 + $0x1a0] sm:$0xff]  ;;  %v1331_v9 = vmul.f32 0.01, %v1265_v32 }
 0x4cd   : > { %v2007_v46 = vsel %vm1991_vm10, %v1957_v33, %v1999_v40  ;;  %3038 = vmatpush.bf16.msrb.mxu0 %v6225_v47  ;;  %v6261_v33 = vld [vmem:[#allocation11 + $0x160] sm:$0xff]  ;;  %v6254_v40 = vld [vmem:[#allocation11 + $0x128] sm:$0xff]  ;;  %vm1323_vm1 = vcmp.ge.f32.partialorder %v1265_v32, 0.0 }
 0x4ce   : > { %v2015_v48 = vpack.c.bf16 %v2007_v46, %v2007_v46  ;;  %v2008_v49 = vsel %vm1992_vm11, %v1970_v38, %v2000_v44  ;;  %v1943_v50 = vpop.f32.mrf.mxu3  ;;  %3062 = vmatpush.bf16.msrb.mxu2 %v6243_v42  ;;  %v1338_v38 = vsel %vm1322_vm15, %v1252_v3, %v1330_v37  ;;  %v1345_v42 = vpack.c.bf16 %v1337_v35, %v1337_v35  ;;  %v6260_v44 = vld [vmem:[#allocation11 + $0x158] sm:$0xff]  ;;  %v6469_v37 = vld [vmem:[#allocation8 + $0x5dc] sm:$0xf0]  ;;  %v6449_v35 = vld [vmem:[#allocation8 + $0x404] sm:$0xf] }
 0x4cf   : > { %v2016_v54 = vpack.c.bf16 %v2008_v49, %v2008_v49  ;;  %v1944_v55 = vadd.f32 %v1943_v50, %v1550_v41  ;;  %3024 = vmatpush.bf16.msra.mxu3 %v6218_v58  ;;  %v6278_v41 = vld [vmem:[#allocation11 + $0x1e8] sm:$0xff]  ;;  %v6268_v46 = vld [vmem:[#allocation11 + $0x198] sm:$0xff]  ;;  %v1346_v47 = vpack.c.bf16 %v1338_v38, %v1338_v38  ;;  %v6253_v49 = vld [vmem:[#allocation11 + $0x120] sm:$0xff]  ;;  %v884_v58 = vperm.slane %v7246_v43, 4 }
 0x4d0   : > { %v1982_v56 = vpop.f32.mrf.mxu2  ;;  %v1958_v61 = vpop.f32.mrf.mxu0  ;;  %2603 = vmatmul.bf16.vlgmr.msra.gmra.mxu0 %v2015_v48  ;;  %3051 = vmatpush.bf16.msrb.mxu1 %v6233_v51  ;;  %v1336_v48 = vsel %vm1320_vm0, %v1226_v29, %v1328_v39  ;;  %v6277_v50 = vld [vmem:[#allocation11 + $0x1e0] sm:$0xff]  ;;  %v1339_v51 = vsel %vm1323_vm1, %v1265_v32, %v1331_v9  ;;  %v6466_v29 = vld [vmem:[#allocation8 + $0x58c] sm:$0xf]  ;;  %v5783_v9 = vld [vmem:[#allocation8 + $0x408] sm:$0xf] }
 0x4d1   : > { %v1983_v59 = vadd.f32 %v1982_v56, %v1553_v45  ;;  %vm1990_vm12 = vcmp.ge.f32.partialorder %v1944_v55, 0.0  ;;  %v1998_v63 = vmul.f32 0.01, %v1944_v55  ;;  %v1971_v0 = vpop.f32.mrf.mxu1  ;;  %2616 = vmatmul.bf16.vlgmr.msra.gmra.mxu1 %v2016_v54  ;;  %3083 = vmatpush.bf16.msra.mxu0 %v6264_v52  ;;  %v885_v45 = vperm.slane %v7246_v43, 5  ;;  %v6259_v52 = vld [vmem:[#allocation11 + $0x150] sm:$0xff]  ;;  %v6276_v61 = vld [vmem:[#allocation11 + $0x1d8] sm:$0xff] }
 0x4d2   : > { %3063 = vmatpush.bf16.msrb.mxu2 %v6242_v28  ;;  %v1304_v54 = vadd.f32 %v7231_v23, %v886_v10  ;;  %v1344_v56 = vpack.c.bf16 %v1336_v48, %v1336_v48  ;;  %v887_v28 = vperm.slane %v7246_v43, 7  ;;  %v6251_v23 = vld [vmem:[#allocation11 + $0x110] sm:$0xff]  ;;  %v1278_v5 = vadd.f32 %v7233_v24, %v884_v58  ;;  %v6249_v38 = vld [vmem:[#allocation11 + $0x100] sm:$0xff] }
 0x4d3   : > { %vm1993_vm13 = vcmp.ge.f32.partialorder %v1983_v59, 0.0  ;;  %v2001_v1 = vmul.f32 0.01, %v1983_v59  ;;  %v2006_v6 = vsel %vm1990_vm12, %v1944_v55, %v1998_v63  ;;  %3025 = vmatpush.bf16.msra.mxu3 %v6217_v14  ;;  %v1291_v53 = vadd.f32 %v7229_v22, %v885_v45  ;;  %v6267_v55 = vld [vmem:[#allocation11 + $0x190] sm:$0xff]  ;;  %v6266_v22 = vld [vmem:[#allocation11 + $0x188] sm:$0xff]  ;;  %v6265_v14 = vld [vmem:[#allocation11 + $0x180] sm:$0xff] }
 0x4d4   : > { %3096 = vmatpush.bf16.msra.mxu1 %v6272_v57  ;;  %v2014_v12 = vpack.c.bf16 %v2006_v6, %v2006_v6  ;;  %v1347_v57 = vpack.c.bf16 %v1339_v51, %v1339_v51  ;;  %v1334_v0 = vmul.f32 0.01, %v1304_v54  ;;  %v6275_v6 = vld [vmem:[#allocation11 + $0x1d0] sm:$0xff]  ;;  %vm1326_vm3 = vcmp.ge.f32.partialorder %v1304_v54, 0.0  ;;  %v6273_v39 = vld [vmem:[#allocation11 + $0x1c0] sm:$0xff] }
 0x4d5   : > { %v2009_v13 = vsel %vm1993_vm13, %v1983_v59, %v2001_v1  ;;  %3084 = vmatpush.bf16.msra.mxu0 %v6263_v4  ;;  %v6252_v59 = vld [vmem:[#allocation11 + $0x118] sm:$0xff]  ;;  %v1333_v63 = vmul.f32 0.01, %v1291_v53  ;;  %v6465_v1 = vld [vmem:[#allocation8 + $0x584] sm:$0xf]  ;;  %vm1325_vm2 = vcmp.ge.f32.partialorder %v1291_v53, 0.0  ;;  %v1317_v43 = vadd.f32 %v7235_v25, %v887_v28 }
 0x4d6   : > { %v2017_v16 = vpack.c.bf16 %v2009_v13, %v2009_v13  ;;  %v1945_v2 = vpop.f32.mrf.mxu3  ;;  %2590 = vmatmul.bf16.vlgmr.msrb.gmra.mxu3 %v2014_v12  ;;  %3064 = vmatpush.bf16.msrb.mxu2 %v6241_v34  ;;  %v5841_v4 = vld [vmem:[#allocation8 + $0x5e0] sm:$0xf0]  ;;  %v6470_v12 = vld [vmem:[#allocation8 + $0x5e4] sm:$0xf0]  ;;  %v6257_v13 = vld [vmem:[#allocation11 + $0x140] sm:$0xff]  ;;  %v1342_v24 = vsel %vm1326_vm3, %v1304_v54, %v1334_v0  ;;  %vm1324_vm4 = vcmp.ge.f32.partialorder %v1278_v5, 0.0 }
 0x4d7   : > { %3070 = vmatpush.bf16.msrb.mxu3 %v6256_v17  ;;  %v5844_v34 = vor.u32 %v6465_v1, %v5841_v4  ;;  %v5809_v17 = vld [vmem:[#allocation8 + $0x520] sm:$0xf0]  ;;  %v5815_v2 = vld [vmem:[#allocation8 + $0x4c8] sm:$0xf]  ;;  %v1332_v21 = vmul.f32 0.01, %v1278_v5  ;;  %v1350_v32 = vpack.c.bf16 %v1342_v24, %v1342_v24 }
 0x4d8   : > { %3097 = vmatpush.bf16.msra.mxu1 %v6271_v8  ;;  %v1984_v26 = vpop.f32.mrf.mxu2  ;;  %2629 = vmatmul.bf16.vlgmr.msra.gmra.mxu2 %v2017_v16  ;;  %v5847_v8 = vld [vmem:[#allocation8 + $0x588] sm:$0xf]  ;;  %v6457_v16 = vld [vmem:[#allocation8 + $0x4c4] sm:$0xf]  ;;  %v5839_v25 = vld [vmem:[#allocation8 + $0x580] sm:$0xf] }
 0x4d9   : > { %3085 = vmatpush.bf16.msra.mxu0 %v6262_v20  ;;  %v5848_v3 = vor.u32 %v6470_v12, %v5847_v8  ;;  %v6462_v20 = vld [vmem:[#allocation8 + $0x524] sm:$0xf0]  ;;  %v1335_v26 = vmul.f32 0.01, %v1317_v43  ;;  %vm1327_vm5 = vcmp.ge.f32.partialorder %v1317_v43, 0.0 }
 0x4da   : > { %3109 = vmatpush.bf16.msra.mxu2 %v6280_v18  ;;  %v1341_v18 = vsel %vm1325_vm2, %v1291_v53, %v1333_v63  ;;  %v5807_v45 = vld [vmem:[#allocation8 + $0x4c0] sm:$0xf]  ;;  %v6458_v48 = vld [vmem:[#allocation8 + $0x4cc] sm:$0xf]  ;;  %v5745_v51 = vld [vmem:[#allocation8 + $0x3a0] sm:$0xf0] }
 0x4db   : > { %3071 = vmatpush.bf16.msrb.mxu3 %v6255_v30  ;;  %v5849_v30 = vld [vmem:[#allocation8 + $0x5e8] sm:$0xf0]  ;;  %v1343_v10 = vsel %vm1327_vm5, %v1317_v43, %v1335_v26  ;;  %v6446_v58 = vld [vmem:[#allocation8 + $0x3a4] sm:$0xf0]  ;;  %v6453_v28 = vld [vmem:[#allocation8 + $0x45c] sm:$0xf0] }
 0x4dc   : > { %3098 = vmatpush.bf16.msra.mxu1 %v6270_v27  ;;  %v5812_v27 = vor.u32 %v6457_v16, %v5809_v17  ;;  %v1351_v54 = vpack.c.bf16 %v1343_v10, %v1343_v10  ;;  %v5785_v63 = vld [vmem:[#allocation8 + $0x468] sm:$0xf0]  ;;  %v6433_v0 = vld [vmem:[#allocation8 + $0x284] sm:$0xf]  ;;  %v5743_v8 = vld [vmem:[#allocation8 + $0x340] sm:$0xf] }
 0x4dd   : > { %3086 = vmatpush.bf16.msra.mxu0 %v6261_v33  ;;  %v5816_v33 = vor.u32 %v6462_v20, %v5815_v2  ;;  %v6445_v43 = vld [vmem:[#allocation8 + $0x39c] sm:$0xf0]  ;;  %v6430_v24 = vld [vmem:[#allocation8 + $0x224] sm:$0xf0]  ;;  %v5721_v26 = vld [vmem:[#allocation8 + $0x2e8] sm:$0xf0] }
 0x4de   : > { %3110 = vmatpush.bf16.msra.mxu2 %v6279_v31  ;;  %v1349_v31 = vpack.c.bf16 %v1341_v18, %v1341_v18  ;;  %v5744_v16 = vor.u32 %v6445_v43, %v5743_v8  ;;  %v5687_v18 = vld [vmem:[#allocation8 + $0x1c8] sm:$0xf]  ;;  %v6437_v20 = vld [vmem:[#allocation8 + $0x2dc] sm:$0xf0]  ;;  %v6468_v8 = vld [vmem:[#allocation8 + $0x59c] sm:$0xf] }
 0x4df   : > { %3072 = vmatpush.bf16.msrb.mxu3 %v6254_v40  ;;  %v1340_v40 = vsel %vm1324_vm4, %v1278_v5, %v1332_v21  ;;  %v5719_v5 = vld [vmem:[#allocation8 + $0x288] sm:$0xf]  ;;  %v6434_v21 = vld [vmem:[#allocation8 + $0x28c] sm:$0xf]  ;;  %v6451_v43 = vld [vmem:[#allocation8 + $0x414] sm:$0xf] }
 0x4e0   : > { %3099 = vmatpush.bf16.msra.mxu1 %v6269_v36  ;;  %3039 = vmatmul.bf16.vlgmr.msrb.gmra.mxu0 %v1345_v42  ;;  %v5777_v36 = vld [vmem:[#allocation8 + $0x460] sm:$0xf0]  ;;  %v5852_v42 = vor.u32 %v6466_v29, %v5849_v30  ;;  %v5724_v30 = vor.u32 %v6434_v21, %v5721_v26  ;;  %v5833_v21 = vld [vmem:[#allocation8 + $0x538] sm:$0xf0]  ;;  %v6443_v26 = vld [vmem:[#allocation8 + $0x354] sm:$0xf] }
 0x4e1   : > { %3052 = vmatmul.bf16.vlgmr.msrb.gmra.mxu1 %v1346_v47  ;;  %3087 = vmatpush.bf16.msra.mxu0 %v6260_v44  ;;  %v6454_v44 = vld [vmem:[#allocation8 + $0x464] sm:$0xf0]  ;;  %v6461_v47 = vld [vmem:[#allocation8 + $0x51c] sm:$0xf0] }
 0x4e2   : > { %3111 = vmatpush.bf16.msra.mxu2 %v6278_v41  ;;  %v5840_v41 = vor.u32 %v6469_v37, %v5839_v25  ;;  %v5784_v53 = vor.u32 %v6454_v44, %v5783_v9  ;;  %v6417_v25 = vld [vmem:[#allocation8 + $0x104] sm:$0xf]  ;;  %v5688_v37 = vor.u32 %v6430_v24, %v5687_v18  ;;  %v6467_v9 = vld [vmem:[#allocation8 + $0x594] sm:$0xf] }
 0x4e3   : > { %3073 = vmatpush.bf16.msrb.mxu3 %v6253_v49  ;;  %v5817_v49 = vld [vmem:[#allocation8 + $0x528] sm:$0xf0]  ;;  %v5857_v44 = vld [vmem:[#allocation8 + $0x5f0] sm:$0xf0] }
 0x4e4   : > { %3100 = vmatpush.bf16.msra.mxu1 %v6268_v46  ;;  %v5780_v46 = vor.u32 %v6449_v35, %v5777_v36  ;;  %v6429_v36 = vld [vmem:[#allocation8 + $0x21c] sm:$0xf0] }
 0x4e5   : > { %3088 = vmatpush.bf16.msra.mxu0 %v6259_v52  ;;  %v1348_v52 = vpack.c.bf16 %v1340_v40, %v1340_v40  ;;  %v6409_v40 = vld [vmem:[#allocation8 + $0x44] sm:$0xf] }
 0x4e6   : > { %3112 = vmatpush.bf16.msra.mxu2 %v6277_v50  ;;  %3026 = vmatmul.bf16.vlgmr.msra.gmra.mxu3 %v1344_v56  ;;  %v6441_v50 = vld [vmem:[#allocation8 + $0x344] sm:$0xf]  ;;  %v5820_v56 = vor.u32 %v6458_v48, %v5817_v49  ;;  %v5863_v48 = vld [vmem:[#allocation8 + $0x598] sm:$0xf] }
 0x4e7   : > { %3074 = vmatpush.bf16.msrb.mxu3 %v6252_v59  ;;  %v5775_v59 = vld [vmem:[#allocation8 + $0x400] sm:$0xf] }
 0x4e8   : > { %3101 = vmatpush.bf16.msra.mxu1 %v6267_v55  ;;  %3065 = vmatmul.bf16.vlgmr.msrb.gmra.mxu2 %v1347_v57  ;;  %v5808_v55 = vor.u32 %v6461_v47, %v5807_v45  ;;  %v5751_v57 = vld [vmem:[#allocation8 + $0x348] sm:$0xf]  ;;  %v5776_v1 = vor.u32 %v6453_v28, %v5775_v59  ;;  %v5831_v28 = vld [vmem:[#allocation8 + $0x4d8] sm:$0xf] }
 0x4e9   : > { %3089 = vmatpush.bf16.msra.mxu0 %v6258_v62  ;;  %v6450_v62 = vld [vmem:[#allocation8 + $0x40c] sm:$0xf]  ;;  %v6414_v47 = vld [vmem:[#allocation8 + $0xa4] sm:$0xf0] }
 0x4ea   : > { %3113 = vmatpush.bf16.msra.mxu2 %v6276_v61  ;;  %v5748_v61 = vor.u32 %v6441_v50, %v5745_v51  ;;  %v5788_v4 = vor.u32 %v6450_v62, %v5785_v63  ;;  %v6472_v50 = vld [vmem:[#allocation8 + $0x5f4] sm:$0xf0]  ;;  %v5647_v51 = vld [vmem:[#allocation8 + $0x100] sm:$0xf] }
 0x4eb   : > { %3075 = vmatpush.bf16.msrb.mxu3 %v6251_v23  ;;  %v5752_v23 = vor.u32 %v6446_v58, %v5751_v57  ;;  %v6459_v57 = vld [vmem:[#allocation8 + $0x4d4] sm:$0xf]  ;;  %v5864_v59 = vor.u32 %v6472_v50, %v5863_v48  ;;  %v6464_v62 = vld [vmem:[#allocation8 + $0x534] sm:$0xf0]  ;;  %v5615_v63 = vld [vmem:[#allocation8 + $0x40] sm:$0xf] }
 0x4ec   : > { %3102 = vmatpush.bf16.msra.mxu1 %v6266_v22  ;;  %v5713_v22 = vld [vmem:[#allocation8 + $0x2e0] sm:$0xf0]  ;;  %v5825_v58 = vld [vmem:[#allocation8 + $0x530] sm:$0xf0]  ;;  %v6444_v48 = vld [vmem:[#allocation8 + $0x35c] sm:$0xf] }
 0x4ed   : > { %3090 = vmatpush.bf16.msra.mxu0 %v6257_v13  ;;  %v5716_v12 = vor.u32 %v6433_v0, %v5713_v22  ;;  %v6442_v13 = vld [vmem:[#allocation8 + $0x34c] sm:$0xf]  ;;  %v6413_v22 = vld [vmem:[#allocation8 + $0x9c] sm:$0xf0]  ;;  %v6427_v50 = vld [vmem:[#allocation8 + $0x1d4] sm:$0xf] }
 0x4ee   : > { %3114 = vmatpush.bf16.msra.mxu2 %v6275_v6  ;;  %v6438_v6 = vld [vmem:[#allocation8 + $0x2e4] sm:$0xf0] }
 0x4ef   : > { %3076 = vmatpush.bf16.msrb.mxu3 %v6250_v15  ;;  %v5720_v15 = vor.u32 %v6438_v6, %v5719_v5  ;;  %v5855_v5 = vld [vmem:[#allocation8 + $0x590] sm:$0xf] }
 0x4f0   : > { %3103 = vmatpush.bf16.msra.mxu1 %v6265_v14  ;;  %3091 = vmatmul.bf16.vlgmr.msra.gmra.mxu0 %v1349_v31  ;;  %v5753_v14 = vld [vmem:[#allocation8 + $0x3a8] sm:$0xf0]  ;;  %v5655_v31 = vld [vmem:[#allocation8 + $0x108] sm:$0xf]  ;;  %v6471_v6 = vld [vmem:[#allocation8 + $0x5ec] sm:$0xf0] }
 0x4f1   : > { %3537 = vmatpush.bf16.msrb.mxu0 %v5844_v34  ;;  %v6425_v34 = vld [vmem:[#allocation8 + $0x1c4] sm:$0xf]  ;;  %v5756_v17 = vor.u32 %v6442_v13, %v5753_v14  ;;  %v5793_v13 = vld [vmem:[#allocation8 + $0x470] sm:$0xf0]  ;;  %v5832_v14 = vor.u32 %v6464_v62, %v5831_v28  ;;  %v5737_v28 = vld [vmem:[#allocation8 + $0x2f8] sm:$0xf0] }
 0x4f2   : > { %3115 = vmatpush.bf16.msra.mxu2 %v6274_v19  ;;  %v5711_v19 = vld [vmem:[#allocation8 + $0x280] sm:$0xf]  ;;  %v5796_v24 = vor.u32 %v6451_v43, %v5793_v13  ;;  %v6419_v62 = vld [vmem:[#allocation8 + $0x114] sm:$0xf]  ;;  %v5705_v43 = vld [vmem:[#allocation8 + $0x238] sm:$0xf0] }
 0x4f3   : > { %3104 = vmatmul.bf16.vlgmr.msra.gmra.mxu1 %v1350_v32  ;;  %3077 = vmatpush.bf16.msrb.mxu3 %v6249_v38  ;;  %v5712_v29 = vor.u32 %v6437_v20, %v5711_v19  ;;  %v6422_v32 = vld [vmem:[#allocation8 + $0x164] sm:$0xf0]  ;;  %v6426_v38 = vld [vmem:[#allocation8 + $0x1cc] sm:$0xf]  ;;  %v5823_v19 = vld [vmem:[#allocation8 + $0x4d0] sm:$0xf] }
 0x4f4   : > { %3550 = vmatpush.bf16.msrb.mxu1 %v5848_v3  ;;  %v5681_v3 = vld [vmem:[#allocation8 + $0x220] sm:$0xf0]  ;;  %v6460_v20 = vld [vmem:[#allocation8 + $0x4dc] sm:$0xf]  ;;  %v6411_v13 = vld [vmem:[#allocation8 + $0x54] sm:$0xf] }
 0x4f5   : > { %3538 = vmatpush.bf16.msrb.mxu0 %v5812_v27  ;;  %v5684_v2 = vor.u32 %v6425_v34, %v5681_v3  ;;  %v5649_v27 = vld [vmem:[#allocation8 + $0x160] sm:$0xf0]  ;;  %v5616_v34 = vor.u32 %v6413_v22, %v5615_v63  ;;  %v5665_v63 = vld [vmem:[#allocation8 + $0x170] sm:$0xf0] }
 0x4f6   : > { %3116 = vmatpush.bf16.msra.mxu2 %v6273_v39  ;;  %3078 = vmatmul.bf16.vlgmr.msrb.gmra.mxu3 %v1348_v52  ;;  %v5652_v35 = vor.u32 %v6417_v25, %v5649_v27  ;;  %v5689_v39 = vld [vmem:[#allocation8 + $0x228] sm:$0xf0]  ;;  %v6421_v52 = vld [vmem:[#allocation8 + $0x15c] sm:$0xf0]  ;;  %v5761_v25 = vld [vmem:[#allocation8 + $0x3b0] sm:$0xf0] }
 0x4f7   : > { %3524 = vmatpush.bf16.msra.mxu3 %v5840_v41  ;;  %v5617_v41 = vld [vmem:[#allocation8 + $0xa0] sm:$0xf0]  ;;  %v5692_v10 = vor.u32 %v6426_v38, %v5689_v39  ;;  %v5801_v38 = vld [vmem:[#allocation8 + $0x478] sm:$0xf0]  ;;  %v6435_v39 = vld [vmem:[#allocation8 + $0x294] sm:$0xf] }
 0x4f8   : > { %3551 = vmatpush.bf16.msrb.mxu1 %v5816_v33  ;;  %v5679_v33 = vld [vmem:[#allocation8 + $0x1c0] sm:$0xf]  ;;  %v5620_v49 = vor.u32 %v6409_v40, %v5617_v41  ;;  %v5729_v40 = vld [vmem:[#allocation8 + $0x2f0] sm:$0xf0] }
 0x4f9   : > { %3539 = vmatpush.bf16.msrb.mxu0 %v5780_v46  ;;  %3117 = vmatmul.bf16.vlgmr.msra.gmra.mxu2 %v1351_v54  ;;  %v5680_v45 = vor.u32 %v6429_v36, %v5679_v33  ;;  %v5623_v46 = vld [vmem:[#allocation8 + $0x48] sm:$0xf]  ;;  %v6418_v54 = vld [vmem:[#allocation8 + $0x10c] sm:$0xf]  ;;  %v5791_v33 = vld [vmem:[#allocation8 + $0x410] sm:$0xf] }
 0x4fa   : > { %3563 = vmatpush.bf16.msrb.mxu2 %v5852_v42  ;;  %v5656_v42 = vor.u32 %v6422_v32, %v5655_v31  ;;  %v5836_v31 = vor.u32 %v6460_v20, %v5833_v21  ;;  %v5764_v32 = vor.u32 %v6443_v26, %v5761_v25  ;;  %v6452_v36 = vld [vmem:[#allocation8 + $0x41c] sm:$0xf] }
 0x4fb   : > { %3525 = vmatpush.bf16.msra.mxu3 %v5808_v55  ;;  %v5657_v55 = vld [vmem:[#allocation8 + $0x168] sm:$0xf0]  ;;  %v5673_v20 = vld [vmem:[#allocation8 + $0x178] sm:$0xf0] }
 0x4fc   : > { %3552 = vmatpush.bf16.msrb.mxu1 %v5784_v53  ;;  %v5860_v53 = vor.u32 %v6467_v9, %v5857_v44  ;;  %v5660_v0 = vor.u32 %v6418_v54, %v5657_v55  ;;  %v5735_v9 = vld [vmem:[#allocation8 + $0x298] sm:$0xf] }
 0x4fd   : > { %3540 = vmatpush.bf16.msrb.mxu0 %v5748_v61  ;;  %v5648_v61 = vor.u32 %v6421_v52, %v5647_v51  ;;  %v6440_v44 = vld [vmem:[#allocation8 + $0x2f4] sm:$0xf0]  ;;  %v5697_v51 = vld [vmem:[#allocation8 + $0x230] sm:$0xf0] }
 0x4fe   : > { %3564 = vmatpush.bf16.msrb.mxu2 %v5820_v56  ;;  %v5624_v56 = vor.u32 %v6414_v47, %v5623_v46  ;;  %v5759_v46 = vld [vmem:[#allocation8 + $0x350] sm:$0xf]  ;;  %v5736_v52 = vor.u32 %v6440_v44, %v5735_v9  ;;  %v5703_v54 = vld [vmem:[#allocation8 + $0x1d8] sm:$0xf] }
 0x4ff   : > { %3526 = vmatpush.bf16.msra.mxu3 %v5776_v1  ;;  %v5625_v1 = vld [vmem:[#allocation8 + $0xa8] sm:$0xf0]  ;;  %v6447_v47 = vld [vmem:[#allocation8 + $0x3ac] sm:$0xf0]  ;;  %v6432_v55 = vld [vmem:[#allocation8 + $0x234] sm:$0xf0] }
 0x500   : > { %3553 = vmatpush.bf16.msrb.mxu1 %v5752_v23  ;;  %v6410_v23 = vld [vmem:[#allocation8 + $0x4c] sm:$0xf] }
 0x501   : > { %3541 = vmatpush.bf16.msrb.mxu0 %v5716_v12  ;;  %v5865_v12 = vld [vmem:[#allocation8 + $0x5f8] sm:$0xf0]  ;;  %v5628_v3 = vor.u32 %v6410_v23, %v5625_v1  ;;  %v5671_v23 = vld [vmem:[#allocation8 + $0x118] sm:$0xf] }
 0x502   : > { %3565 = vmatpush.bf16.msrb.mxu2 %v5788_v4  ;;  %v5828_v4 = vor.u32 %v6459_v57, %v5825_v58  ;;  %v5868_v18 = vor.u32 %v6468_v8, %v5865_v12  ;;  %v5700_v57 = vor.u32 %v6427_v50, %v5697_v51  ;;  %v5727_v58 = vld [vmem:[#allocation8 + $0x290] sm:$0xf]  ;;  %v6424_v1 = vld [vmem:[#allocation8 + $0x174] sm:$0xf0]  ;;  %v6428_v12 = vld [vmem:[#allocation8 + $0x1dc] sm:$0xf] }
 0x503   : > { %3527 = vmatpush.bf16.msra.mxu3 %v5744_v16  ;;  %v5799_v16 = vld [vmem:[#allocation8 + $0x418] sm:$0xf]  ;;  %v6431_v8 = vld [vmem:[#allocation8 + $0x22c] sm:$0xf0]  ;;  %v6487_v51 = vld [vmem:[#allocation11 + $0x470] sm:$0xff] }
 0x504   : > { %3554 = vmatpush.bf16.msrb.mxu1 %v5720_v15  ;;  %v5856_v15 = vor.u32 %v6471_v6, %v5855_v5  ;;  %v5668_v5 = vor.u32 %v6419_v62, %v5665_v63  ;;  %v5695_v6 = vld [vmem:[#allocation8 + $0x1d0] sm:$0xf]  ;;  %v6485_v63 = vld [vmem:[#allocation11 + $0x460] sm:$0xff] }
 0x505   : > { %3542 = vmatpush.bf16.msrb.mxu0 %v5684_v2  ;;  %v6463_v2 = vld [vmem:[#allocation8 + $0x52c] sm:$0xf0] }
 0x506   : > { %3566 = vmatpush.bf16.msrb.mxu2 %v5756_v17  ;;  %v6456_v17 = vld [vmem:[#allocation8 + $0x474] sm:$0xf0]  ;;  %v6480_v62 = vld [vmem:[#allocation11 + $0x438] sm:$0xff] }
 0x507   : > { %3528 = vmatpush.bf16.msra.mxu3 %v5712_v29  ;;  %v5800_v27 = vor.u32 %v6456_v17, %v5799_v16  ;;  %v5767_v29 = vld [vmem:[#allocation8 + $0x358] sm:$0xf]  ;;  %v5708_v17 = vor.u32 %v6428_v12, %v5705_v43  ;;  %v6478_v43 = vld [vmem:[#allocation11 + $0x428] sm:$0xff] }
 0x508   : > { %3555 = vmatpush.bf16.msrb.mxu1 %v5688_v37  ;;  %v5824_v37 = vor.u32 %v6463_v2, %v5823_v19  ;;  %v6416_v16 = vld [vmem:[#allocation8 + $0xb4] sm:$0xf0]  ;;  %v6423_v19 = vld [vmem:[#allocation8 + $0x16c] sm:$0xf0]  ;;  %v6420_v2 = vld [vmem:[#allocation8 + $0x11c] sm:$0xf] }
 0x509   : > { %3543 = vmatpush.bf16.msrb.mxu0 %v5652_v35  ;;  %v6455_v35 = vld [vmem:[#allocation8 + $0x46c] sm:$0xf0]  ;;  %v5676_v25 = vor.u32 %v6420_v2, %v5673_v20  ;;  %v6490_v2 = vld [vmem:[#allocation11 + $0x488] sm:$0xff]  ;;  %v6501_v20 = vld [vmem:[#allocation11 + $0x4e0] sm:$0xff] }
 0x50a   : > { %3567 = vmatpush.bf16.msrb.mxu2 %v5724_v30  ;;  %v6448_v30 = vld [vmem:[#allocation8 + $0x3b4] sm:$0xf0] }
 0x50b   : > { %3529 = vmatpush.bf16.msra.mxu3 %v5680_v45  ;;  %v5768_v41 = vor.u32 %v6448_v30, %v5767_v29  ;;  %v5804_v45 = vor.u32 %v6452_v36, %v5801_v38  ;;  %v6412_v29 = vld [vmem:[#allocation8 + $0x5c] sm:$0xf] }
 0x50c   : > { %3556 = vmatpush.bf16.msrb.mxu1 %v5656_v42  ;;  %v5792_v42 = vor.u32 %v6455_v35, %v5791_v33  ;;  %v5641_v30 = vld [vmem:[#allocation8 + $0xb8] sm:$0xf0] }
 0x50d   : > { %3544 = vmatpush.bf16.msrb.mxu0 %v5620_v49  ;;  %v5769_v49 = vld [vmem:[#allocation8 + $0x3b8] sm:$0xf0] }
 0x50e   : > { %3568 = vmatpush.bf16.msrb.mxu2 %v5692_v10  ;;  %v5732_v10 = vor.u32 %v6435_v39, %v5729_v40 }
 0x50f   : > { %3530 = vmatpush.bf16.msra.mxu3 %v5648_v61  ;;  %v6436_v61 = vld [vmem:[#allocation8 + $0x29c] sm:$0xf] }
 0x510   : > { %3557 = vmatpush.bf16.msrb.mxu1 %v5624_v56  ;;  %3545 = vmatmul.bf16.vlgmr.msrb.gmra.mxu0 %v7203_v11  ;;  %v5772_v56 = vor.u32 %v6444_v48, %v5769_v49  ;;  %v6496_v48 = vld [vmem:[#allocation11 + $0x4b8] sm:$0xff] }
 0x511   : > { %3589 = vmatpush.bf16.msra.mxu0 %v5860_v53  ;;  %v5760_v53 = vor.u32 %v6447_v47, %v5759_v46  ;;  %v6488_v47 = vld [vmem:[#allocation11 + $0x478] sm:$0xff] }
 0x512   : > { %3569 = vmatpush.bf16.msrb.mxu2 %v5660_v0  ;;  %v5704_v0 = vor.u32 %v6432_v55, %v5703_v54 }
 0x513   : > { %3558 = vmatmul.bf16.vlgmr.msrb.gmra.mxu1 %v7203_v11  ;;  %3531 = vmatpush.bf16.msra.mxu3 %v5616_v34  ;;  %v5672_v34 = vor.u32 %v6424_v1, %v5671_v23  ;;  %v6504_v23 = vld [vmem:[#allocation11 + $0x4f8] sm:$0xff] }
 0x514   : > { %3602 = vmatpush.bf16.msra.mxu1 %v5864_v59  ;;  %v6439_v59 = vld [vmem:[#allocation8 + $0x2ec] sm:$0xf0] }
 0x515   : > { %3590 = vmatpush.bf16.msra.mxu0 %v5828_v4  ;;  %v5728_v22 = vor.u32 %v6439_v59, %v5727_v58  ;;  %v5740_v4 = vor.u32 %v6436_v61, %v5737_v28 }
 0x516   : > { %3570 = vmatpush.bf16.msrb.mxu2 %v5628_v3  ;;  %3532 = vmatmul.bf16.vlgmr.msra.gmra.mxu3 %v7203_v11  ;;  %v5696_v3 = vor.u32 %v6431_v8, %v5695_v6  ;;  %v6492_v6 = vld [vmem:[#allocation11 + $0x498] sm:$0xff]  ;;  %v6503_v8 = vld [vmem:[#allocation11 + $0x4f0] sm:$0xff] }
 0x517   : > { %3576 = vmatpush.bf16.msrb.mxu3 %v5856_v15  ;;  %v5639_v15 = vld [vmem:[#allocation8 + $0x58] sm:$0xf] }
 0x518   : > { %3603 = vmatpush.bf16.msra.mxu1 %v5832_v14  ;;  %v5633_v14 = vld [vmem:[#allocation8 + $0xb0] sm:$0xf0]  ;;  %v5640_v21 = vor.u32 %v6416_v16, %v5639_v15 }
 0x519   : > { %3591 = vmatpush.bf16.msra.mxu0 %v5796_v24  ;;  %3571 = vmatmul.bf16.vlgmr.msrb.gmra.mxu2 %v7203_v11  ;;  %v5663_v24 = vld [vmem:[#allocation8 + $0x110] sm:$0xf] }
 0x51a   : > { %3615 = vmatpush.bf16.msra.mxu2 %v5868_v18  ;;  %v5636_v18 = vor.u32 %v6411_v13, %v5633_v14  ;;  %v5664_v26 = vor.u32 %v6423_v19, %v5663_v24  ;;  %v6483_v13 = vld [vmem:[#allocation11 + $0x450] sm:$0xff]  ;;  %v6477_v24 = vld [vmem:[#allocation11 + $0x420] sm:$0xff]  ;;  %v6482_v19 = vld [vmem:[#allocation11 + $0x448] sm:$0xff] }
 0x51b   : > { %3577 = vmatpush.bf16.msrb.mxu3 %v5824_v37  ;;  %v6415_v37 = vld [vmem:[#allocation8 + $0xac] sm:$0xf0] }
 0x51c   : > { %3604 = vmatpush.bf16.msra.mxu1 %v5800_v27  ;;  %v5631_v27 = vld [vmem:[#allocation8 + $0x50] sm:$0xf] }
 0x51d   : > { %3592 = vmatpush.bf16.msra.mxu0 %v5764_v32  ;;  %v5644_v32 = vor.u32 %v6412_v29, %v5641_v30  ;;  %v6481_v29 = vld [vmem:[#allocation11 + $0x440] sm:$0xff] }
 0x51e   : > { %3616 = vmatpush.bf16.msra.mxu2 %v5836_v31  ;;  %v5632_v31 = vor.u32 %v6415_v37, %v5631_v27  ;;  %v6476_v37 = vld [vmem:[#allocation11 + $0x418] sm:$0xff]  ;;  %v6489_v30 = vld [vmem:[#allocation11 + $0x480] sm:$0xff] }
 0x51f   : > { %3578 = vmatpush.bf16.msrb.mxu3 %v5792_v42 }
 0x520   : > { %3605 = vmatpush.bf16.msra.mxu1 %v5768_v41 }
 0x521   : > { %3593 = vmatpush.bf16.msra.mxu0 %v5732_v10 }
 0x522   : > { %3617 = vmatpush.bf16.msra.mxu2 %v5804_v45 }
 0x523   : > { %3579 = vmatpush.bf16.msrb.mxu3 %v5760_v53 }
 0x524   : > { %3606 = vmatpush.bf16.msra.mxu1 %v5736_v52  ;;  %v6495_v52 = vld [vmem:[#allocation11 + $0x4b0] sm:$0xff] }
 0x525   : > { %3594 = vmatpush.bf16.msra.mxu0 %v5700_v57  ;;  %v6494_v57 = vld [vmem:[#allocation11 + $0x4a8] sm:$0xff] }
 0x526   : > { %3618 = vmatpush.bf16.msra.mxu2 %v5772_v56  ;;  %v6486_v56 = vld [vmem:[#allocation11 + $0x468] sm:$0xff] }
 0x527   : > { %3580 = vmatpush.bf16.msrb.mxu3 %v5728_v22 }
 0x528   : > { %3607 = vmatpush.bf16.msra.mxu1 %v5704_v0  ;;  %v6493_v0 = vld [vmem:[#allocation11 + $0x4a0] sm:$0xff] }
 0x529   : > { %3595 = vmatpush.bf16.msra.mxu0 %v5668_v5  ;;  %v6484_v5 = vld [vmem:[#allocation11 + $0x458] sm:$0xff] }
 0x52a   : > { %3619 = vmatpush.bf16.msra.mxu2 %v5740_v4  ;;  %v6479_v4 = vld [vmem:[#allocation11 + $0x430] sm:$0xff] }
 0x52b   : > { %3581 = vmatpush.bf16.msrb.mxu3 %v5696_v3  ;;  %v6502_v3 = vld [vmem:[#allocation11 + $0x4e8] sm:$0xff] }
 0x52c   : > { %3608 = vmatpush.bf16.msra.mxu1 %v5672_v34  ;;  %v6491_v34 = vld [vmem:[#allocation11 + $0x490] sm:$0xff] }
 0x52d   : > { %3596 = vmatpush.bf16.msra.mxu0 %v5636_v18  ;;  %v2552_v33 = vpop.f32.mrf.mxu0 }
 0x52e   : > { %3620 = vmatpush.bf16.msra.mxu2 %v5708_v17 }
 0x52f   : > { %3582 = vmatpush.bf16.msrb.mxu3 %v5664_v26 }
 0x530   : > { %3609 = vmatpush.bf16.msra.mxu1 %v5640_v21  ;;  %3597 = vmatmul.bf16.vlgmr.msra.gmra.mxu0 %v7203_v11  ;;  %v2565_v35 = vpop.f32.mrf.mxu1 }
 0x531   : > { %4185 = vmatpush.bf16.msrb.mxu0 %v6488_v47 }
 0x532   : > { %3621 = vmatpush.bf16.msra.mxu2 %v5676_v25 }
 0x533   : > { %3610 = vmatmul.bf16.vlgmr.msra.gmra.mxu1 %v7203_v11  ;;  %3583 = vmatpush.bf16.msrb.mxu3 %v5632_v31 }
 0x534   : > { %4198 = vmatpush.bf16.msrb.mxu1 %v6496_v48 }
 0x535   : > { %v2554_v36 = vpop.f32.mrf.mxu0  ;;  %4186 = vmatpush.bf16.msrb.mxu0 %v6487_v51  ;;  %v6497_v51 = vld [vmem:[#allocation11 + $0x4c0] sm:$0xff] }
 0x536   : > { %3622 = vmatpush.bf16.msra.mxu2 %v5644_v32  ;;  %3584 = vmatmul.bf16.vlgmr.msrb.gmra.mxu3 %v7203_v11  ;;  %v6500_v32 = vld [vmem:[#allocation11 + $0x4d8] sm:$0xff] }
 0x537   : > { %4172 = vmatpush.bf16.msra.mxu3 %v6480_v62 }
 0x538   : > { %v2567_v38 = vpop.f32.mrf.mxu1  ;;  %4199 = vmatpush.bf16.msrb.mxu1 %v6495_v52  ;;  %v6512_v52 = vld [vmem:[#allocation11 + $0x538] sm:$0xff] }
 0x539   : > { %3623 = vmatmul.bf16.vlgmr.msra.gmra.mxu2 %v7203_v11  ;;  %v2539_v39 = vpop.f32.mrf.mxu3  ;;  %4187 = vmatpush.bf16.msrb.mxu0 %v6486_v56  ;;  %v6475_v38 = vld [vmem:[#allocation11 + $0x410] sm:$0xff] }
 0x53a   : > { %v2553_v40 = vadd.f32 %v2552_v33, %v2539_v39  ;;  %4211 = vmatpush.bf16.msrb.mxu2 %v6504_v23  ;;  %v6520_v33 = vld [vmem:[#allocation11 + $0x578] sm:$0xff]  ;;  %v6499_v39 = vld [vmem:[#allocation11 + $0x4d0] sm:$0xff] }
 0x53b   : > { %4173 = vmatpush.bf16.msra.mxu3 %v6479_v4  ;;  %v6523_v23 = vld [vmem:[#allocation11 + $0x590] sm:$0xff]  ;;  %v7277_v4 = vld [vmem:[#allocation10 + $0x10] sm:$0xff] }
 0x53c   : > { %v2578_v41 = vpop.f32.mrf.mxu2  ;;  %v2566_v42 = vadd.f32 %v2565_v35, %v2553_v40  ;;  %4200 = vmatpush.bf16.msrb.mxu1 %v6494_v57  ;;  %v6528_v35 = vld [vmem:[#allocation11 + $0x5b8] sm:$0xff]  ;;  %v6519_v40 = vld [vmem:[#allocation11 + $0x570] sm:$0xff] }
 0x53d   : > { %4188 = vmatpush.bf16.msrb.mxu0 %v6485_v63  ;;  %v6511_v57 = vld [vmem:[#allocation11 + $0x530] sm:$0xff] }
 0x53e   : > { %v2579_v9 = vadd.f32 %v2578_v41, %v2566_v42  ;;  %4212 = vmatpush.bf16.msrb.mxu2 %v6503_v8  ;;  %v6527_v41 = vld [vmem:[#allocation11 + $0x5b0] sm:$0xff]  ;;  %v6514_v8 = vld [vmem:[#allocation11 + $0x548] sm:$0xff] }
 0x53f   : > { %4174 = vmatpush.bf16.msra.mxu3 %v6478_v43  ;;  %v3190_v43 = vperm.slane %v7277_v4, 2 }
 0x540   : > { %4201 = vmatpush.bf16.msrb.mxu1 %v6493_v0  ;;  %v6510_v0 = vld [vmem:[#allocation11 + $0x528] sm:$0xff] }
 0x541   : > { %v2541_v44 = vpop.f32.mrf.mxu3  ;;  %4189 = vmatpush.bf16.msrb.mxu0 %v6484_v5  ;;  %v3189_v5 = vperm.slane %v7277_v4, 1 }
 0x542   : > { %4213 = vmatpush.bf16.msrb.mxu2 %v6502_v3  ;;  %v6474_v44 = vld [vmem:[#allocation11 + $0x408] sm:$0xff] }
 0x543   : > { %4175 = vmatpush.bf16.msra.mxu3 %v6477_v24  ;;  %v6532_v24 = vld [vmem:[#allocation11 + $0x5d8] sm:$0xff] }
 0x544   : > { %v2580_v45 = vpop.f32.mrf.mxu2  ;;  %4202 = vmatpush.bf16.msrb.mxu1 %v6492_v6  ;;  %v6509_v6 = vld [vmem:[#allocation11 + $0x520] sm:$0xff] }
 0x545   : > { %4190 = vmatpush.bf16.msrb.mxu0 %v6483_v13  ;;  %v6498_v45 = vld [vmem:[#allocation11 + $0x4c8] sm:$0xff]  ;;  %v6533_v13 = vld [vmem:[#allocation11 + $0x5e0] sm:$0xff] }
 0x546   : > { %4214 = vmatpush.bf16.msrb.mxu2 %v6501_v20 }
 0x547   : > { %4176 = vmatpush.bf16.msra.mxu3 %v6476_v37 }
 0x548   : > { %4203 = vmatpush.bf16.msrb.mxu1 %v6491_v34 }
 0x549   : > { %4191 = vmatpush.bf16.msrb.mxu0 %v6482_v19 }
 0x54a   : > { %4215 = vmatpush.bf16.msrb.mxu2 %v6500_v32  ;;  %v6506_v32 = vld [vmem:[#allocation11 + $0x508] sm:$0xff] }
 0x54b   : > { %4177 = vmatpush.bf16.msra.mxu3 %v6475_v38 }
 0x54c   : > { %4204 = vmatpush.bf16.msrb.mxu1 %v6490_v2 }
 0x54d   : > { %v2604_v10 = vpop.f32.mrf.mxu0  ;;  %4192 = vmatpush.bf16.msrb.mxu0 %v6481_v29 }
 0x54e   : > { %v2617_v46 = vpop.f32.mrf.mxu1  ;;  %4216 = vmatpush.bf16.msrb.mxu2 %v6499_v39 }
 0x54f   : > { %4178 = vmatpush.bf16.msra.mxu3 %v6474_v44 }
 0x550   : > { %4205 = vmatpush.bf16.msrb.mxu1 %v6489_v30 }
 0x551   : > { %4237 = vmatpush.bf16.msra.mxu0 %v6520_v33  ;;  %v6530_v33 = vld [vmem:[#allocation11 + $0x5c8] sm:$0xff] }
 0x552   : > { %4217 = vmatpush.bf16.msrb.mxu2 %v6498_v45 }
 0x554   : > { %4250 = vmatpush.bf16.msra.mxu1 %v6528_v35  ;;  %v3191_v35 = vperm.slane %v7277_v4, 3 }
 0x555   : > { %v2606_v49 = vpop.f32.mrf.mxu0  ;;  %4238 = vmatpush.bf16.msra.mxu0 %v6519_v40  ;;  %v6505_v40 = vld [vmem:[#allocation11 + $0x500] sm:$0xff] }
 0x556   : > { %v2619_v50 = vpop.f32.mrf.mxu1  ;;  %4218 = vmatpush.bf16.msrb.mxu2 %v6497_v51  ;;  %v3194_v51 = vperm.slane %v7277_v4, 6 }
 0x557   : > { %v6473_v50 = vld [vmem:[#allocation11 + $0x400] sm:$0xff] }
 0x558   : > { %4251 = vmatpush.bf16.msra.mxu1 %v6527_v41  ;;  %4179 = vmatpush.bf16.msra.mxu3 %v6473_v50  ;;  %v6529_v41 = vld [vmem:[#allocation11 + $0x5c0] sm:$0xff]  ;;  %v3193_v50 = vperm.slane %v7277_v4, 5 }
 0x559   : > { %v2591_v11 = vpop.f32.mrf.mxu3 }
 0x55a   : > { %v2592_v53 = vadd.f32 %v2591_v11, %v2579_v9  ;;  %v6517_v11 = vld [vmem:[#allocation11 + $0x560] sm:$0xff] }
 0x55b   : > { %v2630_v54 = vpop.f32.mrf.mxu2 }
 0x55c   : > { %v2605_v55 = vadd.f32 %v2604_v10, %v2592_v53  ;;  %v6518_v10 = vld [vmem:[#allocation11 + $0x568] sm:$0xff]  ;;  %v6525_v53 = vld [vmem:[#allocation11 + $0x5a0] sm:$0xff]  ;;  %4224 = vmatpush.bf16.msrb.mxu3 %v6512_v52 }
 0x55d   : > { %v3040_v58 = vpop.f32.mrf.mxu0  ;;  %4239 = vmatpush.bf16.msra.mxu0 %v6518_v10 }
 0x55e   : > { %v2618_v59 = vadd.f32 %v2617_v46, %v2605_v55  ;;  %v3053_v61 = vpop.f32.mrf.mxu1  ;;  %v6526_v46 = vld [vmem:[#allocation11 + $0x5a8] sm:$0xff]  ;;  %v6536_v55 = vld [vmem:[#allocation11 + $0x5f8] sm:$0xff] }
 0x55f   : > { %4252 = vmatpush.bf16.msra.mxu1 %v6526_v46  ;;  %4263 = vmatpush.bf16.msra.mxu2 %v6536_v55 }
 0x560   : > { %v2631_v28 = vadd.f32 %v2630_v54, %v2618_v59  ;;  %v6524_v59 = vld [vmem:[#allocation11 + $0x598] sm:$0xff]  ;;  %4225 = vmatpush.bf16.msrb.mxu3 %v6511_v57 }
 0x561   : > { %v2593_v22 = vpop.f32.mrf.mxu3  ;;  %4240 = vmatpush.bf16.msra.mxu0 %v6517_v11 }
 0x562   : > { %v6515_v22 = vld [vmem:[#allocation11 + $0x550] sm:$0xff] }
 0x563   : > { %v2632_v1 = vpop.f32.mrf.mxu2  ;;  %4253 = vmatpush.bf16.msra.mxu1 %v6525_v53 }
 0x564   : > { %v6534_v1 = vld [vmem:[#allocation11 + $0x5e8] sm:$0xff]  ;;  %4226 = vmatpush.bf16.msrb.mxu3 %v6510_v0  ;;  %v3192_v0 = vperm.slane %v7277_v4, 4 }
 0x565   : > { %v3042_v12 = vpop.f32.mrf.mxu0 }
 0x566   : > { %v3055_v14 = vpop.f32.mrf.mxu1  ;;  %v6522_v12 = vld [vmem:[#allocation11 + $0x588] sm:$0xff] }
 0x567   : > { %4254 = vmatpush.bf16.msra.mxu1 %v6524_v59 }
 0x568   : > { %4227 = vmatpush.bf16.msrb.mxu3 %v6509_v6 }
 0x569   : > { %v3027_v15 = vpop.f32.mrf.mxu3 }
 0x56a   : > { %v3028_v16 = vadd.f32 %v3027_v15, %v2631_v28  ;;  %v6535_v28 = vld [vmem:[#allocation11 + $0x5f0] sm:$0xff]  ;;  %v6508_v15 = vld [vmem:[#allocation11 + $0x518] sm:$0xff] }
 0x56b   : > { %v3066_v17 = vpop.f32.mrf.mxu2  ;;  %4264 = vmatpush.bf16.msra.mxu2 %v6535_v28  ;;  %4255 = vmatpush.bf16.msra.mxu1 %v6523_v23 }
 0x56c   : > { %v3041_v18 = vadd.f32 %v3040_v58, %v3028_v16  ;;  %v6516_v58 = vld [vmem:[#allocation11 + $0x558] sm:$0xff]  ;;  %v6513_v16 = vld [vmem:[#allocation11 + $0x540] sm:$0xff]  ;;  %4228 = vmatpush.bf16.msrb.mxu3 %v6508_v15 }
 0x56d   : > { %v3092_v26 = vpop.f32.mrf.mxu0  ;;  %4241 = vmatpush.bf16.msra.mxu0 %v6516_v58 }
 0x56e   : > { %v3054_v21 = vadd.f32 %v3053_v61, %v3041_v18 }
 0x56f   : > { %4265 = vmatpush.bf16.msra.mxu2 %v6534_v1  ;;  %4256 = vmatpush.bf16.msra.mxu1 %v6522_v12 }
 0x570   : > { %v3105_v25 = vpop.f32.mrf.mxu1  ;;  %v3067_v27 = vadd.f32 %v3066_v17, %v3054_v21  ;;  %v6521_v17 = vld [vmem:[#allocation11 + $0x580] sm:$0xff]  ;;  %v6507_v21 = vld [vmem:[#allocation11 + $0x510] sm:$0xff] }
 0x571   : > { %v3029_v31 = vpop.f32.mrf.mxu3  ;;  %4242 = vmatpush.bf16.msra.mxu0 %v6515_v22  ;;  %4229 = vmatpush.bf16.msrb.mxu3 %v6507_v21  ;;  %v3195_v22 = vperm.slane %v7277_v4, 7 }
 0x572   : > { %v3188_v31 = vperm.slane %v7277_v4, 0 }
 0x573   : > { %v3068_v36 = vpop.f32.mrf.mxu2  ;;  %4266 = vmatpush.bf16.msra.mxu2 %v6533_v13  ;;  %4257 = vmatpush.bf16.msra.mxu1 %v6521_v17 }
 0x575   : > { %v3094_v42 = vpop.f32.mrf.mxu0  ;;  %4243 = vmatpush.bf16.msra.mxu0 %v6514_v8  ;;  %4230 = vmatpush.bf16.msrb.mxu3 %v6506_v32 }
 0x577   : > { %4267 = vmatpush.bf16.msra.mxu2 %v6532_v24 }
 0x578   : > { %v3107_v9 = vpop.f32.mrf.mxu1 }
 0x579   : > { %v3079_v47 = vpop.f32.mrf.mxu3  ;;  %4244 = vmatpush.bf16.msra.mxu0 %v6513_v16  ;;  %4231 = vmatpush.bf16.msrb.mxu3 %v6505_v40 }
 0x57a   : > { %v3080_v49 = vadd.f32 %v3079_v47, %v3067_v27 }
 0x57c   : > { %v3118_v48 = vpop.f32.mrf.mxu2  ;;  %v3093_v54 = vadd.f32 %v3092_v26, %v3080_v49  ;;  %v6531_v26 = vld [vmem:[#allocation11 + $0x5d0] sm:$0xff] }
 0x57d   : > { %4268 = vmatpush.bf16.msra.mxu2 %v6531_v26 }
 0x57e   : > { %v3106_v56 = vadd.f32 %v3105_v25, %v3093_v54 }
 0x580   : > { %v7275_v61 = vadd.f32 %v3118_v48, %v3106_v56 }
 0x581   : > { %v3081_v62 = vpop.f32.mrf.mxu3  ;;  %4269 = vmatpush.bf16.msra.mxu2 %v6530_v33 }
 0x584   : > { %v3120_v63 = vpop.f32.mrf.mxu2 }
 0x585   : > { %4270 = vmatpush.bf16.msra.mxu2 %v6529_v41 }
 0x58d   : > { %v3546_v14 = vpop.f32.mrf.mxu0 }
 0x58e   : > { %v3547_v34 = vadd.f32 %v3546_v14, %v3189_v5 }
 0x590   : > { %v3559_v3 = vpop.f32.mrf.mxu1  ;;  %vm3629_vm6 = vcmp.ge.f32.partialorder %v3547_v34, 0.0  ;;  %v3637_v19 = vmul.f32 0.01, %v3547_v34 }
 0x591   : > { %v3560_v18 = vadd.f32 %v3559_v3, %v3190_v43 }
 0x592   : > { %v3645_v20 = vsel %vm3629_vm6, %v3547_v34, %v3637_v19 }
 0x593   : > { %vm3630_vm7 = vcmp.ge.f32.partialorder %v3560_v18, 0.0  ;;  %v3638_v2 = vmul.f32 0.01, %v3560_v18  ;;  %v3653_v25 = vpack.c.bf16 %v3645_v20, %v3645_v20 }
 0x595   : > { %v3646_v27 = vsel %vm3630_vm7, %v3560_v18, %v3638_v2  ;;  %v3548_v29 = vpop.f32.mrf.mxu0  ;;  %4193 = vmatmul.bf16.vlgmr.msrb.gmra.mxu0 %v3653_v25 }
 0x596   : > { %v3654_v37 = vpack.c.bf16 %v3646_v27, %v3646_v27 }
 0x598   : > { %v3561_v30 = vpop.f32.mrf.mxu1  ;;  %4206 = vmatmul.bf16.vlgmr.msrb.gmra.mxu1 %v3654_v37 }
 0x599   : > { %v3533_v36 = vpop.f32.mrf.mxu3 }
 0x59a   : > { %v3534_v38 = vadd.f32 %v3533_v36, %v3188_v31 }
 0x59c   : > { %v3572_v39 = vpop.f32.mrf.mxu2  ;;  %vm3628_vm8 = vcmp.ge.f32.partialorder %v3534_v38, 0.0  ;;  %v3636_v9 = vmul.f32 0.01, %v3534_v38 }
 0x59d   : > { %v3573_v42 = vadd.f32 %v3572_v39, %v3191_v35  ;;  %v6654_v39 = vld [vmem:[%s7347_s8] ss:$0 sm:$0xff] }
 0x59e   : > { %v3644_v45 = vsel %vm3628_vm8, %v3534_v38, %v3636_v9 }
 0x59f   : > { %vm3631_vm9 = vcmp.ge.f32.partialorder %v3573_v42, 0.0  ;;  %v3639_v44 = vmul.f32 0.01, %v3573_v42  ;;  %v3652_v10 = vpack.c.bf16 %v3644_v45, %v3644_v45 }
 0x5a1   : > { %v3647_v46 = vsel %vm3631_vm9, %v3573_v42, %v3639_v44  ;;  %v3535_v48 = vpop.f32.mrf.mxu3  ;;  %4180 = vmatmul.bf16.vlgmr.msra.gmra.mxu3 %v3652_v10 }
 0x5a2   : > { %v3655_v47 = vpack.c.bf16 %v3647_v46, %v3647_v46 }
 0x5a4   : > { %v3574_v49 = vpop.f32.mrf.mxu2  ;;  %4219 = vmatmul.bf16.vlgmr.msrb.gmra.mxu2 %v3655_v47 }
 0x5ad   : > { %v3598_v52 = vpop.f32.mrf.mxu0 }
 0x5ae   : > { %v3599_v11 = vadd.f32 %v3598_v52, %v3193_v50 }
 0x5b0   : > { %v3611_v53 = vpop.f32.mrf.mxu1  ;;  %vm3633_vm10 = vcmp.ge.f32.partialorder %v3599_v11, 0.0  ;;  %v3641_v54 = vmul.f32 0.01, %v3599_v11 }
 0x5b1   : > { %v3612_v55 = vadd.f32 %v3611_v53, %v3194_v51 }
 0x5b2   : > { %v3649_v56 = vsel %vm3633_vm10, %v3599_v11, %v3641_v54  ;;  %v6655_v54 = vld [vmem:[%s7348_s9] ss:$0 sm:$0xff] }
 0x5b3   : > { %vm3634_vm11 = vcmp.ge.f32.partialorder %v3612_v55, 0.0  ;;  %v3642_v57 = vmul.f32 0.01, %v3612_v55  ;;  %v3657_v58 = vpack.c.bf16 %v3649_v56, %v3649_v56  ;;  %v6656_v56 = vld [vmem:[%s7380_s16] ss:$0 sm:$0xff] }
 0x5b5   : > { %v3650_v59 = vsel %vm3634_vm11, %v3612_v55, %v3642_v57  ;;  %v3600_v62 = vpop.f32.mrf.mxu0  ;;  %4245 = vmatmul.bf16.vlgmr.msra.gmra.mxu0 %v3657_v58 }
 0x5b6   : > { %v3658_v28 = vpack.c.bf16 %v3650_v59, %v3650_v59 }
 0x5b8   : > { %v3613_v63 = vpop.f32.mrf.mxu1  ;;  %4258 = vmatmul.bf16.vlgmr.msra.gmra.mxu1 %v3658_v28 }
 0x5b9   : > { %v3585_v23 = vpop.f32.mrf.mxu3 }
 0x5ba   : > { %v3586_v1 = vadd.f32 %v3585_v23, %v3192_v0 }
 0x5bc   : > { %v3624_v5 = vpop.f32.mrf.mxu2  ;;  %vm3632_vm12 = vcmp.ge.f32.partialorder %v3586_v1, 0.0  ;;  %v3640_v8 = vmul.f32 0.01, %v3586_v1 }
 0x5bd   : > { %v3625_v6 = vadd.f32 %v3624_v5, %v3195_v22 }
 0x5be   : > { %v3648_v43 = vsel %vm3632_vm12, %v3586_v1, %v3640_v8 }
 0x5bf   : > { %vm3635_vm13 = vcmp.ge.f32.partialorder %v3625_v6, 0.0  ;;  %v3643_v12 = vmul.f32 0.01, %v3625_v6  ;;  %v3656_v13 = vpack.c.bf16 %v3648_v43, %v3648_v43 }
 0x5c1   : > { %v3651_v14 = vsel %vm3635_vm13, %v3625_v6, %v3643_v12  ;;  %v3587_v3 = vpop.f32.mrf.mxu3  ;;  %4232 = vmatmul.bf16.vlgmr.msrb.gmra.mxu3 %v3656_v13 }
 0x5c2   : > { %v3659_v34 = vpack.c.bf16 %v3651_v14, %v3651_v14 }
 0x5c4   : > { %v3626_v15 = vpop.f32.mrf.mxu2  ;;  %4271 = vmatmul.bf16.vlgmr.msra.gmra.mxu2 %v3659_v34 }
 0x612   : > { %v4194_v16 = vpop.f32.mrf.mxu0 }
 0x615   : > { %v4207_v17 = vpop.f32.mrf.mxu1 }
 0x61a   : > { %v4196_v18 = vpop.f32.mrf.mxu0 }
 0x61d   : > { %v4209_v4 = vpop.f32.mrf.mxu1 }
 0x624   : > { %v4181_v24 = vpop.f32.mrf.mxu3 }
 0x625   : > { %v4195_v27 = vadd.f32 %v4194_v16, %v4181_v24 }
 0x627   : > { %v4220_v19 = vpop.f32.mrf.mxu2  ;;  %v4208_v29 = vadd.f32 %v4207_v17, %v4195_v27 }
 0x629   : > { %v4221_v30 = vadd.f32 %v4220_v19, %v4208_v29 }
 0x62c   : > { %v4183_v2 = vpop.f32.mrf.mxu3 }
 0x62f   : > { %v4222_v20 = vpop.f32.mrf.mxu2 }
 0x632   : > { %v4246_v21 = vpop.f32.mrf.mxu0 }
 0x635   : > { %v4259_v26 = vpop.f32.mrf.mxu1 }
 0x63a   : > { %v4248_v25 = vpop.f32.mrf.mxu0 }
 0x63d   : > { %v4261_v37 = vpop.f32.mrf.mxu1 }
 0x644   : > { %v4233_v31 = vpop.f32.mrf.mxu3 }
 0x645   : > { %v4234_v32 = vadd.f32 %v4233_v31, %v4221_v30 }
 0x647   : > { %v4272_v33 = vpop.f32.mrf.mxu2  ;;  %v4247_v35 = vadd.f32 %v4246_v21, %v4234_v32 }
 0x649   : > { %v4260_v36 = vadd.f32 %v4259_v26, %v4247_v35 }
 0x64b   : > { %v4273_v38 = vadd.f32 %v4272_v33, %v4260_v36 }
 0x64c   : > { %v4235_v40 = vpop.f32.mrf.mxu3 }
 0x64d   : > { %v4276_v41 = vadd.f32 %v4273_v38, %v7275_v61 }
 0x64f   : > { %v4274_v42 = vpop.f32.mrf.mxu2  ;;  %v4281_v9 = vadd.f32 %v6654_v39, %v4276_v41 }
 0x651   : > { %v4282_v44 = vadd.f32 %v4281_v9, %v7199_v7 }
 0x653   : > { %4285 = vadd.xlane.f32.xlu2 %v4282_v44 }
 0x6c6   : > { %v4286_v45 = vpop.xlane.xlu2 %4285 }
 0x6c7   : > { %v4287_v10 = vmul.f32 %v4286_v45, %v7183_v60 }
 0x6c9   : > { %v4288_v46 = vsub.f32 %v4282_v44, %v4287_v10 }
 0x6cb   : > { %v4289_v47 = vmul.f32 %v4288_v46, %v4288_v46 }
 0x6cd   : > { %4290 = vadd.xlane.f32.xlu2 %v4289_v47 }
 0x740   : > { %v4291_v48 = vpop.xlane.xlu2 %4290 }
 0x741   : > { %v4292_v49 = vmul.f32 %v4291_v48, %v7183_v60 }
 0x743   : > { %v4293_v50 = vadd.f32 1e-05, %v4292_v49 }
 0x745   : > { %6665 = vrsqrt.f32 %v4293_v50  ;;  %vm4300_vm15 = vweird.f32 %v4293_v50 }
 0x74b   : > { %v6666_v51 = vpop.eup %6665 }
 0x74c   : > { %v4295_v61 = vmul.f32 %v6666_v51, %v4293_v50  ;;  %vm4301_vm14 = vweird.f32 %v6666_v51 }
 0x74d   : > { %vm4302_vm0 = vmor %vm4300_vm15, %vm4301_vm14 }
 0x74e   : > { %v4296_v52 = vmul.f32 %v6666_v51, %v4295_v61 }
 0x750   : > { %v4297_v11 = vmul.f32 0.5, %v4296_v52 }
 0x752   : > { %v4298_v53 = vsub.f32 1.5, %v4297_v11 }
 0x754   : > { %v4299_v7 = vmul.f32 %v6666_v51, %v4298_v53 }
 0x756   : > { %v4303_v60 = vsel %vm4302_vm0, %v6666_v51, %v4299_v7 }
 0x757   : > { %v4304_v55 = vmul.f32 %v4303_v60, %v4288_v46 }
 0x759   : > { %v4308_v57 = vmul.f32 %v6655_v54, %v4304_v55 }
 0x75b   : > { %v4312_v58 = vadd.f32 %v6656_v56, %v4308_v57 }
 0x75d   : > { %4313 = vst [vmem:[%s523_s20] sm:$0xff] %v4312_v58 }
 0x75e   : > { %6874 = shalt.err (!%p6871_p13)
}
 0x75f   : > { %6557 = dma.vmem_to_hbm [thread:$0]  (%p7110_p2), %s4329_s5, 128, %s4331_s7, %s4315_s17  }
 0x760 PF: > { %s7381_s6 = sld [smem:[#allocation20_spill]]  ;;  %p6580_p0 = pnand %p4479_p6, %p7117_p5 }
 0x762   : > { %p6581_p4 = pneg %p6580_p0 }
 0x766   : > { %s4342_s10 = sand.u32 1, %s7381_s6  }
 0x767   : > { %s4343_s14 = scalar_lea.sflag [#allocation4], %s4342_s10 }
 0x768   : > { %6920 = dma.done.wait (%p6581_p4), %s4343_s14, 128  }
 0x769   : > { %6922 = vsyncadd (%p6581_p4), %s4343_s14, 4294967168  ;;  %s32_s22 = sadd.s32 1, %s6945_s22   ;;  %s7383_s30 = sld [smem:[#allocation21_spill]] }
 0x76a   : > { %p29_p7 = scmp.ge.s32.totalorder %s32_s22, 4   ;;  %s7384_s19 = sld [smem:[#allocation24_spill]] }
 0x76b   : > { %s7385_s20 = sld [smem:[#allocation22_spill]]  ;;  %s7387_s17 = smov %s6929_s18 }
 0x76c   : > { %s7386_s21 = sld [smem:[#allocation23_spill]]  ;;  %31 = sbr.rel (!%p29_p7) target bundleno = 17 (0x11), region = 138 }
 0x76f   : > { %s7388_s18 = smov %s7383_s30 }
 0x771   :  { %4349 = vsyncpa [#allocation3], 1 }
 0x772   :  { %4351 = vsyncpa [#allocation3 + $0x1], 1 }
 0x773   :  { %4352 = vsyncpa [#allocation6], 1 }
 0x774   :  { %4354 = vsyncpa [#allocation6 + $0x1], 1 }
 0x775   :  { %4355 = vsyncpa [#allocation9], 1 }
 0x776   :  { %4356 = vsyncpa [#allocation12], 1 }
 0x777   :  { %4357 = vsyncpa [#allocation4], 1 }
 0x778   :  { %4359 = vsyncpa [#allocation4 + $0x1], 1 }

</bundles_post_ra>
